<compile_context>
chip_gen: v7x
topology: tpu7x:2x2x1
jax: 0.10.0
libtpu: 0.0.40
codegen_flags: <defaults>
</compile_context>

<pallas_src>
import jax
import jax.numpy as jnp
from jax import lax
from jax.experimental import pallas as pl
from jax.experimental.pallas import tpu as pltpu


# ----------------------------------------------------------------------------
# helpers: generation-aware VMEM budget + tile picker
# ----------------------------------------------------------------------------
def _vmem_limit_bytes():
    """Scoped-VMEM budget per kernel, generation aware."""
    try:
        kind = jax.devices()[0].device_kind.lower()
    except Exception:
        kind = ""
    if "v7" in kind:                  # 64 MiB physical VMEM per TensorCore
        return 44 * 1024 * 1024
    if "v5" in kind or "v6" in kind:  # 128 MiB physical VMEM
        return 64 * 1024 * 1024
    return 32 * 1024 * 1024           # conservative fallback (v4 / unknown)


def _pick_tile(n, cap, quanta=(128, 8)):
    """Largest divisor of n that is <= cap and a multiple of one of `quanta`
    (tried in order); falls back to the full extent n if none exists."""
    cap = min(cap, n)
    for q in quanta:
        best = 0
        t = q
        while t <= cap:
            if n % t == 0:
                best = t
            t += q
        if best:
            return best
    return n


# ----------------------------------------------------------------------------
# Kernel 1: single pass over the adjacency.
#   adj_lp = bf16(adj)                        (0/1 exact in bf16)
#   norm   = rsqrt(max(row_sum(adj), 1))      (in-degree normalization)
# ----------------------------------------------------------------------------
def prep_kernel(adj_ref, adj_lp_ref, norm_ref):
    k = pl.program_id(1)
    a = adj_ref[...].astype(jnp.float32)
    adj_lp_ref[...] = a.astype(jnp.bfloat16)

    @pl.when(k == 0)
    def _():
        norm_ref[...] = jnp.zeros_like(norm_ref)

    norm_ref[...] += jnp.sum(a, axis=1, keepdims=True)

    @pl.when(k == pl.num_programs(1) - 1)
    def _():
        norm_ref[...] = lax.rsqrt(jnp.maximum(norm_ref[...], 1.0))


# ----------------------------------------------------------------------------
# Kernel 2: fused projection + aggregation + epilogue + BN partial stats.
#   per (row tile i, src tile k):
#     h0   = bf16((norm_src * feat_src) @ W)         (on-the-fly projection)
#     out += adj_tile @ h0                            (f32 accumulation)
#   at last k:
#     y = relu(out*norm_dst + b) + (feat_dst @ W_res + b_res)
#     emit y, per-tile column sum and tile-mean-centered sum of squares.
# ----------------------------------------------------------------------------
def gcn_main_kernel(adj_ref, feat_src_ref, norm_src_ref,
                    feat_dst_ref, norm_dst_ref,
                    w_ref, b_ref, wres_ref, bres_ref,
                    out_ref, stats_ref):
    k = pl.program_id(1)

    @pl.when(k == 0)
    def _():
        out_ref[...] = jnp.zeros_like(out_ref)   # f32 accumulator (no scratch)

    # Projection FLOPs are O(tk*Fin*Fout), negligible vs the aggregation.
    h0 = jnp.dot(norm_src_ref[...] * feat_src_ref[...], w_ref[...],
                 preferred_element_type=jnp.float32).astype(jnp.bfloat16)
    out_ref[...] += jnp.dot(adj_ref[...], h0,
                            preferred_element_type=jnp.float32)

    @pl.when(k == pl.num_programs(1) - 1)
    def _():
        res = jnp.dot(feat_dst_ref[...], wres_ref[...],
                      preferred_element_type=jnp.float32) + bres_ref[...]
        y = out_ref[...] * norm_dst_ref[...] + b_ref[...]   # rst*norm + bias
        y = jnp.maximum(y, 0.0) + res                       # relu + residual
        out_ref[...] = y
        # BatchNorm partial statistics (Chan-style: tile sum + sum of squares
        # centered on the *tile* mean -> cancellation-free global combine).
        n = y.shape[0]
        s = jnp.sum(y, axis=0, keepdims=True)                # (1, Fout)
        d = y - s * (1.0 / n)
        ssc = jnp.sum(d * d, axis=0, keepdims=True)          # (1, Fout)
        row = lax.broadcasted_iota(jnp.int32, stats_ref.shape, 0)
        stats_ref[...] = jnp.where(row == 0, s, jnp.where(row == 1, ssc, 0.0))


# ----------------------------------------------------------------------------
# Kernel 3: tiled BatchNorm1d normalize pass (stats already reduced).
# ----------------------------------------------------------------------------
def bn_norm_kernel(y_ref, mean_ref, inv_ref, out_ref):
    out_ref[...] = (y_ref[...] - mean_ref[...]) * inv_ref[...]


# ----------------------------------------------------------------------------
# wrapper
# ----------------------------------------------------------------------------
def gcn_layer(adj, feat, w, b, w_res, b_res):
    N, fin = feat.shape
    fout = w.shape[1]
    assert adj.shape == (N, N)

    vmem_limit = _vmem_limit_bytes()
    # dst-row tile: large for pipeline efficiency, but >= 2 row tiles so the
    # "parallel" axis can split across v7x's two TensorCores.
    tm = _pick_tile(N, min(512, max(8, N // 2)))
    # src-col tile: as large as possible while the double-buffered bf16
    # adjacency stream stays under ~half the scoped VMEM budget (cap 2048).
    tk = _pick_tile(N, max(128, min(2048, (vmem_limit // 2) // (4 * tm))))
    n_rows, n_src = N // tm, N // tk

    b2 = b.reshape(1, fout).astype(jnp.float32)
    bres2 = b_res.reshape(1, fout).astype(jnp.float32)
    w32 = w.astype(jnp.float32)
    wres32 = w_res.astype(jnp.float32)

    cparams = pltpu.CompilerParams(
        dimension_semantics=("parallel", "arbitrary"),
        vmem_limit_bytes=vmem_limit)

    # ---- kernel 1: one adjacency pass -> bf16 adjacency + norm ----
    adj_lp, norm = pl.pallas_call(
        prep_kernel,
        out_shape=(jax.ShapeDtypeStruct((N, N), jnp.bfloat16),
                   jax.ShapeDtypeStruct((N, 1), jnp.float32)),
        grid_spec=pltpu.PrefetchScalarGridSpec(
            num_scalar_prefetch=0,
            grid=(n_rows, n_src),
            in_specs=[pl.BlockSpec((tm, tk), lambda i, k: (i, k))],
            out_specs=[pl.BlockSpec((tm, tk), lambda i, k: (i, k)),
                       pl.BlockSpec((tm, 1), lambda i, k: (i, 0))]),
        compiler_params=cparams,
    )(adj)

    # ---- kernel 2: fused projection + aggregation + epilogue + BN stats ----
    y, stats = pl.pallas_call(
        gcn_main_kernel,
        out_shape=(jax.ShapeDtypeStruct((N, fout), jnp.float32),
                   jax.ShapeDtypeStruct((n_rows * 8, fout), jnp.float32)),
        grid_spec=pltpu.PrefetchScalarGridSpec(
            num_scalar_prefetch=0,
            grid=(n_rows, n_src),
            in_specs=[pl.BlockSpec((tm, tk), lambda i, k: (i, k)),     # adj
                      pl.BlockSpec((tk, fin), lambda i, k: (k, 0)),    # feat src
                      pl.BlockSpec((tk, 1), lambda i, k: (k, 0)),      # norm src
                      pl.BlockSpec((tm, fin), lambda i, k: (i, 0)),    # feat dst
                      pl.BlockSpec((tm, 1), lambda i, k: (i, 0)),      # norm dst
                      pl.BlockSpec((fin, fout), lambda i, k: (0, 0)),  # W
                      pl.BlockSpec((1, fout), lambda i, k: (0, 0)),    # b
                      pl.BlockSpec((fin, fout), lambda i, k: (0, 0)),  # W_res
                      pl.BlockSpec((1, fout), lambda i, k: (0, 0))],   # b_res
            out_specs=[pl.BlockSpec((tm, fout), lambda i, k: (i, 0)),
                       pl.BlockSpec((8, fout), lambda i, k: (i, 0))]),
        compiler_params=cparams,
    )(adj_lp, feat, norm, feat, norm, w32, b2, wres32, bres2)

    # ---- tiny XLA finalize of BatchNorm stats (O(n_rows * Fout)) ----
    st = stats.reshape(n_rows, 8, fout)
    s_tile, ssc_tile = st[:, 0, :], st[:, 1, :]
    mean = jnp.sum(s_tile, axis=0, keepdims=True) / N                # (1, Fout)
    tile_mean = s_tile / tm
    var = (jnp.sum(ssc_tile, axis=0, keepdims=True)
           + tm * jnp.sum((tile_mean - mean) ** 2, axis=0, keepdims=True)) / N
    inv_std = lax.rsqrt(var + 1e-5)

    # ---- kernel 3: tiled BatchNorm normalize (Dropout(0.0) is identity) ----
    tbn = _pick_tile(N, 2048)
    out = pl.pallas_call(
        bn_norm_kernel,
        out_shape=jax.ShapeDtypeStruct((N, fout), jnp.float32),
        grid_spec=pltpu.PrefetchScalarGridSpec(
            num_scalar_prefetch=0,
            grid=(N // tbn,),
            in_specs=[pl.BlockSpec((tbn, fout), lambda i: (i, 0)),
                      pl.BlockSpec((1, fout), lambda i: (0, 0)),
                      pl.BlockSpec((1, fout), lambda i: (0, 0))],
            out_specs=pl.BlockSpec((tbn, fout), lambda i: (i, 0))),
        compiler_params=pltpu.CompilerParams(
            dimension_semantics=("parallel",),
            vmem_limit_bytes=vmem_limit),
    )(y, mean, inv_std)
    return out


if __name__ == "__main__":
    N = 512          # number of graph nodes (2 dst-row tiles -> megacore split)
    IN_FEATS = 32
    OUT_FEATS = 16

    key = jax.random.PRNGKey(0)
    k_adj, k_feat, k_w, k_wres, k_bres = jax.random.split(key, 5)

    # deterministic random graph (dense adjacency, dst x src)
    adj = (jax.random.uniform(k_adj, (N, N)) > 0.5).astype(jnp.float32)

    # node features
    feat = jax.random.normal(k_feat, (N, IN_FEATS), dtype=jnp.float32)

    # GraphConvsg weight: xavier_uniform_((in_feats, out_feats)), bias zeros
    bound_w = (6.0 / (IN_FEATS + OUT_FEATS)) ** 0.5
    w = jax.random.uniform(k_w, (IN_FEATS, OUT_FEATS), jnp.float32,
                           minval=-bound_w, maxval=bound_w)
    b = jnp.zeros((OUT_FEATS,), jnp.float32)

    # residual nn.Linear(in_feats, out_feats): uniform(-1/sqrt(in), 1/sqrt(in))
    bound_l = 1.0 / (IN_FEATS ** 0.5)
    w_res = jax.random.uniform(k_wres, (IN_FEATS, OUT_FEATS), jnp.float32,
                               minval=-bound_l, maxval=bound_l)
    b_res = jax.random.uniform(k_bres, (OUT_FEATS,), jnp.float32,
                               minval=-bound_l, maxval=bound_l)

    gcn = jax.jit(gcn_layer)
    out = gcn(adj, feat, w, b, w_res, b_res)
    jax.block_until_ready(out)

    # pure-f32 module reference (highest-precision matmuls); kernel uses a
    # bf16 adjacency / bf16 projected-feature path, so compare loosely.
    hp = jax.lax.Precision.HIGHEST
    norm = jax.lax.rsqrt(jnp.maximum(adj.sum(1, keepdims=True), 1.0))
    h = jnp.dot(feat * norm, w, precision=hp)
    h = jnp.dot(adj, h, precision=hp) * norm + b
    h = jnp.maximum(h, 0.0) + jnp.dot(feat, w_res, precision=hp) + b_res
    ref = (h - h.mean(0)) * jax.lax.rsqrt(h.var(0) + 1e-5)

    assert jnp.allclose(out, ref, atol=3e-2, rtol=3e-2), (
        "kernel output diverges from f32 reference")

    print("KERNEL_OK")
</pallas_src>

<mosaic_0001>
module attributes {stable_mosaic.version = 11 : i64} {
  func.func @prep_kernel(%arg0: i32, %arg1: i32, %arg2: memref<256x512xf32, #tpu.memory_space<vmem>>, %arg3: memref<256x512xbf16, #tpu.memory_space<vmem>>, %arg4: memref<256x1xf32, #tpu.memory_space<vmem>>) attributes {dimension_semantics = [#tpu.dimension_semantics<parallel>, #tpu.dimension_semantics<arbitrary>], iteration_bounds = array<i64: 2, 1>, scalar_prefetch = 0 : i64, scratch_operands = 0 : i64, tpu.core_type = #tpu.core_type<tc>, window_params = [{transform_indices = @transform_0, window_bounds = array<i64: 256, 512>}, {transform_indices = @transform_1, window_bounds = array<i64: 256, 512>}, {transform_indices = @transform_2, window_bounds = array<i64: 256, 1>}]} {
    %c0 = arith.constant 0 : index
    %c0_0 = arith.constant 0 : index
    %0 = vector.load %arg2[%c0, %c0_0] : memref<256x512xf32, #tpu.memory_space<vmem>>, vector<256x512xf32>
    %1 = arith.truncf %0 : vector<256x512xf32> to vector<256x512xbf16>
    %c0_1 = arith.constant 0 : index
    %c0_2 = arith.constant 0 : index
    %2 = vector.load %arg3[%c0_1, %c0_2] : memref<256x512xbf16, #tpu.memory_space<vmem>>, vector<256x512xbf16>
    tpu.vector_store %arg3[%c0_1, %c0_2], %1 {strides = array<i32>} : memref<256x512xbf16, #tpu.memory_space<vmem>>, vector<256x512xbf16>,
    %c0_i32 = arith.constant 0 : i32
    %3 = arith.cmpi eq, %arg1, %c0_i32 : i32
    %4 = arith.extui %3 : i1 to i32
    %c0_i32_3 = arith.constant 0 : i32
    %5 = arith.cmpi ne, %4, %c0_i32_3 : i32
    scf.if %5 {
      %cst_10 = arith.constant 0.000000e+00 : f32
      %14 = vector.broadcast %cst_10 : f32 to vector<256x1xf32>
      %c0_11 = arith.constant 0 : index
      %c0_12 = arith.constant 0 : index
      %15 = vector.load %arg4[%c0_11, %c0_12] : memref<256x1xf32, #tpu.memory_space<vmem>>, vector<256x1xf32>
      tpu.vector_store %arg4[%c0_11, %c0_12], %14 {strides = array<i32>} : memref<256x1xf32, #tpu.memory_space<vmem>>, vector<256x1xf32>,
    } else {
    }
    %c0_4 = arith.constant 0 : index
    %c0_5 = arith.constant 0 : index
    %6 = vector.load %arg4[%c0_4, %c0_5] : memref<256x1xf32, #tpu.memory_space<vmem>>, vector<256x1xf32>
    %cst = arith.constant dense<0.000000e+00> : vector<256xf32>
    %7 = vector.multi_reduction <add>, %0, %cst [1] : vector<256x512xf32> to vector<256xf32>
    %8 = vector.shape_cast %7 : vector<256xf32> to vector<256x1xf32>
    %9 = arith.addf %6, %8 : vector<256x1xf32>
    %c0_6 = arith.constant 0 : index
    %c0_7 = arith.constant 0 : index
    %10 = vector.load %arg4[%c0_6, %c0_7] : memref<256x1xf32, #tpu.memory_space<vmem>>, vector<256x1xf32>
    tpu.vector_store %arg4[%c0_6, %c0_7], %9 {strides = array<i32>} : memref<256x1xf32, #tpu.memory_space<vmem>>, vector<256x1xf32>,
    %c0_i32_8 = arith.constant 0 : i32
    %11 = arith.cmpi eq, %arg1, %c0_i32_8 : i32
    %12 = arith.extui %11 : i1 to i32
    %c0_i32_9 = arith.constant 0 : i32
    %13 = arith.cmpi ne, %12, %c0_i32_9 : i32
    scf.if %13 {
      %c0_10 = arith.constant 0 : index
      %c0_11 = arith.constant 0 : index
      %14 = vector.load %arg4[%c0_10, %c0_11] : memref<256x1xf32, #tpu.memory_space<vmem>>, vector<256x1xf32>
      %cst_12 = arith.constant 1.000000e+00 : f32
      %15 = vector.broadcast %cst_12 : f32 to vector<256x1xf32>
      %16 = arith.maximumf %14, %15 : vector<256x1xf32>
      %17 = math.rsqrt %16 : vector<256x1xf32>
      %c0_13 = arith.constant 0 : index
      %c0_14 = arith.constant 0 : index
      %18 = vector.load %arg4[%c0_13, %c0_14] : memref<256x1xf32, #tpu.memory_space<vmem>>, vector<256x1xf32>
      tpu.vector_store %arg4[%c0_13, %c0_14], %17 {strides = array<i32>} : memref<256x1xf32, #tpu.memory_space<vmem>>, vector<256x1xf32>,
    } else {
    }
    return
  }
  func.func @transform_0(%arg0: i32, %arg1: i32) -> (i32, i32) {
    %c0_i32 = arith.constant 0 : i32
    return %arg0, %arg1 : i32, i32
  }
  func.func @transform_1(%arg0: i32, %arg1: i32) -> (i32, i32) {
    %c0_i32 = arith.constant 0 : i32
    return %arg0, %arg1 : i32, i32
  }
  func.func @transform_2(%arg0: i32, %arg1: i32) -> (i32, i32) {
    %c0_i32 = arith.constant 0 : i32
    %c0_i32_0 = arith.constant 0 : i32
    return %arg0, %c0_i32 : i32, i32
  }
}

module attributes {stable_mosaic.version = 11 : i64} {
  func.func @gcn_main_kernel(%arg0: i32, %arg1: i32, %arg2: memref<256x512xbf16, #tpu.memory_space<vmem>>, %arg3: memref<512x32xf32, #tpu.memory_space<vmem>>, %arg4: memref<512x1xf32, #tpu.memory_space<vmem>>, %arg5: memref<256x32xf32, #tpu.memory_space<vmem>>, %arg6: memref<256x1xf32, #tpu.memory_space<vmem>>, %arg7: memref<32x16xf32, #tpu.memory_space<vmem>>, %arg8: memref<1x16xf32, #tpu.memory_space<vmem>>, %arg9: memref<32x16xf32, #tpu.memory_space<vmem>>, %arg10: memref<1x16xf32, #tpu.memory_space<vmem>>, %arg11: memref<256x16xf32, #tpu.memory_space<vmem>>, %arg12: memref<8x16xf32, #tpu.memory_space<vmem>>) attributes {dimension_semantics = [#tpu.dimension_semantics<parallel>, #tpu.dimension_semantics<arbitrary>], iteration_bounds = array<i64: 2, 1>, scalar_prefetch = 0 : i64, scratch_operands = 0 : i64, tpu.core_type = #tpu.core_type<tc>, window_params = [{transform_indices = @transform_0, window_bounds = array<i64: 256, 512>}, {transform_indices = @transform_1, window_bounds = array<i64: 512, 32>}, {transform_indices = @transform_2, window_bounds = array<i64: 512, 1>}, {transform_indices = @transform_3, window_bounds = array<i64: 256, 32>}, {transform_indices = @transform_4, window_bounds = array<i64: 256, 1>}, {pipeline_mode = #tpu.pipeline_mode<synchronous>, transform_indices = @transform_5, window_bounds = array<i64: 32, 16>}, {pipeline_mode = #tpu.pipeline_mode<synchronous>, transform_indices = @transform_6, window_bounds = array<i64: 1, 16>}, {pipeline_mode = #tpu.pipeline_mode<synchronous>, transform_indices = @transform_7, window_bounds = array<i64: 32, 16>}, {pipeline_mode = #tpu.pipeline_mode<synchronous>, transform_indices = @transform_8, window_bounds = array<i64: 1, 16>}, {transform_indices = @transform_9, window_bounds = array<i64: 256, 16>}, {transform_indices = @transform_10, window_bounds = array<i64: 8, 16>}]} {
    %c0_i32 = arith.constant 0 : i32
    %0 = arith.cmpi eq, %arg1, %c0_i32 : i32
    %1 = arith.extui %0 : i1 to i32
    %c0_i32_0 = arith.constant 0 : i32
    %2 = arith.cmpi ne, %1, %c0_i32_0 : i32
    scf.if %2 {
      %cst_15 = arith.constant 0.000000e+00 : f32
      %18 = vector.broadcast %cst_15 : f32 to vector<256x16xf32>
      %c0_16 = arith.constant 0 : index
      %c0_17 = arith.constant 0 : index
      %19 = vector.load %arg11[%c0_16, %c0_17] : memref<256x16xf32, #tpu.memory_space<vmem>>, vector<256x16xf32>
      tpu.vector_store %arg11[%c0_16, %c0_17], %18 {strides = array<i32>} : memref<256x16xf32, #tpu.memory_space<vmem>>, vector<256x16xf32>,
    } else {
    }
    %c0 = arith.constant 0 : index
    %c0_1 = arith.constant 0 : index
    %3 = vector.load %arg4[%c0, %c0_1] : memref<512x1xf32, #tpu.memory_space<vmem>>, vector<512x1xf32>
    %c0_2 = arith.constant 0 : index
    %c0_3 = arith.constant 0 : index
    %4 = vector.load %arg3[%c0_2, %c0_3] : memref<512x32xf32, #tpu.memory_space<vmem>>, vector<512x32xf32>
    %5 = vector.broadcast %3 : vector<512x1xf32> to vector<512x32xf32>
    %6 = arith.mulf %5, %4 : vector<512x32xf32>
    %c0_4 = arith.constant 0 : index
    %c0_5 = arith.constant 0 : index
    %7 = vector.load %arg7[%c0_4, %c0_5] : memref<32x16xf32, #tpu.memory_space<vmem>>, vector<32x16xf32>
    %cst = arith.constant dense<0.000000e+00> : vector<512x16xf32>
    %8 = tpu.matmul %6, %7, %cst {dimension_numbers = #tpu.dot_dimension_numbers<[1], [0], [0], [1], [0, 0, 1, 1], [], []>} : vector<512x32xf32>, vector<32x16xf32>, vector<512x16xf32> -> vector<512x16xf32>
    %9 = arith.truncf %8 : vector<512x16xf32> to vector<512x16xbf16>
    %c0_6 = arith.constant 0 : index
    %c0_7 = arith.constant 0 : index
    %10 = vector.load %arg11[%c0_6, %c0_7] : memref<256x16xf32, #tpu.memory_space<vmem>>, vector<256x16xf32>
    %c0_8 = arith.constant 0 : index
    %c0_9 = arith.constant 0 : index
    %11 = vector.load %arg2[%c0_8, %c0_9] : memref<256x512xbf16, #tpu.memory_space<vmem>>, vector<256x512xbf16>
    %cst_10 = arith.constant dense<0.000000e+00> : vector<256x16xf32>
    %12 = tpu.matmul %11, %9, %cst_10 {dimension_numbers = #tpu.dot_dimension_numbers<[1], [0], [0], [1], [0, 0, 1, 1], [], []>} : vector<256x512xbf16>, vector<512x16xbf16>, vector<256x16xf32> -> vector<256x16xf32>
    %13 = arith.addf %10, %12 : vector<256x16xf32>
    %c0_11 = arith.constant 0 : index
    %c0_12 = arith.constant 0 : index
    %14 = vector.load %arg11[%c0_11, %c0_12] : memref<256x16xf32, #tpu.memory_space<vmem>>, vector<256x16xf32>
    tpu.vector_store %arg11[%c0_11, %c0_12], %13 {strides = array<i32>} : memref<256x16xf32, #tpu.memory_space<vmem>>, vector<256x16xf32>,
    %c0_i32_13 = arith.constant 0 : i32
    %15 = arith.cmpi eq, %arg1, %c0_i32_13 : i32
    %16 = arith.extui %15 : i1 to i32
    %c0_i32_14 = arith.constant 0 : i32
    %17 = arith.cmpi ne, %16, %c0_i32_14 : i32
    scf.if %17 {
      %c0_15 = arith.constant 0 : index
      %c0_16 = arith.constant 0 : index
      %18 = vector.load %arg5[%c0_15, %c0_16] : memref<256x32xf32, #tpu.memory_space<vmem>>, vector<256x32xf32>
      %c0_17 = arith.constant 0 : index
      %c0_18 = arith.constant 0 : index
      %19 = vector.load %arg9[%c0_17, %c0_18] : memref<32x16xf32, #tpu.memory_space<vmem>>, vector<32x16xf32>
      %cst_19 = arith.constant dense<0.000000e+00> : vector<256x16xf32>
      %20 = tpu.matmul %18, %19, %cst_19 {dimension_numbers = #tpu.dot_dimension_numbers<[1], [0], [0], [1], [0, 0, 1, 1], [], []>} : vector<256x32xf32>, vector<32x16xf32>, vector<256x16xf32> -> vector<256x16xf32>
      %c0_20 = arith.constant 0 : index
      %c0_21 = arith.constant 0 : index
      %21 = vector.load %arg10[%c0_20, %c0_21] : memref<1x16xf32, #tpu.memory_space<vmem>>, vector<1x16xf32>
      %22 = vector.broadcast %21 : vector<1x16xf32> to vector<256x16xf32>
      %23 = arith.addf %20, %22 : vector<256x16xf32>
      %c0_22 = arith.constant 0 : index
      %c0_23 = arith.constant 0 : index
      %24 = vector.load %arg11[%c0_22, %c0_23] : memref<256x16xf32, #tpu.memory_space<vmem>>, vector<256x16xf32>
      %c0_24 = arith.constant 0 : index
      %c0_25 = arith.constant 0 : index
      %25 = vector.load %arg6[%c0_24, %c0_25] : memref<256x1xf32, #tpu.memory_space<vmem>>, vector<256x1xf32>
      %26 = vector.broadcast %25 : vector<256x1xf32> to vector<256x16xf32>
      %27 = arith.mulf %24, %26 : vector<256x16xf32>
      %c0_26 = arith.constant 0 : index
      %c0_27 = arith.constant 0 : index
      %28 = vector.load %arg8[%c0_26, %c0_27] : memref<1x16xf32, #tpu.memory_space<vmem>>, vector<1x16xf32>
      %29 = vector.broadcast %28 : vector<1x16xf32> to vector<256x16xf32>
      %30 = arith.addf %27, %29 : vector<256x16xf32>
      %cst_28 = arith.constant 0.000000e+00 : f32
      %31 = vector.broadcast %cst_28 : f32 to vector<256x16xf32>
      %32 = arith.maximumf %30, %31 : vector<256x16xf32>
      %33 = arith.addf %32, %23 : vector<256x16xf32>
      %c0_29 = arith.constant 0 : index
      %c0_30 = arith.constant 0 : index
      %34 = vector.load %arg11[%c0_29, %c0_30] : memref<256x16xf32, #tpu.memory_space<vmem>>, vector<256x16xf32>
      tpu.vector_store %arg11[%c0_29, %c0_30], %33 {strides = array<i32>} : memref<256x16xf32, #tpu.memory_space<vmem>>, vector<256x16xf32>,
      %cst_31 = arith.constant dense<0.000000e+00> : vector<16xf32>
      %35 = vector.multi_reduction <add>, %33, %cst_31 [0] : vector<256x16xf32> to vector<16xf32>
      %36 = vector.shape_cast %35 : vector<16xf32> to vector<1x16xf32>
      %cst_32 = arith.constant 3.906250e-03 : f32
      %37 = vector.broadcast %cst_32 : f32 to vector<1x16xf32>
      %38 = arith.mulf %36, %37 : vector<1x16xf32>
      %39 = vector.broadcast %38 : vector<1x16xf32> to vector<256x16xf32>
      %40 = arith.subf %33, %39 : vector<256x16xf32>
      %41 = arith.mulf %40, %40 : vector<256x16xf32>
      %cst_33 = arith.constant dense<0.000000e+00> : vector<16xf32>
      %42 = vector.multi_reduction <add>, %41, %cst_33 [0] : vector<256x16xf32> to vector<16xf32>
      %43 = vector.shape_cast %42 : vector<16xf32> to vector<1x16xf32>
      %44 = tpu.iota {dimensions = array<i32: 0>} : vector<8x16xi32>
      %c0_i32_34 = arith.constant 0 : i32
      %45 = vector.broadcast %c0_i32_34 : i32 to vector<8x16xi32>
      %46 = arith.cmpi eq, %44, %45 : vector<8x16xi32>
      %c1_i32 = arith.constant 1 : i32
      %47 = vector.broadcast %c1_i32 : i32 to vector<8x16xi32>
      %48 = arith.cmpi eq, %44, %47 : vector<8x16xi32>
      %cst_35 = arith.constant 0.000000e+00 : f32
      %49 = vector.shape_cast %43 : vector<1x16xf32> to vector<1x16xf32>
      %50 = vector.broadcast %49 : vector<1x16xf32> to vector<8x16xf32>
      %51 = vector.broadcast %cst_35 : f32 to vector<8x16xf32>
      %52 = arith.select %48, %50, %51 : vector<8x16xi1>, vector<8x16xf32>
      %53 = vector.shape_cast %36 : vector<1x16xf32> to vector<1x16xf32>
      %54 = vector.broadcast %53 : vector<1x16xf32> to vector<8x16xf32>
      %55 = arith.select %46, %54, %52 : vector<8x16xi1>, vector<8x16xf32>
      %c0_36 = arith.constant 0 : index
      %c0_37 = arith.constant 0 : index
      %56 = vector.load %arg12[%c0_36, %c0_37] : memref<8x16xf32, #tpu.memory_space<vmem>>, vector<8x16xf32>
      tpu.vector_store %arg12[%c0_36, %c0_37], %55 {strides = array<i32>} : memref<8x16xf32, #tpu.memory_space<vmem>>, vector<8x16xf32>,
    } else {
    }
    return
  }
  func.func @transform_0(%arg0: i32, %arg1: i32) -> (i32, i32) {
    %c0_i32 = arith.constant 0 : i32
    return %arg0, %arg1 : i32, i32
  }
  func.func @transform_1(%arg0: i32, %arg1: i32) -> (i32, i32) {
    %c0_i32 = arith.constant 0 : i32
    %c0_i32_0 = arith.constant 0 : i32
    return %arg1, %c0_i32 : i32, i32
  }
  func.func @transform_2(%arg0: i32, %arg1: i32) -> (i32, i32) {
    %c0_i32 = arith.constant 0 : i32
    %c0_i32_0 = arith.constant 0 : i32
    return %arg1, %c0_i32 : i32, i32
  }
  func.func @transform_3(%arg0: i32, %arg1: i32) -> (i32, i32) {
    %c0_i32 = arith.constant 0 : i32
    %c0_i32_0 = arith.constant 0 : i32
    return %arg0, %c0_i32 : i32, i32
  }
  func.func @transform_4(%arg0: i32, %arg1: i32) -> (i32, i32) {
    %c0_i32 = arith.constant 0 : i32
    %c0_i32_0 = arith.constant 0 : i32
    return %arg0, %c0_i32 : i32, i32
  }
  func.func @transform_5(%arg0: i32, %arg1: i32) -> (i32, i32) {
    %c0_i32 = arith.constant 0 : i32
    %c0_i32_0 = arith.constant 0 : i32
    %c0_i32_1 = arith.constant 0 : i32
    return %c0_i32, %c0_i32_0 : i32, i32
  }
  func.func @transform_6(%arg0: i32, %arg1: i32) -> (i32, i32) {
    %c0_i32 = arith.constant 0 : i32
    %c0_i32_0 = arith.constant 0 : i32
    %c0_i32_1 = arith.constant 0 : i32
    return %c0_i32, %c0_i32_0 : i32, i32
  }
  func.func @transform_7(%arg0: i32, %arg1: i32) -> (i32, i32) {
    %c0_i32 = arith.constant 0 : i32
    %c0_i32_0 = arith.constant 0 : i32
    %c0_i32_1 = arith.constant 0 : i32
    return %c0_i32, %c0_i32_0 : i32, i32
  }
  func.func @transform_8(%arg0: i32, %arg1: i32) -> (i32, i32) {
    %c0_i32 = arith.constant 0 : i32
    %c0_i32_0 = arith.constant 0 : i32
    %c0_i32_1 = arith.constant 0 : i32
    return %c0_i32, %c0_i32_0 : i32, i32
  }
  func.func @transform_9(%arg0: i32, %arg1: i32) -> (i32, i32) {
    %c0_i32 = arith.constant 0 : i32
    %c0_i32_0 = arith.constant 0 : i32
    return %arg0, %c0_i32 : i32, i32
  }
  func.func @transform_10(%arg0: i32, %arg1: i32) -> (i32, i32) {
    %c0_i32 = arith.constant 0 : i32
    %c0_i32_0 = arith.constant 0 : i32
    return %arg0, %c0_i32 : i32, i32
  }
}

module attributes {stable_mosaic.version = 11 : i64} {
  func.func @bn_norm_kernel(%arg0: i32, %arg1: memref<512x16xf32, #tpu.memory_space<vmem>>, %arg2: memref<1x16xf32, #tpu.memory_space<vmem>>, %arg3: memref<1x16xf32, #tpu.memory_space<vmem>>, %arg4: memref<512x16xf32, #tpu.memory_space<vmem>>) attributes {dimension_semantics = [#tpu.dimension_semantics<parallel>], iteration_bounds = array<i64: 1>, scalar_prefetch = 0 : i64, scratch_operands = 0 : i64, tpu.core_type = #tpu.core_type<tc>, window_params = [{transform_indices = @transform_0, window_bounds = array<i64: 512, 16>}, {pipeline_mode = #tpu.pipeline_mode<synchronous>, transform_indices = @transform_1, window_bounds = array<i64: 1, 16>}, {pipeline_mode = #tpu.pipeline_mode<synchronous>, transform_indices = @transform_2, window_bounds = array<i64: 1, 16>}, {transform_indices = @transform_3, window_bounds = array<i64: 512, 16>}]} {
    %c0 = arith.constant 0 : index
    %c0_0 = arith.constant 0 : index
    %0 = vector.load %arg1[%c0, %c0_0] : memref<512x16xf32, #tpu.memory_space<vmem>>, vector<512x16xf32>
    %c0_1 = arith.constant 0 : index
    %c0_2 = arith.constant 0 : index
    %1 = vector.load %arg2[%c0_1, %c0_2] : memref<1x16xf32, #tpu.memory_space<vmem>>, vector<1x16xf32>
    %2 = vector.broadcast %1 : vector<1x16xf32> to vector<512x16xf32>
    %3 = arith.subf %0, %2 : vector<512x16xf32>
    %c0_3 = arith.constant 0 : index
    %c0_4 = arith.constant 0 : index
    %4 = vector.load %arg3[%c0_3, %c0_4] : memref<1x16xf32, #tpu.memory_space<vmem>>, vector<1x16xf32>
    %5 = vector.broadcast %4 : vector<1x16xf32> to vector<512x16xf32>
    %6 = arith.mulf %3, %5 : vector<512x16xf32>
    %c0_5 = arith.constant 0 : index
    %c0_6 = arith.constant 0 : index
    %7 = vector.load %arg4[%c0_5, %c0_6] : memref<512x16xf32, #tpu.memory_space<vmem>>, vector<512x16xf32>
    tpu.vector_store %arg4[%c0_5, %c0_6], %6 {strides = array<i32>} : memref<512x16xf32, #tpu.memory_space<vmem>>, vector<512x16xf32>,
    return
  }
  func.func @transform_0(%arg0: i32) -> (i32, i32) {
    %c0_i32 = arith.constant 0 : i32
    %c0_i32_0 = arith.constant 0 : i32
    return %arg0, %c0_i32 : i32, i32
  }
  func.func @transform_1(%arg0: i32) -> (i32, i32) {
    %c0_i32 = arith.constant 0 : i32
    %c0_i32_0 = arith.constant 0 : i32
    %c0_i32_1 = arith.constant 0 : i32
    return %c0_i32, %c0_i32_0 : i32, i32
  }
  func.func @transform_2(%arg0: i32) -> (i32, i32) {
    %c0_i32 = arith.constant 0 : i32
    %c0_i32_0 = arith.constant 0 : i32
    %c0_i32_1 = arith.constant 0 : i32
    return %c0_i32, %c0_i32_0 : i32, i32
  }
  func.func @transform_3(%arg0: i32) -> (i32, i32) {
    %c0_i32 = arith.constant 0 : i32
    %c0_i32_0 = arith.constant 0 : i32
    return %arg0, %c0_i32 : i32, i32
  }
}

</mosaic_0001>

<bundles_post_ra>
// kernel: gcn_layer.5
= control target key start
LH: loop header
LB: loop body
LE: loop exit
PB: predicated region body
PF: predicated region fallthrough
CT: control target
= control target key end

     0   :  { %vm220_vm0 = vcmask 130048   ;;  %s897_s0 = inlined_call_operand.vmem [shape: f32[512,16], index: 0, kind: input, shape index: {}]   ;;  %s898_s1 = inlined_call_operand.vmem [shape: f32[1,16], index: 1, kind: input, shape index: {}]   ;;  %s899_s2 = inlined_call_operand.vmem [shape: f32[1,16], index: 2, kind: input, shape index: {}]   ;;  %s900_s3 = inlined_call_operand.vmem [shape: f32[512,16], index: 3, kind: output, shape index: {}]  }
   0x1   :  { %v14_v0 = vld [vmem:[%s897_s0] sm:$0xff]  ;;  %v15_v4 = vld [vmem:[%s897_s0 + $0x8] sm:$0xff]  ;;  %v16_v5 = vld [vmem:[%s897_s0 + $0x10] sm:$0xff] }
   0x2   :  { %v317_v1 = vld [vmem:[%s898_s1] ss:$0 sm:$0xff]  ;;  %v17_v6 = vld [vmem:[%s897_s0 + $0x18] sm:$0xff]  ;;  %v19_v11 = vld [vmem:[%s897_s0 + $0x28] sm:$0xff] }
   0x3   :  { %v322_v2 = vld [vmem:[%s899_s2] ss:$0 sm:$0xff]  ;;  %v85_v3 = vsub.f32 %v14_v0, %v317_v1  ;;  %v86_v7 = vsub.f32 %v15_v4, %v317_v1  ;;  %v87_v8 = vsub.f32 %v16_v5, %v317_v1  ;;  %v88_v9 = vsub.f32 %v17_v6, %v317_v1  ;;  %v20_v12 = vld [vmem:[%s897_s0 + $0x30] sm:$0xff]  ;;  %v21_v17 = vld [vmem:[%s897_s0 + $0x38] sm:$0xff] }
   0x4   :  { %v18_v10 = vld [vmem:[%s897_s0 + $0x20] sm:$0xff]  ;;  %v90_v15 = vsub.f32 %v19_v11, %v317_v1  ;;  %v91_v16 = vsub.f32 %v20_v12, %v317_v1  ;;  %v23_v19 = vld [vmem:[%s897_s0 + $0x48] sm:$0xff]  ;;  %v92_v23 = vsub.f32 %v21_v17, %v317_v1  ;;  %v24_v24 = vld [vmem:[%s897_s0 + $0x50] sm:$0xff] }
   0x5   :  { %v156_v13 = vmul.f32 %v322_v2, %v85_v3  ;;  %v89_v14 = vsub.f32 %v18_v10, %v317_v1  ;;  %v22_v18 = vld [vmem:[%s897_s0 + $0x40] sm:$0xff]  ;;  %v157_v20 = vmul.f32 %v322_v2, %v86_v7  ;;  %v158_v21 = vmul.f32 %v322_v2, %v87_v8  ;;  %v25_v25 = vld [vmem:[%s897_s0 + $0x58] sm:$0xff]  ;;  %v27_v31 = vld [vmem:[%s897_s0 + $0x68] sm:$0xff] }
   0x6   :  { %v159_v22 = vmul.f32 %v322_v2, %v88_v9  ;;  %v26_v26 = vld [vmem:[%s897_s0 + $0x60] sm:$0xff]  ;;  %v161_v28 = vmul.f32 %v322_v2, %v90_v15  ;;  %v162_v29 = vmul.f32 %v322_v2, %v91_v16  ;;  %v93_v30 = vsub.f32 %v22_v18, %v317_v1  ;;  %v28_v32 = vld [vmem:[%s897_s0 + $0x70] sm:$0xff]  ;;  %v29_v33 = vld [vmem:[%s897_s0 + $0x78] sm:$0xff] }
   0x7   :  { %221 = vst.msk [vmem:[%s900_s3] sm:$0xff] %vm220_vm0, %v156_v13  ;;  %v160_v27 = vmul.f32 %v322_v2, %v89_v14  ;;  %222 = vst.msk [vmem:[%s900_s3 + $0x8] sm:$0xff] %vm220_vm0, %v157_v20  ;;  %v163_v34 = vmul.f32 %v322_v2, %v92_v23  ;;  %v94_v35 = vsub.f32 %v23_v19, %v317_v1  ;;  %v30_v38 = vld [vmem:[%s897_s0 + $0x80] sm:$0xff]  ;;  %v31_v43 = vld [vmem:[%s897_s0 + $0x88] sm:$0xff] }
   0x8   :  { %223 = vst.msk [vmem:[%s900_s3 + $0x10] sm:$0xff] %vm220_vm0, %v158_v21  ;;  %224 = vst.msk [vmem:[%s900_s3 + $0x18] sm:$0xff] %vm220_vm0, %v159_v22  ;;  %v95_v36 = vsub.f32 %v24_v24, %v317_v1  ;;  %v96_v37 = vsub.f32 %v25_v25, %v317_v1  ;;  %v164_v39 = vmul.f32 %v322_v2, %v93_v30  ;;  %v32_v44 = vld [vmem:[%s897_s0 + $0x90] sm:$0xff]  ;;  %v33_v45 = vld [vmem:[%s897_s0 + $0x98] sm:$0xff] }
   0x9   :  { %225 = vst.msk [vmem:[%s900_s3 + $0x20] sm:$0xff] %vm220_vm0, %v160_v27  ;;  %226 = vst.msk [vmem:[%s900_s3 + $0x28] sm:$0xff] %vm220_vm0, %v161_v28  ;;  %v97_v40 = vsub.f32 %v26_v26, %v317_v1  ;;  %v98_v41 = vsub.f32 %v27_v31, %v317_v1  ;;  %v99_v42 = vsub.f32 %v28_v32, %v317_v1  ;;  %v34_v50 = vld [vmem:[%s897_s0 + $0xa0] sm:$0xff]  ;;  %v35_v51 = vld [vmem:[%s897_s0 + $0xa8] sm:$0xff] }
   0xa   :  { %227 = vst.msk [vmem:[%s900_s3 + $0x30] sm:$0xff] %vm220_vm0, %v162_v29  ;;  %228 = vst.msk [vmem:[%s900_s3 + $0x38] sm:$0xff] %vm220_vm0, %v163_v34  ;;  %v165_v46 = vmul.f32 %v322_v2, %v94_v35  ;;  %v166_v47 = vmul.f32 %v322_v2, %v95_v36  ;;  %v167_v48 = vmul.f32 %v322_v2, %v96_v37  ;;  %v36_v52 = vld [vmem:[%s897_s0 + $0xb0] sm:$0xff]  ;;  %v37_v57 = vld [vmem:[%s897_s0 + $0xb8] sm:$0xff] }
   0xb   :  { %v100_v49 = vsub.f32 %v29_v33, %v317_v1  ;;  %229 = vst.msk [vmem:[%s900_s3 + $0x40] sm:$0xff] %vm220_vm0, %v164_v39  ;;  %v168_v53 = vmul.f32 %v322_v2, %v97_v40  ;;  %v169_v54 = vmul.f32 %v322_v2, %v98_v41  ;;  %v170_v55 = vmul.f32 %v322_v2, %v99_v42  ;;  %v38_v62 = vld [vmem:[%s897_s0 + $0xc0] sm:$0xff]  ;;  %v39_v5 = vld [vmem:[%s897_s0 + $0xc8] sm:$0xff]  ;;  %v40_v6 = vld [vmem:[%s897_s0 + $0xd0] sm:$0xff] }
   0xc   :  { %v101_v56 = vsub.f32 %v30_v38, %v317_v1  ;;  %230 = vst.msk [vmem:[%s900_s3 + $0x48] sm:$0xff] %vm220_vm0, %v165_v46  ;;  %231 = vst.msk [vmem:[%s900_s3 + $0x50] sm:$0xff] %vm220_vm0, %v166_v47  ;;  %v102_v59 = vsub.f32 %v31_v43, %v317_v1  ;;  %v103_v60 = vsub.f32 %v32_v44, %v317_v1  ;;  %v41_v7 = vld [vmem:[%s897_s0 + $0xd8] sm:$0xff]  ;;  %v42_v12 = vld [vmem:[%s897_s0 + $0xe0] sm:$0xff] }
   0xd   :  { %232 = vst.msk [vmem:[%s900_s3 + $0x58] sm:$0xff] %vm220_vm0, %v167_v48  ;;  %v171_v58 = vmul.f32 %v322_v2, %v100_v49  ;;  %v104_v61 = vsub.f32 %v33_v45, %v317_v1  ;;  %233 = vst.msk [vmem:[%s900_s3 + $0x60] sm:$0xff] %vm220_vm0, %v168_v53  ;;  %v105_v0 = vsub.f32 %v34_v50, %v317_v1  ;;  %v43_v13 = vld [vmem:[%s897_s0 + $0xe8] sm:$0xff]  ;;  %v44_v14 = vld [vmem:[%s897_s0 + $0xf0] sm:$0xff] }
   0xe   :  { %234 = vst.msk [vmem:[%s900_s3 + $0x68] sm:$0xff] %vm220_vm0, %v169_v54  ;;  %235 = vst.msk [vmem:[%s900_s3 + $0x70] sm:$0xff] %vm220_vm0, %v170_v55  ;;  %v172_v63 = vmul.f32 %v322_v2, %v101_v56  ;;  %v106_v3 = vsub.f32 %v35_v51, %v317_v1  ;;  %v107_v4 = vsub.f32 %v36_v52, %v317_v1  ;;  %v45_v19 = vld [vmem:[%s897_s0 + $0xf8] sm:$0xff]  ;;  %v46_v24 = vld [vmem:[%s897_s0 + $0x100] sm:$0xff] }
   0xf   :  { %236 = vst.msk [vmem:[%s900_s3 + $0x78] sm:$0xff] %vm220_vm0, %v171_v58  ;;  %v173_v8 = vmul.f32 %v322_v2, %v102_v59  ;;  %v174_v9 = vmul.f32 %v322_v2, %v103_v60  ;;  %v175_v10 = vmul.f32 %v322_v2, %v104_v61  ;;  %v108_v11 = vsub.f32 %v37_v57, %v317_v1  ;;  %v47_v29 = vld [vmem:[%s897_s0 + $0x108] sm:$0xff]  ;;  %v48_v30 = vld [vmem:[%s897_s0 + $0x110] sm:$0xff]  ;;  %v49_v31 = vld [vmem:[%s897_s0 + $0x118] sm:$0xff] }
  0x10   :  { %237 = vst.msk [vmem:[%s900_s3 + $0x80] sm:$0xff] %vm220_vm0, %v172_v63  ;;  %v176_v15 = vmul.f32 %v322_v2, %v105_v0  ;;  %v177_v16 = vmul.f32 %v322_v2, %v106_v3  ;;  %v178_v17 = vmul.f32 %v322_v2, %v107_v4  ;;  %v109_v18 = vsub.f32 %v38_v62, %v317_v1  ;;  %v50_v36 = vld [vmem:[%s897_s0 + $0x120] sm:$0xff]  ;;  %v51_v37 = vld [vmem:[%s897_s0 + $0x128] sm:$0xff]  ;;  %v52_v38 = vld [vmem:[%s897_s0 + $0x130] sm:$0xff] }
  0x11   :  { %238 = vst.msk [vmem:[%s900_s3 + $0x88] sm:$0xff] %vm220_vm0, %v173_v8  ;;  %239 = vst.msk [vmem:[%s900_s3 + $0x90] sm:$0xff] %vm220_vm0, %v174_v9  ;;  %v179_v20 = vmul.f32 %v322_v2, %v108_v11  ;;  %v110_v21 = vsub.f32 %v39_v5, %v317_v1  ;;  %v111_v22 = vsub.f32 %v40_v6, %v317_v1  ;;  %v53_v43 = vld [vmem:[%s897_s0 + $0x138] sm:$0xff]  ;;  %v54_v48 = vld [vmem:[%s897_s0 + $0x140] sm:$0xff] }
  0x12   :  { %240 = vst.msk [vmem:[%s900_s3 + $0x98] sm:$0xff] %vm220_vm0, %v175_v10  ;;  %v112_v23 = vsub.f32 %v41_v7, %v317_v1  ;;  %241 = vst.msk [vmem:[%s900_s3 + $0xa0] sm:$0xff] %vm220_vm0, %v176_v15  ;;  %v180_v25 = vmul.f32 %v322_v2, %v109_v18  ;;  %v113_v26 = vsub.f32 %v42_v12, %v317_v1  ;;  %v55_v53 = vld [vmem:[%s897_s0 + $0x148] sm:$0xff]  ;;  %v56_v54 = vld [vmem:[%s897_s0 + $0x150] sm:$0xff] }
  0x13   :  { %242 = vst.msk [vmem:[%s900_s3 + $0xa8] sm:$0xff] %vm220_vm0, %v177_v16  ;;  %243 = vst.msk [vmem:[%s900_s3 + $0xb0] sm:$0xff] %vm220_vm0, %v178_v17  ;;  %v114_v27 = vsub.f32 %v43_v13, %v317_v1  ;;  %v115_v28 = vsub.f32 %v44_v14, %v317_v1  ;;  %v181_v32 = vmul.f32 %v322_v2, %v110_v21  ;;  %v57_v55 = vld [vmem:[%s897_s0 + $0x158] sm:$0xff]  ;;  %v58_v60 = vld [vmem:[%s897_s0 + $0x160] sm:$0xff] }
  0x14   :  { %244 = vst.msk [vmem:[%s900_s3 + $0xb8] sm:$0xff] %vm220_vm0, %v179_v20  ;;  %v182_v33 = vmul.f32 %v322_v2, %v111_v22  ;;  %v183_v34 = vmul.f32 %v322_v2, %v112_v23  ;;  %v116_v35 = vsub.f32 %v45_v19, %v317_v1  ;;  %245 = vst.msk [vmem:[%s900_s3 + $0xc0] sm:$0xff] %vm220_vm0, %v180_v25  ;;  %v59_v61 = vld [vmem:[%s897_s0 + $0x168] sm:$0xff]  ;;  %v60_v62 = vld [vmem:[%s897_s0 + $0x170] sm:$0xff] }
  0x15   :  { %v184_v39 = vmul.f32 %v322_v2, %v113_v26  ;;  %v185_v40 = vmul.f32 %v322_v2, %v114_v27  ;;  %v186_v41 = vmul.f32 %v322_v2, %v115_v28  ;;  %v117_v42 = vsub.f32 %v46_v24, %v317_v1  ;;  %246 = vst.msk [vmem:[%s900_s3 + $0xc8] sm:$0xff] %vm220_vm0, %v181_v32  ;;  %v61_v5 = vld [vmem:[%s897_s0 + $0x178] sm:$0xff]  ;;  %v62_v10 = vld [vmem:[%s897_s0 + $0x180] sm:$0xff]  ;;  %v63_v15 = vld [vmem:[%s897_s0 + $0x188] sm:$0xff] }
  0x16   :  { %247 = vst.msk [vmem:[%s900_s3 + $0xd0] sm:$0xff] %vm220_vm0, %v182_v33  ;;  %248 = vst.msk [vmem:[%s900_s3 + $0xd8] sm:$0xff] %vm220_vm0, %v183_v34  ;;  %v187_v44 = vmul.f32 %v322_v2, %v116_v35  ;;  %v118_v45 = vsub.f32 %v47_v29, %v317_v1  ;;  %v119_v46 = vsub.f32 %v48_v30, %v317_v1  ;;  %v64_v16 = vld [vmem:[%s897_s0 + $0x190] sm:$0xff]  ;;  %v65_v17 = vld [vmem:[%s897_s0 + $0x198] sm:$0xff] }
  0x17   :  { %v120_v47 = vsub.f32 %v49_v31, %v317_v1  ;;  %249 = vst.msk [vmem:[%s900_s3 + $0xe0] sm:$0xff] %vm220_vm0, %v184_v39  ;;  %250 = vst.msk [vmem:[%s900_s3 + $0xe8] sm:$0xff] %vm220_vm0, %v185_v40  ;;  %v188_v49 = vmul.f32 %v322_v2, %v117_v42  ;;  %v121_v50 = vsub.f32 %v50_v36, %v317_v1  ;;  %v66_v22 = vld [vmem:[%s897_s0 + $0x1a0] sm:$0xff]  ;;  %v67_v23 = vld [vmem:[%s897_s0 + $0x1a8] sm:$0xff] }
  0x18   :  { %251 = vst.msk [vmem:[%s900_s3 + $0xf0] sm:$0xff] %vm220_vm0, %v186_v41  ;;  %v122_v51 = vsub.f32 %v51_v37, %v317_v1  ;;  %v123_v52 = vsub.f32 %v52_v38, %v317_v1  ;;  %252 = vst.msk [vmem:[%s900_s3 + $0xf8] sm:$0xff] %vm220_vm0, %v187_v44  ;;  %v189_v56 = vmul.f32 %v322_v2, %v118_v45  ;;  %v68_v24 = vld [vmem:[%s897_s0 + $0x1b0] sm:$0xff]  ;;  %v69_v29 = vld [vmem:[%s897_s0 + $0x1b8] sm:$0xff] }
  0x19   :  { %v190_v57 = vmul.f32 %v322_v2, %v119_v46  ;;  %v191_v58 = vmul.f32 %v322_v2, %v120_v47  ;;  %v124_v59 = vsub.f32 %v53_v43, %v317_v1  ;;  %253 = vst.msk [vmem:[%s900_s3 + $0x100] sm:$0xff] %vm220_vm0, %v188_v49  ;;  %v192_v63 = vmul.f32 %v322_v2, %v121_v50  ;;  %v70_v34 = vld [vmem:[%s897_s0 + $0x1c0] sm:$0xff]  ;;  %v71_v39 = vld [vmem:[%s897_s0 + $0x1c8] sm:$0xff]  ;;  %v72_v40 = vld [vmem:[%s897_s0 + $0x1d0] sm:$0xff] }
  0x1a   :  { %v193_v0 = vmul.f32 %v322_v2, %v122_v51  ;;  %v194_v3 = vmul.f32 %v322_v2, %v123_v52  ;;  %v125_v4 = vsub.f32 %v54_v48, %v317_v1  ;;  %254 = vst.msk [vmem:[%s900_s3 + $0x108] sm:$0xff] %vm220_vm0, %v189_v56  ;;  %v126_v7 = vsub.f32 %v55_v53, %v317_v1  ;;  %v73_v41 = vld [vmem:[%s897_s0 + $0x1d8] sm:$0xff]  ;;  %v74_v46 = vld [vmem:[%s897_s0 + $0x1e0] sm:$0xff]  ;;  %v75_v47 = vld [vmem:[%s897_s0 + $0x1e8] sm:$0xff] }
  0x1b   :  { %255 = vst.msk [vmem:[%s900_s3 + $0x110] sm:$0xff] %vm220_vm0, %v190_v57  ;;  %256 = vst.msk [vmem:[%s900_s3 + $0x118] sm:$0xff] %vm220_vm0, %v191_v58  ;;  %v195_v6 = vmul.f32 %v322_v2, %v124_v59  ;;  %v127_v8 = vsub.f32 %v56_v54, %v317_v1  ;;  %v128_v9 = vsub.f32 %v57_v55, %v317_v1  ;;  %v76_v48 = vld [vmem:[%s897_s0 + $0x1f0] sm:$0xff]  ;;  %v77_v53 = vld [vmem:[%s897_s0 + $0x1f8] sm:$0xff] }
  0x1c   :  { %257 = vst.msk [vmem:[%s900_s3 + $0x120] sm:$0xff] %vm220_vm0, %v192_v63  ;;  %258 = vst.msk [vmem:[%s900_s3 + $0x128] sm:$0xff] %vm220_vm0, %v193_v0  ;;  %v196_v11 = vmul.f32 %v322_v2, %v125_v4  ;;  %v129_v12 = vsub.f32 %v58_v60, %v317_v1  ;;  %v130_v13 = vsub.f32 %v59_v61, %v317_v1 }
  0x1d   :  { %259 = vst.msk [vmem:[%s900_s3 + $0x130] sm:$0xff] %vm220_vm0, %v194_v3  ;;  %v131_v14 = vsub.f32 %v60_v62, %v317_v1  ;;  %260 = vst.msk [vmem:[%s900_s3 + $0x138] sm:$0xff] %vm220_vm0, %v195_v6  ;;  %v197_v18 = vmul.f32 %v322_v2, %v126_v7  ;;  %v198_v19 = vmul.f32 %v322_v2, %v127_v8 }
  0x1e   :  { %v199_v20 = vmul.f32 %v322_v2, %v128_v9  ;;  %v132_v21 = vsub.f32 %v61_v5, %v317_v1  ;;  %261 = vst.msk [vmem:[%s900_s3 + $0x140] sm:$0xff] %vm220_vm0, %v196_v11  ;;  %v200_v25 = vmul.f32 %v322_v2, %v129_v12  ;;  %v201_v26 = vmul.f32 %v322_v2, %v130_v13 }
  0x1f   :  { %v202_v27 = vmul.f32 %v322_v2, %v131_v14  ;;  %v133_v28 = vsub.f32 %v62_v10, %v317_v1  ;;  %262 = vst.msk [vmem:[%s900_s3 + $0x148] sm:$0xff] %vm220_vm0, %v197_v18  ;;  %263 = vst.msk [vmem:[%s900_s3 + $0x150] sm:$0xff] %vm220_vm0, %v198_v19  ;;  %v134_v31 = vsub.f32 %v63_v15, %v317_v1 }
  0x20   :  { %264 = vst.msk [vmem:[%s900_s3 + $0x158] sm:$0xff] %vm220_vm0, %v199_v20  ;;  %v203_v30 = vmul.f32 %v322_v2, %v132_v21  ;;  %v135_v32 = vsub.f32 %v64_v16, %v317_v1  ;;  %v136_v33 = vsub.f32 %v65_v17, %v317_v1  ;;  %265 = vst.msk [vmem:[%s900_s3 + $0x160] sm:$0xff] %vm220_vm0, %v200_v25 }
  0x21   :  { %266 = vst.msk [vmem:[%s900_s3 + $0x168] sm:$0xff] %vm220_vm0, %v201_v26  ;;  %267 = vst.msk [vmem:[%s900_s3 + $0x170] sm:$0xff] %vm220_vm0, %v202_v27  ;;  %v204_v35 = vmul.f32 %v322_v2, %v133_v28  ;;  %v137_v36 = vsub.f32 %v66_v22, %v317_v1  ;;  %v138_v37 = vsub.f32 %v67_v23, %v317_v1 }
  0x22   :  { %v139_v38 = vsub.f32 %v68_v24, %v317_v1  ;;  %268 = vst.msk [vmem:[%s900_s3 + $0x178] sm:$0xff] %vm220_vm0, %v203_v30  ;;  %v205_v42 = vmul.f32 %v322_v2, %v134_v31  ;;  %v206_v43 = vmul.f32 %v322_v2, %v135_v32  ;;  %v207_v44 = vmul.f32 %v322_v2, %v136_v33 }
  0x23   :  { %v140_v45 = vsub.f32 %v69_v29, %v317_v1  ;;  %269 = vst.msk [vmem:[%s900_s3 + $0x180] sm:$0xff] %vm220_vm0, %v204_v35  ;;  %v208_v49 = vmul.f32 %v322_v2, %v137_v36  ;;  %v209_v50 = vmul.f32 %v322_v2, %v138_v37  ;;  %v141_v52 = vsub.f32 %v70_v34, %v317_v1 }
  0x24   :  { %v210_v51 = vmul.f32 %v322_v2, %v139_v38  ;;  %270 = vst.msk [vmem:[%s900_s3 + $0x188] sm:$0xff] %vm220_vm0, %v205_v42  ;;  %271 = vst.msk [vmem:[%s900_s3 + $0x190] sm:$0xff] %vm220_vm0, %v206_v43  ;;  %v142_v55 = vsub.f32 %v71_v39, %v317_v1  ;;  %v143_v56 = vsub.f32 %v72_v40, %v317_v1 }
  0x25   :  { %272 = vst.msk [vmem:[%s900_s3 + $0x198] sm:$0xff] %vm220_vm0, %v207_v44  ;;  %v211_v54 = vmul.f32 %v322_v2, %v140_v45  ;;  %v144_v57 = vsub.f32 %v73_v41, %v317_v1  ;;  %273 = vst.msk [vmem:[%s900_s3 + $0x1a0] sm:$0xff] %vm220_vm0, %v208_v49  ;;  %v212_v58 = vmul.f32 %v322_v2, %v141_v52 }
  0x26   :  { %274 = vst.msk [vmem:[%s900_s3 + $0x1a8] sm:$0xff] %vm220_vm0, %v209_v50  ;;  %275 = vst.msk [vmem:[%s900_s3 + $0x1b0] sm:$0xff] %vm220_vm0, %v210_v51  ;;  %v145_v59 = vsub.f32 %v74_v46, %v317_v1  ;;  %v146_v60 = vsub.f32 %v75_v47, %v317_v1  ;;  %v147_v61 = vsub.f32 %v76_v48, %v317_v1 }
  0x27   :  { %276 = vst.msk [vmem:[%s900_s3 + $0x1b8] sm:$0xff] %vm220_vm0, %v211_v54  ;;  %v213_v62 = vmul.f32 %v322_v2, %v142_v55  ;;  %v214_v63 = vmul.f32 %v322_v2, %v143_v56  ;;  %v215_v0 = vmul.f32 %v322_v2, %v144_v57  ;;  %v148_v3 = vsub.f32 %v77_v53, %v317_v1 }
  0x28   :  { %277 = vst.msk [vmem:[%s900_s3 + $0x1c0] sm:$0xff] %vm220_vm0, %v212_v58  ;;  %v216_v4 = vmul.f32 %v322_v2, %v145_v59  ;;  %v217_v5 = vmul.f32 %v322_v2, %v146_v60  ;;  %v218_v6 = vmul.f32 %v322_v2, %v147_v61 }
  0x29   :  { %278 = vst.msk [vmem:[%s900_s3 + $0x1c8] sm:$0xff] %vm220_vm0, %v213_v62  ;;  %279 = vst.msk [vmem:[%s900_s3 + $0x1d0] sm:$0xff] %vm220_vm0, %v214_v63  ;;  %v219_v1 = vmul.f32 %v322_v2, %v148_v3 }
  0x2a   :  { %280 = vst.msk [vmem:[%s900_s3 + $0x1d8] sm:$0xff] %vm220_vm0, %v215_v0  ;;  %281 = vst.msk [vmem:[%s900_s3 + $0x1e0] sm:$0xff] %vm220_vm0, %v216_v4 }
  0x2b   :  { %282 = vst.msk [vmem:[%s900_s3 + $0x1e8] sm:$0xff] %vm220_vm0, %v217_v5  ;;  %283 = vst.msk [vmem:[%s900_s3 + $0x1f0] sm:$0xff] %vm220_vm0, %v218_v6 }
  0x2c   :  { %284 = vst.msk [vmem:[%s900_s3 + $0x1f8] sm:$0xff] %vm220_vm0, %v219_v1 }

// kernel: gcn_layer.3
= control target key start
LH: loop header
LB: loop body
LE: loop exit
PB: predicated region body
PF: predicated region fallthrough
CT: control target
= control target key end

     0   :  { %8 = vsyncpa [#allocation3], 0  ;;  %s2487_s0 = inlined_call_operand.hbm [shape: f32[512,512], index: 0, kind: input, shape index: {}]   ;;  %s2488_s1 = inlined_call_operand.vmem [shape: bf16[512,512], index: 1, kind: output, shape index: {0}]   ;;  %s2489_s2 = inlined_call_operand.vmem [shape: f32[512,1], index: 2, kind: output, shape index: {1}]  }
   0x1   :  { %10 = vsyncpa [#allocation3 + $0x1], 0  ;;  %s1715_s9 = smov 0   ;;  %s1717_s10 = smov 0  }
   0x2   :  { %s1719_s11 = smov 0   ;;  %s1721_s12 = smov 0  }
   0x3   :  { %s1723_s13 = smov 0   ;;  %s1725_s14 = smov 0  }
   0x4 LB: > { %s1344_s15 = sadd.s32 4294967295, %s1694_s14   ;;  %s28_s16 = sadd.s32 1, %s1690_s13  ;;  %s1694_s14 = sphi %s1725_s14, %s16_s14   ;;  %s1690_s13 = sphi %s1723_s13, %s2497_s13   ;;  %s1686_s12 = sphi %s1721_s12, %s2496_s12   ;;  %s1682_s11 = sphi %s1719_s11, %s2495_s11   ;;  %s1678_s10 = sphi %s1717_s10, %s2494_s10   ;;  %s1674_s9 = sphi %s1715_s9, %s2493_s9  }
   0x5   : > { %p30_p0 = scmp.ge.s32.totalorder %s28_s16, 2  ;;  %s37_s17 = sadd.s32 1, %s1682_s11 }
   0x6   : > { %p44_p1 = scmp.ne.s32.totalorder %s1682_s11, %s1678_s10  ;;  %p45_p2 = scmp.eq.s32.totalorder %s1694_s14, 0 }
   0x7   : > { %s2499_s16 = smov (%p30_p0, %s28_s16), 0  ;;  %p50_p4 = scmp.ne.s32.totalorder %s1678_s10, %s1674_s9 }
   0x8   : > { %p1751_p3 = por %p45_p2, %p44_p1  ;;  %s32_s19 = ssub.s32 %s1690_s13, %s2499_s16 }
   0x9   : > { %p51_p5 = scmp.eq.s32.totalorder %s1344_s15, 0  ;;  %p35_p6 = scmp.eq.s32.totalorder %s32_s19, 0 }
   0xa   : > { %p1498_p8 = scmp.lt.s32.totalorder %s1694_s14, 2  ;;  %s128_s22 = sand.u32 1, %s1682_s11  }
   0xb   : > { %p1758_p7 = por %p51_p5, %p50_p4  ;;  %s1426_s23 = sshll.u32 %s1690_s13, 14 }
   0xc   : > { %s1764_s21 = scalar_select %p35_p6, %s1682_s11, %s37_s17  }
   0xd   : > { %s1348_s24 = sshll.u32 %s128_s22, 10  ;;  %s1771_s27 = scalar_lea.hbm %s2487_s0, %s1426_s23 }
   0xe   : > { %s132_s28 = scalar_lea.vmem [#allocation2], %s1348_s24  ;;  %p1775_p9 = pnand %p1498_p8, %p1751_p3 }
   0xf   : > { %s142_s29 = sshll.u32 %s132_s28, 4  ;;  %s1781_s3 = scalar_lea.sflag [#allocation3], %s128_s22  ;;  %s1779_s29 = int_to_ptr.vmem [resolvable:$true] %s142_s29 }
  0x10   : > { %s1614_s4 = scalar_lea.hbm %s1771_s27, 16384  ;;  %p1616_p11 = pneg %p1775_p9 }
  0x11   : > { %p1615_p10 = scmp.ne.s32.totalorder %s1771_s27, %s1614_s4  ;;  %s1619_s7 = scalar_lea.hbm %s2487_s0, 32768 }
  0x12   : > { %p1620_p0 = scmp.lt.u32.totalorder %s1771_s27, %s2487_s0  ;;  %p1621_p1 = scmp.lt.u32.totalorder %s1619_s7, %s1614_s4 }
  0x13   : > { %p1617_p12 = pnand %p1616_p11, %p1615_p10  ;;  %p1623_p3 = scmp.lt.u32.totalorder %s1614_s4, %s1771_s27 }
  0x14   : > { %p1622_p2 = por %p1621_p1, %p1620_p0 }
  0x15   : > { %p1618_p13 = pneg %p1617_p12 }
  0x16   : > { %p1624_p4 = por %p1623_p3, %p1622_p2 }
  0x18   : > { %p1625_p5 = pnand %p1624_p4, %p1618_p13 }
  0x1a   : > { %1628 = shalt.err (!%p1625_p5)
}
  0x1b   : > { %s1629_s15 = scalar_lea.vmem %s1779_s29, 16384  ;;  %s1696_s17 = smov [#allocation2]  }
  0x1c   : > { %p1630_p6 = scmp.ne.s32.totalorder %s1779_s29, %s1629_s15  ;;  %s1634_s18 = sshll.u32 %s1696_s17, 4  ;;  %s1635_s18 = int_to_ptr.vmem [resolvable:$false] %s1634_s18 }
  0x1d   : > { %s1636_s19 = scalar_lea.vmem %s1635_s18, 32768  ;;  %p1637_p12 = scmp.lt.s32.totalorder %s1779_s29, %s1635_s18 }
  0x1e   : > { %p1632_p8 = pnand %p1630_p6, %p1616_p11  ;;  %p1638_p0 = scmp.lt.s32.totalorder %s1636_s19, %s1629_s15 }
  0x20   : > { %p1633_p10 = pneg %p1632_p8  ;;  %p1639_p1 = por %p1638_p0, %p1637_p12 }
  0x22   : > { %p1640_p2 = pnand %p1639_p1, %p1633_p10 }
  0x24   : > { %1643 = shalt.err (!%p1640_p2)
}
  0x25   : > { %s1697_s22 = smov 512   ;;  %s1698_s23 = smov 32  }
  0x26   : > { %1497 = dma.hbm_to_vmem [thread:$0]  (!%p1775_p9), %s1771_s27, 16384, %s1779_s29, %s1781_s3, %s1697_s22, %s1697_s22, %s1698_s23  }
  0x27   : > { %p1352_p11 = scmp.ge.s32.totalorder %s1694_s14, 1  ;;  %p150_p13 = scmp.lt.s32.totalorder %s1694_s14, 3 }
  0x29   : > { %p151_p3 = pnand %p1352_p11, %p150_p13 }
  0x2a   : > { %s156_s24 = sand.u32 (!%p151_p3), 1, %s1678_s10  }
  0x2b   : > { %154 = sbr.rel (%p151_p3) target bundleno = 293 (0x125), region = 24  ;;  %s1353_s25 = sshll.u32 (!%p151_p3), %s156_s24, 10 }
  0x2c   : > { %s157_s26 = scalar_lea.sflag (!%p151_p3), [#allocation3], %s156_s24  ;;  %s1812_s28 = scalar_lea.vmem (!%p151_p3), [#allocation2], %s1353_s25 }
  0x32   : > { %1669 = dma.done.wait (%p1758_p7), %s157_s26, 16384  }
  0x33   : > { %1671 = vsyncadd (%p1758_p7), %s157_s26, 4294950912  ;;  %s1354_s27 = sshll.u32 %s1686_s12, 5  ;;  %vm791_vm0 = vcmask 7168   ;;  %v219_v0 = vld [vmem:[%s1812_s28 + $0x40] sm:$0xff]  ;;  %v220_v1 = vld [vmem:[%s1812_s28 + $0x48] sm:$0xff]  ;;  %v1699_v3 = vmov 0.0  }
  0x34   : > { %p195_p9 = scmp.lt.s32.totalorder %s1354_s27, 63  ;;  %v221_v2 = vld [vmem:[%s1812_s28 + $0x50] sm:$0xff]  ;;  %v222_v4 = vld [vmem:[%s1812_s28 + $0x58] sm:$0xff]  ;;  %v866_v5 = vadd.f32 %v220_v1, %v219_v0  ;;  %v1432_v6 = vpack.c.bf16 %v220_v1, %v219_v0  ;;  %v211_v7 = vld [vmem:[%s1812_s28] sm:$0xff] }
  0x35   : > { %v212_v8 = vld [vmem:[%s1812_s28 + $0x8] sm:$0xff]  ;;  %v1433_v9 = vpack.c.bf16 %v222_v4, %v221_v2  ;;  %v213_v10 = vld [vmem:[%s1812_s28 + $0x10] sm:$0xff]  ;;  %v214_v11 = vld [vmem:[%s1812_s28 + $0x18] sm:$0xff] }
  0x36   : > { %s2501_s27 = smov (!%p195_p9, %s1354_s27), 63  ;;  %v856_v12 = vadd.f32 %v212_v8, %v211_v7  ;;  %v1428_v13 = vpack.c.bf16 %v212_v8, %v211_v7  ;;  %v223_v14 = vld [vmem:[%s1812_s28 + $0x60] sm:$0xff]  ;;  %v867_v15 = vadd.f32 %v866_v5, %v221_v2  ;;  %v1429_v16 = vpack.c.bf16 %v214_v11, %v213_v10  ;;  %v224_v17 = vld [vmem:[%s1812_s28 + $0x68] sm:$0xff]  ;;  %v225_v18 = vld [vmem:[%s1812_s28 + $0x70] sm:$0xff] }
  0x37   : > { %s1427_s29 = sshll.u32 %s2501_s27, 4  ;;  %s1358_s30 = sshll.u32 %s2501_s27, 3  ;;  %v226_v19 = vld [vmem:[%s1812_s28 + $0x78] sm:$0xff]  ;;  %v1434_v21 = vpack.c.bf16 %v224_v17, %v223_v14  ;;  %v871_v23 = vadd.f32 %v224_v17, %v223_v14  ;;  %v215_v24 = vld [vmem:[%s1812_s28 + $0x20] sm:$0xff]  ;;  %v216_v25 = vld [vmem:[%s1812_s28 + $0x28] sm:$0xff] }
  0x38   : > { %s1822_s5 = scalar_lea.vmem %s2489_s2, %s1358_s30  ;;  %s1827_s12 = scalar_lea.vmem %s2488_s1, %s1427_s29  ;;  %v857_v20 = vadd.f32 %v856_v12, %v213_v10  ;;  %v1435_v22 = vpack.c.bf16 %v226_v19, %v225_v18  ;;  %v217_v26 = vld [vmem:[%s1812_s28 + $0x30] sm:$0xff]  ;;  %v868_v27 = vadd.f32 %v867_v15, %v222_v4  ;;  %v218_v28 = vld [vmem:[%s1812_s28 + $0x38] sm:$0xff]  ;;  %v1430_v29 = vpack.c.bf16 %v216_v25, %v215_v24  ;;  %v231_v31 = vld [vmem:[%s1812_s28 + $0xa0] sm:$0xff] }
  0x39   : > { %794 = vst.msk [vmem:[%s1822_s5 + $0x10] sm:$0xff] %vm791_vm0, %v1699_v3  ;;  %792 = vst.msk [vmem:[%s1822_s5] sm:$0xff] %vm791_vm0, %v1699_v3  ;;  %v861_v30 = vadd.f32 %v216_v25, %v215_v24  ;;  %v232_v32 = vld [vmem:[%s1812_s28 + $0xa8] sm:$0xff]  ;;  %v872_v34 = vadd.f32 %v871_v23, %v225_v18  ;;  %v1431_v35 = vpack.c.bf16 %v218_v28, %v217_v26  ;;  %v233_v36 = vld [vmem:[%s1812_s28 + $0xb0] sm:$0xff] }
  0x3a   : > { %793 = vst.msk [vmem:[%s1822_s5 + $0x8] sm:$0xff] %vm791_vm0, %v1699_v3  ;;  %795 = vst.msk [vmem:[%s1822_s5 + $0x18] sm:$0xff] %vm791_vm0, %v1699_v3  ;;  %v858_v33 = vadd.f32 %v857_v20, %v214_v11  ;;  %v234_v37 = vld [vmem:[%s1812_s28 + $0xb8] sm:$0xff]  ;;  %v1438_v38 = vpack.c.bf16 %v232_v32, %v231_v31  ;;  %v227_v39 = vld [vmem:[%s1812_s28 + $0x80] sm:$0xff]  ;;  %869 = vadd.xlane.f32.xlu1 %v868_v27  ;;  %v881_v42 = vadd.f32 %v232_v32, %v231_v31 }
  0x3b   : > { %796 = vst.msk [vmem:[%s1822_s5 + $0x20] sm:$0xff] %vm791_vm0, %v1699_v3  ;;  %797 = vst.msk [vmem:[%s1822_s5 + $0x28] sm:$0xff] %vm791_vm0, %v1699_v3  ;;  %v862_v40 = vadd.f32 %v861_v30, %v217_v26  ;;  %v1439_v41 = vpack.c.bf16 %v234_v37, %v233_v36  ;;  %v228_v43 = vld [vmem:[%s1812_s28 + $0x88] sm:$0xff]  ;;  %v229_v44 = vld [vmem:[%s1812_s28 + $0x90] sm:$0xff]  ;;  %v873_v46 = vadd.f32 %v872_v34, %v226_v19 }
  0x3c   : > { %798 = vst.msk [vmem:[%s1822_s5 + $0x30] sm:$0xff] %vm791_vm0, %v1699_v3  ;;  %799 = vst.msk [vmem:[%s1822_s5 + $0x38] sm:$0xff] %vm791_vm0, %v1699_v3  ;;  %v230_v45 = vld [vmem:[%s1812_s28 + $0x98] sm:$0xff]  ;;  %859 = vadd.xlane.f32.xlu0 %v858_v33  ;;  %v1436_v47 = vpack.c.bf16 %v228_v43, %v227_v39  ;;  %v876_v49 = vadd.f32 %v228_v43, %v227_v39  ;;  %v239_v50 = vld [vmem:[%s1812_s28 + $0xe0] sm:$0xff]  ;;  %v882_v54 = vadd.f32 %v881_v42, %v233_v36 }
  0x3d   : > { %800 = vst.msk [vmem:[%s1822_s5 + $0x40] sm:$0xff] %vm791_vm0, %v1699_v3  ;;  %801 = vst.msk [vmem:[%s1822_s5 + $0x48] sm:$0xff] %vm791_vm0, %v1699_v3  ;;  %v1437_v48 = vpack.c.bf16 %v230_v45, %v229_v44  ;;  %v240_v51 = vld [vmem:[%s1812_s28 + $0xe8] sm:$0xff]  ;;  %v241_v52 = vld [vmem:[%s1812_s28 + $0xf0] sm:$0xff]  ;;  %v863_v53 = vadd.f32 %v862_v40, %v218_v28 }
  0x3e   : > { %802 = vst.msk [vmem:[%s1822_s5 + $0x50] sm:$0xff] %vm791_vm0, %v1699_v3  ;;  %803 = vst.msk [vmem:[%s1822_s5 + $0x58] sm:$0xff] %vm791_vm0, %v1699_v3  ;;  %v242_v55 = vld [vmem:[%s1812_s28 + $0xf8] sm:$0xff]  ;;  %v1442_v56 = vpack.c.bf16 %v240_v51, %v239_v50  ;;  %v891_v57 = vadd.f32 %v240_v51, %v239_v50  ;;  %v235_v58 = vld [vmem:[%s1812_s28 + $0xc0] sm:$0xff]  ;;  %v877_v60 = vadd.f32 %v876_v49, %v229_v44  ;;  %874 = vadd.xlane.f32.xlu1 %v873_v46 }
  0x3f   : > { %804 = vst.msk [vmem:[%s1822_s5 + $0x60] sm:$0xff] %vm791_vm0, %v1699_v3  ;;  %805 = vst.msk [vmem:[%s1822_s5 + $0x68] sm:$0xff] %vm791_vm0, %v1699_v3  ;;  %v236_v59 = vld [vmem:[%s1812_s28 + $0xc8] sm:$0xff]  ;;  %v1443_v61 = vpack.c.bf16 %v242_v55, %v241_v52  ;;  %v237_v62 = vld [vmem:[%s1812_s28 + $0xd0] sm:$0xff] }
  0x40   : > { %806 = vst.msk [vmem:[%s1822_s5 + $0x70] sm:$0xff] %vm791_vm0, %v1699_v3  ;;  %807 = vst.msk [vmem:[%s1822_s5 + $0x78] sm:$0xff] %vm791_vm0, %v1699_v3  ;;  %v238_v63 = vld [vmem:[%s1812_s28 + $0xd8] sm:$0xff]  ;;  %v1440_v0 = vpack.c.bf16 %v236_v59, %v235_v58  ;;  %v886_v1 = vadd.f32 %v236_v59, %v235_v58  ;;  %v247_v2 = vld [vmem:[%s1812_s28 + $0x120] sm:$0xff]  ;;  %v892_v4 = vadd.f32 %v891_v57, %v241_v52  ;;  %864 = vadd.xlane.f32.xlu0 %v863_v53 }
  0x41   : > { %808 = vst.msk [vmem:[%s1822_s5 + $0x80] sm:$0xff] %vm791_vm0, %v1699_v3  ;;  %809 = vst.msk [vmem:[%s1822_s5 + $0x88] sm:$0xff] %vm791_vm0, %v1699_v3  ;;  %v1441_v5 = vpack.c.bf16 %v238_v63, %v237_v62  ;;  %v249_v7 = vld [vmem:[%s1812_s28 + $0x130] sm:$0xff]  ;;  %v250_v8 = vld [vmem:[%s1812_s28 + $0x138] sm:$0xff] }
  0x42   : > { %810 = vst.msk [vmem:[%s1822_s5 + $0x90] sm:$0xff] %vm791_vm0, %v1699_v3  ;;  %811 = vst.msk [vmem:[%s1822_s5 + $0x98] sm:$0xff] %vm791_vm0, %v1699_v3  ;;  %v887_v10 = vadd.f32 %v886_v1, %v237_v62  ;;  %v1447_v12 = vpack.c.bf16 %v250_v8, %v249_v7  ;;  %v244_v14 = vld [vmem:[%s1812_s28 + $0x108] sm:$0xff]  ;;  %v245_v15 = vld [vmem:[%s1812_s28 + $0x110] sm:$0xff] }
  0x43   : > { %812 = vst.msk [vmem:[%s1822_s5 + $0xa0] sm:$0xff] %vm791_vm0, %v1699_v3  ;;  %813 = vst.msk [vmem:[%s1822_s5 + $0xa8] sm:$0xff] %vm791_vm0, %v1699_v3  ;;  %v246_v17 = vld [vmem:[%s1812_s28 + $0x118] sm:$0xff]  ;;  %v255_v20 = vld [vmem:[%s1812_s28 + $0x160] sm:$0xff] }
  0x44   : > { %814 = vst.msk [vmem:[%s1822_s5 + $0xb0] sm:$0xff] %vm791_vm0, %v1699_v3  ;;  %815 = vst.msk [vmem:[%s1822_s5 + $0xb8] sm:$0xff] %vm791_vm0, %v1699_v3  ;;  %v1445_v23 = vpack.c.bf16 %v246_v17, %v245_v15  ;;  %v257_v24 = vld [vmem:[%s1812_s28 + $0x170] sm:$0xff]  ;;  %v1955_v25 = vld [vmem:[%s1812_s28 + $0x178] sm:$0xff]  ;;  %v888_v28 = vadd.f32 %v887_v10, %v238_v63 }
  0x45   : > { %816 = vst.msk [vmem:[%s1822_s5 + $0xc0] sm:$0xff] %vm791_vm0, %v1699_v3  ;;  %817 = vst.msk [vmem:[%s1822_s5 + $0xc8] sm:$0xff] %vm791_vm0, %v1699_v3  ;;  %v251_v27 = vld [vmem:[%s1812_s28 + $0x140] sm:$0xff]  ;;  %v1451_v30 = vpack.c.bf16 %v1955_v25, %v257_v24  ;;  %v252_v32 = vld [vmem:[%s1812_s28 + $0x148] sm:$0xff] }
  0x46   : > { %818 = vst.msk [vmem:[%s1822_s5 + $0xd0] sm:$0xff] %vm791_vm0, %v1699_v3  ;;  %819 = vst.msk [vmem:[%s1822_s5 + $0xd8] sm:$0xff] %vm791_vm0, %v1699_v3  ;;  %v253_v33 = vld [vmem:[%s1812_s28 + $0x150] sm:$0xff]  ;;  %v1963_v34 = vld [vmem:[%s1812_s28 + $0x158] sm:$0xff]  ;;  %v1448_v36 = vpack.c.bf16 %v252_v32, %v251_v27 }
  0x47   : > { %820 = vst.msk [vmem:[%s1822_s5 + $0xe0] sm:$0xff] %vm791_vm0, %v1699_v3  ;;  %821 = vst.msk [vmem:[%s1822_s5 + $0xe8] sm:$0xff] %vm791_vm0, %v1699_v3  ;;  %v263_v39 = vld [vmem:[%s1812_s28 + $0x1a0] sm:$0xff]  ;;  %v264_v40 = vld [vmem:[%s1812_s28 + $0x1a8] sm:$0xff] }
  0x48   : > { %822 = vst.msk [vmem:[%s1822_s5 + $0xf0] sm:$0xff] %vm791_vm0, %v1699_v3  ;;  %823 = vst.msk [vmem:[%s1822_s5 + $0xf8] sm:$0xff] %vm791_vm0, %v1699_v3  ;;  %v883_v3 = vadd.f32 %v882_v54, %v234_v37  ;;  %v1449_v37 = vpack.c.bf16 %v1963_v34, %v253_v33  ;;  %v1973_v42 = vld [vmem:[%s1812_s28 + $0x1b8] sm:$0xff]  ;;  %v1454_v43 = vpack.c.bf16 %v264_v40, %v263_v39  ;;  %v259_v44 = vld [vmem:[%s1812_s28 + $0x180] sm:$0xff] }
  0x49   : > { %727 = vst [vmem:[%s1827_s12 + $0x20] sm:$0xff] %v1432_v6  ;;  %728 = vst [vmem:[%s1827_s12 + $0x28] sm:$0xff] %v1433_v9  ;;  %v248_v6 = vld [vmem:[%s1812_s28 + $0x128] sm:$0xff]  ;;  %v878_v9 = vadd.f32 %v877_v60, %v230_v45  ;;  %v1982_v49 = vld [vmem:[%s1812_s28 + $0x198] sm:$0xff] }
  0x4a   : > { %723 = vst [vmem:[%s1827_s12] sm:$0xff] %v1428_v13  ;;  %724 = vst [vmem:[%s1827_s12 + $0x8] sm:$0xff] %v1429_v16  ;;  %v1446_v11 = vpack.c.bf16 %v248_v6, %v247_v2  ;;  %v243_v13 = vld [vmem:[%s1812_s28 + $0x100] sm:$0xff]  ;;  %v901_v16 = vadd.f32 %v248_v6, %v247_v2  ;;  %884 = vadd.xlane.f32.xlu1 %v883_v3  ;;  %v260_v45 = vld [vmem:[%s1812_s28 + $0x188] sm:$0xff] }
  0x4b   : > { %729 = vst [vmem:[%s1827_s12 + $0x30] sm:$0xff] %v1434_v21  ;;  %730 = vst [vmem:[%s1827_s12 + $0x38] sm:$0xff] %v1435_v22  ;;  %v1444_v18 = vpack.c.bf16 %v244_v14, %v243_v13  ;;  %v896_v19 = vadd.f32 %v244_v14, %v243_v13  ;;  %v256_v21 = vld [vmem:[%s1812_s28 + $0x168] sm:$0xff]  ;;  %v893_v22 = vadd.f32 %v892_v4, %v242_v55  ;;  %879 = vadd.xlane.f32.xlu0 %v878_v9  ;;  %v271_v51 = vld [vmem:[%s1812_s28 + $0x1e0] sm:$0xff] }
  0x4c   : > { %725 = vst [vmem:[%s1827_s12 + $0x10] sm:$0xff] %v1430_v29  ;;  %726 = vst [vmem:[%s1827_s12 + $0x18] sm:$0xff] %v1431_v35  ;;  %v1450_v26 = vpack.c.bf16 %v256_v21, %v255_v20  ;;  %v902_v29 = vadd.f32 %v901_v16, %v249_v7  ;;  %v911_v31 = vadd.f32 %v256_v21, %v255_v20  ;;  %v273_v57 = vld [vmem:[%s1812_s28 + $0x1f0] sm:$0xff]  ;;  %v1990_v58 = vld [vmem:[%s1812_s28 + $0x1f8] sm:$0xff] }
  0x4d   : > { %733 = vst [vmem:[%s1827_s12 + $0x50] sm:$0xff] %v1438_v38  ;;  %734 = vst [vmem:[%s1827_s12 + $0x58] sm:$0xff] %v1439_v41  ;;  %v897_v35 = vadd.f32 %v896_v19, %v245_v15  ;;  %v906_v38 = vadd.f32 %v252_v32, %v251_v27  ;;  %v265_v41 = vld [vmem:[%s1812_s28 + $0x1b0] sm:$0xff]  ;;  %v1452_v50 = vpack.c.bf16 %v260_v45, %v259_v44  ;;  %v267_v63 = vld [vmem:[%s1812_s28 + $0x1c0] sm:$0xff] }
  0x4e   : > { %731 = vst [vmem:[%s1827_s12 + $0x40] sm:$0xff] %v1436_v47  ;;  %732 = vst [vmem:[%s1827_s12 + $0x48] sm:$0xff] %v1437_v48  ;;  %v1455_v46 = vpack.c.bf16 %v1973_v42, %v265_v41  ;;  %v921_v47 = vadd.f32 %v264_v40, %v263_v39  ;;  %v261_v48 = vld [vmem:[%s1812_s28 + $0x190] sm:$0xff]  ;;  %894 = vadd.xlane.f32.xlu1 %v893_v22  ;;  %v903_v52 = vadd.f32 %v902_v29, %v250_v8  ;;  %v2000_v2 = vld [vmem:[%s1812_s28 + $0x1d8] sm:$0xff] }
  0x4f   : > { %737 = vst [vmem:[%s1827_s12 + $0x70] sm:$0xff] %v1442_v56  ;;  %738 = vst [vmem:[%s1827_s12 + $0x78] sm:$0xff] %v1443_v61  ;;  %v912_v53 = vadd.f32 %v911_v31, %v257_v24  ;;  %v1453_v54 = vpack.c.bf16 %v1982_v49, %v261_v48  ;;  %v916_v55 = vadd.f32 %v260_v45, %v259_v44  ;;  %v272_v56 = vld [vmem:[%s1812_s28 + $0x1e8] sm:$0xff]  ;;  %889 = vadd.xlane.f32.xlu0 %v888_v28  ;;  %v269_v1 = vld [vmem:[%s1812_s28 + $0x1d0] sm:$0xff] }
  0x50   : > { %735 = vst [vmem:[%s1827_s12 + $0x60] sm:$0xff] %v1440_v0  ;;  %736 = vst [vmem:[%s1827_s12 + $0x68] sm:$0xff] %v1441_v5  ;;  %v898_v59 = vadd.f32 %v897_v35, %v246_v17  ;;  %v907_v60 = vadd.f32 %v906_v38, %v253_v33  ;;  %v1458_v61 = vpack.c.bf16 %v272_v56, %v271_v51  ;;  %v268_v0 = vld [vmem:[%s1812_s28 + $0x1c8] sm:$0xff]  ;;  %v279_v4 = vld [vmem:[%s1812_s28 + $0x220] sm:$0xff] }
  0x51   : > { %741 = vst [vmem:[%s1827_s12 + $0x90] sm:$0xff] %v1446_v11  ;;  %742 = vst [vmem:[%s1827_s12 + $0x98] sm:$0xff] %v1447_v12  ;;  %v1459_v62 = vpack.c.bf16 %v1990_v58, %v273_v57  ;;  %v1456_v3 = vpack.c.bf16 %v268_v0, %v267_v63  ;;  %v280_v5 = vld [vmem:[%s1812_s28 + $0x228] sm:$0xff]  ;;  %v922_v6 = vadd.f32 %v921_v47, %v265_v41  ;;  %v2008_v8 = vld [vmem:[%s1812_s28 + $0x230] sm:$0xff] }
  0x52   : > { %739 = vst [vmem:[%s1827_s12 + $0x80] sm:$0xff] %v1444_v18  ;;  %740 = vst [vmem:[%s1827_s12 + $0x88] sm:$0xff] %v1445_v23  ;;  %v1457_v7 = vpack.c.bf16 %v2000_v2, %v269_v1  ;;  %v2011_v9 = vld [vmem:[%s1812_s28 + $0x238] sm:$0xff]  ;;  %v1462_v10 = vpack.c.bf16 %v280_v5, %v279_v4  ;;  %v275_v11 = vld [vmem:[%s1812_s28 + $0x200] sm:$0xff]  ;;  %904 = vadd.xlane.f32.xlu1 %v903_v52  ;;  %v913_v12 = vadd.f32 %v912_v53, %v1955_v25 }
  0x53   : > { %745 = vst [vmem:[%s1827_s12 + $0xb0] sm:$0xff] %v1450_v26  ;;  %746 = vst [vmem:[%s1827_s12 + $0xb8] sm:$0xff] %v1451_v30  ;;  %v917_v13 = vadd.f32 %v916_v55, %v261_v48  ;;  %v931_v14 = vadd.f32 %v272_v56, %v271_v51  ;;  %v1463_v15 = vpack.c.bf16 %v2011_v9, %v2008_v8  ;;  %v276_v16 = vld [vmem:[%s1812_s28 + $0x208] sm:$0xff]  ;;  %v2020_v17 = vld [vmem:[%s1812_s28 + $0x210] sm:$0xff]  ;;  %899 = vadd.xlane.f32.xlu0 %v898_v59 }
  0x54   : > { %743 = vst [vmem:[%s1827_s12 + $0xa0] sm:$0xff] %v1448_v36  ;;  %744 = vst [vmem:[%s1827_s12 + $0xa8] sm:$0xff] %v1449_v37  ;;  %v2023_v18 = vld [vmem:[%s1812_s28 + $0x218] sm:$0xff]  ;;  %v908_v19 = vadd.f32 %v907_v60, %v1963_v34  ;;  %v926_v20 = vadd.f32 %v268_v0, %v267_v63  ;;  %v1460_v21 = vpack.c.bf16 %v276_v16, %v275_v11  ;;  %v287_v23 = vld [vmem:[%s1812_s28 + $0x260] sm:$0xff] }
  0x55   : > { %749 = vst [vmem:[%s1827_s12 + $0xd0] sm:$0xff] %v1454_v43  ;;  %750 = vst [vmem:[%s1827_s12 + $0xd8] sm:$0xff] %v1455_v46  ;;  %v1461_v22 = vpack.c.bf16 %v2023_v18, %v2020_v17  ;;  %v288_v24 = vld [vmem:[%s1812_s28 + $0x268] sm:$0xff]  ;;  %v2033_v25 = vld [vmem:[%s1812_s28 + $0x270] sm:$0xff]  ;;  %v923_v30 = vadd.f32 %v922_v6, %v1973_v42  ;;  %v918_v36 = vadd.f32 %v917_v13, %v1982_v49 }
  0x56   : > { %747 = vst [vmem:[%s1827_s12 + $0xc0] sm:$0xff] %v1452_v50  ;;  %748 = vst [vmem:[%s1827_s12 + $0xc8] sm:$0xff] %v1453_v54  ;;  %v2037_v26 = vld [vmem:[%s1812_s28 + $0x278] sm:$0xff]  ;;  %v1466_v27 = vpack.c.bf16 %v288_v24, %v287_v23  ;;  %v283_v28 = vld [vmem:[%s1812_s28 + $0x240] sm:$0xff]  ;;  %914 = vadd.xlane.f32.xlu1 %v913_v12  ;;  %v932_v37 = vadd.f32 %v931_v14, %v273_v57  ;;  %v941_v38 = vadd.f32 %v280_v5, %v279_v4 }
  0x57   : > { %753 = vst [vmem:[%s1827_s12 + $0xf0] sm:$0xff] %v1458_v61  ;;  %754 = vst [vmem:[%s1827_s12 + $0xf8] sm:$0xff] %v1459_v62  ;;  %v284_v29 = vld [vmem:[%s1812_s28 + $0x248] sm:$0xff]  ;;  %v1467_v31 = vpack.c.bf16 %v2037_v26, %v2033_v25  ;;  %v2047_v32 = vld [vmem:[%s1812_s28 + $0x250] sm:$0xff]  ;;  %909 = vadd.xlane.f32.xlu0 %v908_v19  ;;  %v927_v43 = vadd.f32 %v926_v20, %v269_v1  ;;  %v936_v44 = vadd.f32 %v276_v16, %v275_v11 }
  0x58   : > { %751 = vst [vmem:[%s1827_s12 + $0xe0] sm:$0xff] %v1456_v3  ;;  %752 = vst [vmem:[%s1827_s12 + $0xe8] sm:$0xff] %v1457_v7  ;;  %v2050_v33 = vld [vmem:[%s1812_s28 + $0x258] sm:$0xff]  ;;  %v1464_v34 = vpack.c.bf16 %v284_v29, %v283_v28  ;;  %v2053_v35 = vld [vmem:[%s1812_s28 + $0x2a0] sm:$0xff]  ;;  %v951_v54 = vadd.f32 %v288_v24, %v287_v23  ;;  %v933_v61 = vadd.f32 %v932_v37, %v1990_v58 }
  0x59   : > { %757 = vst [vmem:[%s1827_s12 + $0x110] sm:$0xff] %v1462_v10  ;;  %758 = vst [vmem:[%s1827_s12 + $0x118] sm:$0xff] %v1463_v15  ;;  %v1465_v39 = vpack.c.bf16 %v2050_v33, %v2047_v32  ;;  %v296_v40 = vld [vmem:[%s1812_s28 + $0x2a8] sm:$0xff]  ;;  %v2061_v41 = vld [vmem:[%s1812_s28 + $0x2b0] sm:$0xff]  ;;  %v942_v62 = vadd.f32 %v941_v38, %v2008_v8  ;;  %v946_v63 = vadd.f32 %v284_v29, %v283_v28 }
  0x5a   : > { %755 = vst [vmem:[%s1827_s12 + $0x100] sm:$0xff] %v1460_v21  ;;  %756 = vst [vmem:[%s1827_s12 + $0x108] sm:$0xff] %v1461_v22  ;;  %v2064_v42 = vld [vmem:[%s1812_s28 + $0x2b8] sm:$0xff]  ;;  %v1470_v45 = vpack.c.bf16 %v296_v40, %v2053_v35  ;;  %v291_v47 = vld [vmem:[%s1812_s28 + $0x280] sm:$0xff]  ;;  %924 = vadd.xlane.f32.xlu1 %v923_v30  ;;  %v928_v58 = vadd.f32 %v927_v43, %v2000_v2  ;;  %v937_v5 = vadd.f32 %v936_v44, %v2020_v17 }
  0x5b   : > { %761 = vst [vmem:[%s1827_s12 + $0x130] sm:$0xff] %v1466_v27  ;;  %762 = vst [vmem:[%s1827_s12 + $0x138] sm:$0xff] %v1467_v31  ;;  %v1471_v46 = vpack.c.bf16 %v2064_v42, %v2061_v41  ;;  %v292_v48 = vld [vmem:[%s1812_s28 + $0x288] sm:$0xff]  ;;  %v2074_v49 = vld [vmem:[%s1812_s28 + $0x290] sm:$0xff]  ;;  %919 = vadd.xlane.f32.xlu0 %v918_v36  ;;  %v952_v15 = vadd.f32 %v951_v54, %v2033_v25  ;;  %v943_v22 = vadd.f32 %v942_v62, %v2011_v9 }
  0x5c   : > { %759 = vst [vmem:[%s1827_s12 + $0x120] sm:$0xff] %v1464_v34  ;;  %760 = vst [vmem:[%s1827_s12 + $0x128] sm:$0xff] %v1465_v39  ;;  %v2078_v50 = vld [vmem:[%s1812_s28 + $0x298] sm:$0xff]  ;;  %v1468_v51 = vpack.c.bf16 %v292_v48, %v291_v47  ;;  %v2081_v52 = vld [vmem:[%s1812_s28 + $0x2e0] sm:$0xff]  ;;  %v947_v23 = vadd.f32 %v946_v63, %v2047_v32  ;;  %v961_v24 = vadd.f32 %v296_v40, %v2053_v35 }
  0x5d   : > { %v2084_v53 = vld [vmem:[%s1812_s28 + $0x2e8] sm:$0xff]  ;;  %765 = vst [vmem:[%s1827_s12 + $0x150] sm:$0xff] %v1470_v45  ;;  %766 = vst [vmem:[%s1827_s12 + $0x158] sm:$0xff] %v1471_v46  ;;  %v1469_v55 = vpack.c.bf16 %v2078_v50, %v2074_v49  ;;  %v2091_v56 = vld [vmem:[%s1812_s28 + $0x2f0] sm:$0xff]  ;;  %v938_v9 = vadd.f32 %v937_v5, %v2023_v18  ;;  %v956_v30 = vadd.f32 %v292_v48, %v291_v47 }
  0x5e   : > { %v2094_v57 = vld [vmem:[%s1812_s28 + $0x2f8] sm:$0xff]  ;;  %v1474_v59 = vpack.c.bf16 %v2084_v53, %v2081_v52  ;;  %v2099_v60 = vld [vmem:[%s1812_s28 + $0x2c0] sm:$0xff]  ;;  %763 = vst [vmem:[%s1827_s12 + $0x140] sm:$0xff] %v1468_v51  ;;  %v2107_v1 = vld [vmem:[%s1812_s28 + $0x2c8] sm:$0xff]  ;;  %934 = vadd.xlane.f32.xlu1 %v933_v61  ;;  %v953_v40 = vadd.f32 %v952_v15, %v2037_v26  ;;  %v948_v26 = vadd.f32 %v947_v23, %v2050_v33 }
  0x5f   : > { %v1475_v0 = vpack.c.bf16 %v2094_v57, %v2091_v56  ;;  %v2110_v3 = vld [vmem:[%s1812_s28 + $0x2d0] sm:$0xff]  ;;  %v2113_v4 = vld [vmem:[%s1812_s28 + $0x2d8] sm:$0xff]  ;;  %764 = vst [vmem:[%s1827_s12 + $0x148] sm:$0xff] %v1469_v55  ;;  %v1472_v6 = vpack.c.bf16 %v2107_v1, %v2099_v60  ;;  %v2124_v8 = vld [vmem:[%s1812_s28 + $0x320] sm:$0xff]  ;;  %929 = vadd.xlane.f32.xlu0 %v928_v58  ;;  %v962_v48 = vadd.f32 %v961_v24, %v2061_v41 }
  0x60   : > { %769 = vst [vmem:[%s1827_s12 + $0x170] sm:$0xff] %v1474_v59  ;;  %v1473_v7 = vpack.c.bf16 %v2113_v4, %v2110_v3  ;;  %v2127_v10 = vld [vmem:[%s1812_s28 + $0x328] sm:$0xff]  ;;  %v2130_v11 = vld [vmem:[%s1812_s28 + $0x330] sm:$0xff]  ;;  %v2134_v2 = vld [vmem:[%s1812_s28 + $0x338] sm:$0xff]  ;;  %v971_v51 = vadd.f32 %v2084_v53, %v2081_v52  ;;  %v957_v33 = vadd.f32 %v956_v30, %v2074_v49  ;;  %v966_v41 = vadd.f32 %v2107_v1, %v2099_v60 }
  0x61   : > { %770 = vst [vmem:[%s1827_s12 + $0x178] sm:$0xff] %v1475_v0  ;;  %v1478_v12 = vpack.c.bf16 %v2127_v10, %v2124_v8  ;;  %v2139_v13 = vld [vmem:[%s1812_s28 + $0x300] sm:$0xff]  ;;  %v2142_v14 = vld [vmem:[%s1812_s28 + $0x308] sm:$0xff]  ;;  %767 = vst [vmem:[%s1827_s12 + $0x160] sm:$0xff] %v1472_v6  ;;  %v1479_v16 = vpack.c.bf16 %v2134_v2, %v2130_v11  ;;  %v963_v15 = vadd.f32 %v962_v48, %v2064_v42 }
  0x62   : > { %768 = vst [vmem:[%s1827_s12 + $0x168] sm:$0xff] %v1473_v7  ;;  %v2150_v17 = vld [vmem:[%s1812_s28 + $0x310] sm:$0xff]  ;;  %v2153_v19 = vld [vmem:[%s1812_s28 + $0x318] sm:$0xff]  ;;  %v1476_v20 = vpack.c.bf16 %v2142_v14, %v2139_v13  ;;  %v2158_v21 = vld [vmem:[%s1812_s28 + $0x360] sm:$0xff]  ;;  %944 = vadd.xlane.f32.xlu1 %v943_v22  ;;  %v958_v23 = vadd.f32 %v957_v33, %v2078_v50  ;;  %v967_v24 = vadd.f32 %v966_v41, %v2110_v3 }
  0x63   : > { %773 = vst [vmem:[%s1827_s12 + $0x190] sm:$0xff] %v1478_v12  ;;  %v1477_v25 = vpack.c.bf16 %v2153_v19, %v2150_v17  ;;  %v2167_v27 = vld [vmem:[%s1812_s28 + $0x368] sm:$0xff]  ;;  %v2170_v28 = vld [vmem:[%s1812_s28 + $0x370] sm:$0xff]  ;;  %v2173_v29 = vld [vmem:[%s1812_s28 + $0x378] sm:$0xff]  ;;  %939 = vadd.xlane.f32.xlu0 %v938_v9 }
  0x64   : > { %774 = vst [vmem:[%s1827_s12 + $0x198] sm:$0xff] %v1479_v16  ;;  %771 = vst [vmem:[%s1827_s12 + $0x180] sm:$0xff] %v1476_v20  ;;  %v1482_v31 = vpack.c.bf16 %v2167_v27, %v2158_v21  ;;  %v1483_v32 = vpack.c.bf16 %v2173_v29, %v2170_v28  ;;  %v2183_v34 = vld [vmem:[%s1812_s28 + $0x340] sm:$0xff]  ;;  %v2186_v35 = vld [vmem:[%s1812_s28 + $0x348] sm:$0xff]  ;;  %v972_v16 = vadd.f32 %v971_v51, %v2091_v56 }
  0x65   : > { %v2189_v36 = vld [vmem:[%s1812_s28 + $0x350] sm:$0xff]  ;;  %772 = vst [vmem:[%s1827_s12 + $0x188] sm:$0xff] %v1477_v25  ;;  %v2193_v18 = vld [vmem:[%s1812_s28 + $0x358] sm:$0xff]  ;;  %v1480_v37 = vpack.c.bf16 %v2186_v35, %v2183_v34  ;;  %v2198_v38 = vld [vmem:[%s1812_s28 + $0x3a0] sm:$0xff]  ;;  %v981_v20 = vadd.f32 %v2127_v10, %v2124_v8  ;;  %v976_v25 = vadd.f32 %v2142_v14, %v2139_v13  ;;  %v991_v8 = vadd.f32 %v2167_v27, %v2158_v21 }
  0x66   : > { %v2201_v39 = vld [vmem:[%s1812_s28 + $0x3a8] sm:$0xff]  ;;  %777 = vst [vmem:[%s1827_s12 + $0x1b0] sm:$0xff] %v1482_v31  ;;  %778 = vst [vmem:[%s1827_s12 + $0x1b8] sm:$0xff] %v1483_v32  ;;  %v1481_v43 = vpack.c.bf16 %v2193_v18, %v2189_v36  ;;  %v2209_v44 = vld [vmem:[%s1812_s28 + $0x3b0] sm:$0xff]  ;;  %954 = vadd.xlane.f32.xlu1 %v953_v40  ;;  %v973_v42 = vadd.f32 %v972_v16, %v2094_v57  ;;  %v968_v10 = vadd.f32 %v967_v24, %v2113_v4 }
  0x67   : > { %v2212_v45 = vld [vmem:[%s1812_s28 + $0x3b8] sm:$0xff]  ;;  %v1486_v46 = vpack.c.bf16 %v2201_v39, %v2198_v38  ;;  %v323_v47 = vld [vmem:[%s1812_s28 + $0x380] sm:$0xff]  ;;  %775 = vst [vmem:[%s1827_s12 + $0x1a0] sm:$0xff] %v1480_v37  ;;  %v324_v55 = vld [vmem:[%s1812_s28 + $0x388] sm:$0xff]  ;;  %949 = vadd.xlane.f32.xlu0 %v948_v26  ;;  %v982_v56 = vadd.f32 %v981_v20, %v2130_v11  ;;  %v977_v50 = vadd.f32 %v976_v25, %v2150_v17 }
  0x68   : > { %v1487_v54 = vpack.c.bf16 %v2212_v45, %v2209_v44  ;;  %v325_v59 = vld [vmem:[%s1812_s28 + $0x390] sm:$0xff]  ;;  %v2227_v61 = vld [vmem:[%s1812_s28 + $0x398] sm:$0xff]  ;;  %776 = vst [vmem:[%s1827_s12 + $0x1a8] sm:$0xff] %v1481_v43  ;;  %v1484_v52 = vpack.c.bf16 %v324_v55, %v323_v47  ;;  %v335_v62 = vld [vmem:[%s1812_s28 + $0x3e0] sm:$0xff]  ;;  %v986_v3 = vadd.f32 %v2186_v35, %v2183_v34  ;;  %v992_v14 = vadd.f32 %v991_v8, %v2170_v28 }
  0x69   : > { %781 = vst [vmem:[%s1827_s12 + $0x1d0] sm:$0xff] %v1486_v46  ;;  %v1485_v53 = vpack.c.bf16 %v2227_v61, %v325_v59  ;;  %v336_v63 = vld [vmem:[%s1812_s28 + $0x3e8] sm:$0xff]  ;;  %v337_v0 = vld [vmem:[%s1812_s28 + $0x3f0] sm:$0xff]  ;;  %v338_v58 = vld [vmem:[%s1812_s28 + $0x3f8] sm:$0xff]  ;;  %v983_v13 = vadd.f32 %v982_v56, %v2134_v2  ;;  %v1001_v57 = vadd.f32 %v2201_v39, %v2198_v38  ;;  %v978_v11 = vadd.f32 %v977_v50, %v2153_v19 }
  0x6a   : > { %782 = vst [vmem:[%s1827_s12 + $0x1d8] sm:$0xff] %v1487_v54  ;;  %v1490_v5 = vpack.c.bf16 %v336_v63, %v335_v62  ;;  %v331_v6 = vld [vmem:[%s1812_s28 + $0x3c0] sm:$0xff]  ;;  %v332_v7 = vld [vmem:[%s1812_s28 + $0x3c8] sm:$0xff]  ;;  %779 = vst [vmem:[%s1827_s12 + $0x1c0] sm:$0xff] %v1484_v52  ;;  %v1491_v49 = vpack.c.bf16 %v338_v58, %v337_v0  ;;  %964 = vadd.xlane.f32.xlu1 %v963_v15  ;;  %v987_v21 = vadd.f32 %v986_v3, %v2189_v36 }
  0x6b   : > { %780 = vst [vmem:[%s1827_s12 + $0x1c8] sm:$0xff] %v1485_v53  ;;  %v333_v60 = vld [vmem:[%s1812_s28 + $0x3d0] sm:$0xff]  ;;  %v334_v1 = vld [vmem:[%s1812_s28 + $0x3d8] sm:$0xff]  ;;  %v1488_v12 = vpack.c.bf16 %v332_v7, %v331_v6  ;;  %959 = vadd.xlane.f32.xlu0 %v958_v23  ;;  %v996_v27 = vadd.f32 %v324_v55, %v323_v47  ;;  %v993_v4 = vadd.f32 %v992_v14, %v2173_v29  ;;  %v829_v48 = vld [vmem:[%s1822_s5 + $0x28] sm:$0xff] }
  0x6c   : > { %785 = vst [vmem:[%s1827_s12 + $0x1f0] sm:$0xff] %v1490_v5  ;;  %v1489_v22 = vpack.c.bf16 %v334_v1, %v333_v60  ;;  %786 = vst [vmem:[%s1827_s12 + $0x1f8] sm:$0xff] %v1491_v49  ;;  %v1002_v17 = vadd.f32 %v1001_v57, %v2209_v44  ;;  %v1011_v9 = vadd.f32 %v336_v63, %v335_v62  ;;  %v826_v36 = vld [vmem:[%s1822_s5 + $0x10] sm:$0xff]  ;;  %v827_v43 = vld [vmem:[%s1822_s5 + $0x18] sm:$0xff] }
  0x6d   : > { %783 = vst [vmem:[%s1827_s12 + $0x1e0] sm:$0xff] %v1488_v12  ;;  %v988_v2 = vadd.f32 %v987_v21, %v2193_v18  ;;  %v997_v28 = vadd.f32 %v996_v27, %v325_v59  ;;  %v1006_v30 = vadd.f32 %v332_v7, %v331_v6  ;;  %v824_v18 = vld [vmem:[%s1822_s5] sm:$0xff]  ;;  %v825_v44 = vld [vmem:[%s1822_s5 + $0x8] sm:$0xff]  ;;  %v831_v41 = vld [vmem:[%s1822_s5 + $0x38] sm:$0xff] }
  0x6e   : > { %784 = vst [vmem:[%s1827_s12 + $0x1e8] sm:$0xff] %v1489_v22  ;;  %974 = vadd.xlane.f32.xlu1 %v973_v42  ;;  %v1003_v31 = vadd.f32 %v1002_v17, %v2212_v45  ;;  %v1012_v19 = vadd.f32 %v1011_v9, %v337_v0  ;;  %v828_v51 = vld [vmem:[%s1822_s5 + $0x20] sm:$0xff]  ;;  %v830_v62 = vld [vmem:[%s1822_s5 + $0x30] sm:$0xff]  ;;  %v833_v49 = vld [vmem:[%s1822_s5 + $0x48] sm:$0xff] }
  0x6f   : > { %969 = vadd.xlane.f32.xlu0 %v968_v10  ;;  %v998_v32 = vadd.f32 %v997_v28, %v2227_v61  ;;  %v1007_v29 = vadd.f32 %v1006_v30, %v333_v60  ;;  %v832_v12 = vld [vmem:[%s1822_s5 + $0x40] sm:$0xff]  ;;  %v835_v25 = vld [vmem:[%s1822_s5 + $0x58] sm:$0xff]  ;;  %v834_v8 = vld [vmem:[%s1822_s5 + $0x50] sm:$0xff] }
  0x70   : > { %v1013_v34 = vadd.f32 %v1012_v19, %v338_v58  ;;  %v836_v17 = vld [vmem:[%s1822_s5 + $0x60] sm:$0xff] }
  0x71   : > { %v1008_v35 = vadd.f32 %v1007_v29, %v334_v1  ;;  %v839_v29 = vld [vmem:[%s1822_s5 + $0x78] sm:$0xff] }
  0x72   : > { %984 = vadd.xlane.f32.xlu1 %v983_v13 }
  0x73   : > { %979 = vadd.xlane.f32.xlu0 %v978_v11  ;;  %v837_v11 = vld [vmem:[%s1822_s5 + $0x68] sm:$0xff] }
  0x76   : > { %994 = vadd.xlane.f32.xlu1 %v993_v4 }
  0x77   : > { %989 = vadd.xlane.f32.xlu0 %v988_v2 }
  0x7a   : > { %1004 = vadd.xlane.f32.xlu1 %v1003_v31 }
  0x7b   : > { %999 = vadd.xlane.f32.xlu0 %v998_v32 }
  0x7e   : > { %1014 = vadd.xlane.f32.xlu1 %v1013_v34 }
  0x7f   : > { %1009 = vadd.xlane.f32.xlu0 %v1008_v35 }
  0xc7   : > { %v870_v37 = vpop.xlane.xlu1 %869 }
  0xc8   : > { %v1018_v38 = vadd.f32 %v870_v37, %v826_v36 }
  0xc9   : > { %v860_v39 = vpop.xlane.xlu0 %859 }
  0xca   : > { %v1016_v40 = vadd.f32 %v860_v39, %v824_v18  ;;  %1051 = vst.msk [vmem:[%s1822_s5 + $0x10] sm:$0xff] %vm791_vm0, %v1018_v38  ;;  %v838_v18 = vld [vmem:[%s1822_s5 + $0x70] sm:$0xff] }
  0xcb   : > { %v875_v45 = vpop.xlane.xlu1 %874 }
  0xcc   : > { %1049 = vst.msk [vmem:[%s1822_s5] sm:$0xff] %vm791_vm0, %v1016_v40  ;;  %v1019_v46 = vadd.f32 %v875_v45, %v827_v43 }
  0xcd   : > { %v865_v47 = vpop.xlane.xlu0 %864 }
  0xce   : > { %v1017_v26 = vadd.f32 %v865_v47, %v825_v44  ;;  %1052 = vst.msk [vmem:[%s1822_s5 + $0x18] sm:$0xff] %vm791_vm0, %v1019_v46  ;;  %v841_v46 = vld [vmem:[%s1822_s5 + $0x88] sm:$0xff] }
  0xd0   : > { %1050 = vst.msk [vmem:[%s1822_s5 + $0x8] sm:$0xff] %vm791_vm0, %v1017_v26 }
  0xd1   : > { %v1086_v61 = vld [vmem:[%s1822_s5 + $0x10] sm:$0xff] }
  0xd2   : > { %v1118_v52 = vmax.f32 %v1086_v61, 1.0 }
  0xd3   : > { %v1084_v53 = vld [vmem:[%s1822_s5] sm:$0xff] }
  0xd4   : > { %v1116_v63 = vmax.f32 %v1084_v53, 1.0  ;;  %1550 = vrsqrt.f32 %v1118_v52  ;;  %v843_v53 = vld [vmem:[%s1822_s5 + $0x98] sm:$0xff] }
  0xd5   : > { %v1087_v6 = vld [vmem:[%s1822_s5 + $0x18] sm:$0xff] }
  0xd6   : > { %1552 = vrsqrt.f32 %v1116_v63  ;;  %v1119_v60 = vmax.f32 %v1087_v6, 1.0 }
  0xd7   : > { %v885_v54 = vpop.xlane.xlu1 %884  ;;  %v1085_v1 = vld [vmem:[%s1822_s5 + $0x8] sm:$0xff] }
  0xd8   : > { %v1021_v55 = vadd.f32 %v885_v54, %v829_v48  ;;  %v880_v59 = vpop.xlane.xlu0 %879  ;;  %v1117_v15 = vmax.f32 %v1085_v1, 1.0  ;;  %1554 = vrsqrt.f32 %v1119_v60 }
  0xd9   : > { %v1020_v33 = vadd.f32 %v880_v59, %v828_v51  ;;  %v840_v51 = vld [vmem:[%s1822_s5 + $0x80] sm:$0xff] }
  0xda   : > { %1054 = vst.msk [vmem:[%s1822_s5 + $0x28] sm:$0xff] %vm791_vm0, %v1021_v55  ;;  %1556 = vrsqrt.f32 %v1117_v15  ;;  %v845_v15 = vld [vmem:[%s1822_s5 + $0xa8] sm:$0xff] }
  0xdb   : > { %1053 = vst.msk [vmem:[%s1822_s5 + $0x20] sm:$0xff] %vm791_vm0, %v1020_v33  ;;  %v895_v0 = vpop.xlane.xlu1 %894 }
  0xdc   : > { %v1023_v58 = vadd.f32 %v895_v0, %v831_v41  ;;  %v890_v5 = vpop.xlane.xlu0 %889 }
  0xdd   : > { %v1022_v7 = vadd.f32 %v890_v5, %v830_v62 }
  0xde   : > { %1056 = vst.msk [vmem:[%s1822_s5 + $0x38] sm:$0xff] %vm791_vm0, %v1023_v58  ;;  %v1551_v21 = vpop.eup %1550  ;;  %v842_v58 = vld [vmem:[%s1822_s5 + $0x90] sm:$0xff] }
  0xdf   : > { %1055 = vst.msk [vmem:[%s1822_s5 + $0x30] sm:$0xff] %vm791_vm0, %v1022_v7  ;;  %v905_v16 = vpop.xlane.xlu1 %904  ;;  %1182 = vst.msk [vmem:[%s1822_s5 + $0x10] sm:$0xff] %vm791_vm0, %v1551_v21 }
  0xe0   : > { %v1025_v20 = vadd.f32 %v905_v16, %v833_v49  ;;  %v900_v22 = vpop.xlane.xlu0 %899  ;;  %v1553_v9 = vpop.eup %1552 }
  0xe1   : > { %v1089_v23 = vld [vmem:[%s1822_s5 + $0x28] sm:$0xff]  ;;  %v1024_v24 = vadd.f32 %v900_v22, %v832_v12  ;;  %1180 = vst.msk [vmem:[%s1822_s5] sm:$0xff] %vm791_vm0, %v1553_v9 }
  0xe2   : > { %v1121_v42 = vmax.f32 %v1089_v23, 1.0  ;;  %v1088_v56 = vld [vmem:[%s1822_s5 + $0x20] sm:$0xff]  ;;  %1058 = vst.msk [vmem:[%s1822_s5 + $0x48] sm:$0xff] %vm791_vm0, %v1025_v20  ;;  %v1555_v34 = vpop.eup %1554 }
  0xe3   : > { %v1120_v10 = vmax.f32 %v1088_v56, 1.0  ;;  %1057 = vst.msk [vmem:[%s1822_s5 + $0x40] sm:$0xff] %vm791_vm0, %v1024_v24  ;;  %v915_v50 = vpop.xlane.xlu1 %914  ;;  %1183 = vst.msk [vmem:[%s1822_s5 + $0x18] sm:$0xff] %vm791_vm0, %v1555_v34  ;;  %v844_v23 = vld [vmem:[%s1822_s5 + $0xa0] sm:$0xff] }
  0xe4   : > { %1558 = vrsqrt.f32 %v1121_v42  ;;  %v1027_v3 = vadd.f32 %v915_v50, %v835_v25  ;;  %v910_v13 = vpop.xlane.xlu0 %909  ;;  %v1557_v37 = vpop.eup %1556 }
  0xe5   : > { %1560 = vrsqrt.f32 %v1120_v10  ;;  %v1091_v14 = vld [vmem:[%s1822_s5 + $0x38] sm:$0xff]  ;;  %v1026_v57 = vadd.f32 %v910_v13, %v834_v8  ;;  %1181 = vst.msk [vmem:[%s1822_s5 + $0x8] sm:$0xff] %vm791_vm0, %v1557_v37 }
  0xe6   : > { %v1123_v27 = vmax.f32 %v1091_v14, 1.0  ;;  %v1090_v4 = vld [vmem:[%s1822_s5 + $0x30] sm:$0xff]  ;;  %1060 = vst.msk [vmem:[%s1822_s5 + $0x58] sm:$0xff] %vm791_vm0, %v1027_v3  ;;  %v847_v3 = vld [vmem:[%s1822_s5 + $0xb8] sm:$0xff] }
  0xe7   : > { %v1122_v2 = vmax.f32 %v1090_v4, 1.0  ;;  %1059 = vst.msk [vmem:[%s1822_s5 + $0x50] sm:$0xff] %vm791_vm0, %v1026_v57  ;;  %v925_v28 = vpop.xlane.xlu1 %924 }
  0xe8   : > { %1562 = vrsqrt.f32 %v1123_v27  ;;  %v1029_v30 = vadd.f32 %v925_v28, %v837_v11  ;;  %v920_v31 = vpop.xlane.xlu0 %919  ;;  %v846_v11 = vld [vmem:[%s1822_s5 + $0xb0] sm:$0xff] }
  0xe9   : > { %1564 = vrsqrt.f32 %v1122_v2  ;;  %v1093_v19 = vld [vmem:[%s1822_s5 + $0x48] sm:$0xff]  ;;  %v1028_v32 = vadd.f32 %v920_v31, %v836_v17 }
  0xea   : > { %v1125_v35 = vmax.f32 %v1093_v19, 1.0  ;;  %v1092_v36 = vld [vmem:[%s1822_s5 + $0x40] sm:$0xff]  ;;  %1062 = vst.msk [vmem:[%s1822_s5 + $0x68] sm:$0xff] %vm791_vm0, %v1029_v30  ;;  %v849_v30 = vld [vmem:[%s1822_s5 + $0xc8] sm:$0xff] }
  0xeb   : > { %v1124_v38 = vmax.f32 %v1092_v36, 1.0  ;;  %1061 = vst.msk [vmem:[%s1822_s5 + $0x60] sm:$0xff] %vm791_vm0, %v1028_v32  ;;  %v935_v39 = vpop.xlane.xlu1 %934 }
  0xec   : > { %1566 = vrsqrt.f32 %v1125_v35  ;;  %v1031_v40 = vadd.f32 %v935_v39, %v839_v29  ;;  %v930_v43 = vpop.xlane.xlu0 %929  ;;  %v848_v29 = vld [vmem:[%s1822_s5 + $0xc0] sm:$0xff] }
  0xed   : > { %1568 = vrsqrt.f32 %v1124_v38  ;;  %v1095_v44 = vld [vmem:[%s1822_s5 + $0x58] sm:$0xff]  ;;  %v1030_v45 = vadd.f32 %v930_v43, %v838_v18 }
  0xee   : > { %v1559_v47 = vpop.eup %1558  ;;  %v1127_v26 = vmax.f32 %v1095_v44, 1.0  ;;  %v1094_v48 = vld [vmem:[%s1822_s5 + $0x50] sm:$0xff]  ;;  %1064 = vst.msk [vmem:[%s1822_s5 + $0x78] sm:$0xff] %vm791_vm0, %v1031_v40  ;;  %v851_v40 = vld [vmem:[%s1822_s5 + $0xd8] sm:$0xff] }
  0xef   : > { %v1561_v54 = vpop.eup %1560  ;;  %1185 = vst.msk [vmem:[%s1822_s5 + $0x28] sm:$0xff] %vm791_vm0, %v1559_v47  ;;  %v1126_v55 = vmax.f32 %v1094_v48, 1.0  ;;  %1063 = vst.msk [vmem:[%s1822_s5 + $0x70] sm:$0xff] %vm791_vm0, %v1030_v45  ;;  %v945_v59 = vpop.xlane.xlu1 %944 }
  0xf0   : > { %1184 = vst.msk [vmem:[%s1822_s5 + $0x20] sm:$0xff] %vm791_vm0, %v1561_v54  ;;  %1570 = vrsqrt.f32 %v1127_v26  ;;  %v1033_v61 = vadd.f32 %v945_v59, %v841_v46  ;;  %v940_v33 = vpop.xlane.xlu0 %939  ;;  %v850_v46 = vld [vmem:[%s1822_s5 + $0xd0] sm:$0xff] }
  0xf1   : > { %1572 = vrsqrt.f32 %v1126_v55  ;;  %v1097_v41 = vld [vmem:[%s1822_s5 + $0x68] sm:$0xff]  ;;  %v1032_v52 = vadd.f32 %v940_v33, %v840_v51 }
  0xf2   : > { %v1563_v62 = vpop.eup %1562  ;;  %v1129_v63 = vmax.f32 %v1097_v41, 1.0  ;;  %v1096_v0 = vld [vmem:[%s1822_s5 + $0x60] sm:$0xff]  ;;  %1066 = vst.msk [vmem:[%s1822_s5 + $0x88] sm:$0xff] %vm791_vm0, %v1033_v61  ;;  %v853_v61 = vld [vmem:[%s1822_s5 + $0xe8] sm:$0xff] }
  0xf3   : > { %v1565_v5 = vpop.eup %1564  ;;  %1187 = vst.msk [vmem:[%s1822_s5 + $0x38] sm:$0xff] %vm791_vm0, %v1563_v62  ;;  %v1128_v6 = vmax.f32 %v1096_v0, 1.0  ;;  %1065 = vst.msk [vmem:[%s1822_s5 + $0x80] sm:$0xff] %vm791_vm0, %v1032_v52  ;;  %v955_v7 = vpop.xlane.xlu1 %954 }
  0xf4   : > { %1186 = vst.msk [vmem:[%s1822_s5 + $0x30] sm:$0xff] %vm791_vm0, %v1565_v5  ;;  %1574 = vrsqrt.f32 %v1129_v63  ;;  %v1035_v49 = vadd.f32 %v955_v7, %v843_v53  ;;  %v950_v60 = vpop.xlane.xlu0 %949  ;;  %v852_v53 = vld [vmem:[%s1822_s5 + $0xe0] sm:$0xff] }
  0xf5   : > { %1576 = vrsqrt.f32 %v1128_v6  ;;  %v1099_v1 = vld [vmem:[%s1822_s5 + $0x78] sm:$0xff]  ;;  %v1034_v12 = vadd.f32 %v950_v60, %v842_v58 }
  0xf6   : > { %v1567_v16 = vpop.eup %1566  ;;  %v1131_v20 = vmax.f32 %v1099_v1, 1.0  ;;  %v1098_v22 = vld [vmem:[%s1822_s5 + $0x70] sm:$0xff]  ;;  %1068 = vst.msk [vmem:[%s1822_s5 + $0x98] sm:$0xff] %vm791_vm0, %v1035_v49  ;;  %v855_v49 = vld [vmem:[%s1822_s5 + $0xf8] sm:$0xff] }
  0xf7   : > { %v1569_v24 = vpop.eup %1568  ;;  %1189 = vst.msk [vmem:[%s1822_s5 + $0x48] sm:$0xff] %vm791_vm0, %v1567_v16  ;;  %v1130_v25 = vmax.f32 %v1098_v22, 1.0  ;;  %1067 = vst.msk [vmem:[%s1822_s5 + $0x90] sm:$0xff] %vm791_vm0, %v1034_v12  ;;  %v965_v42 = vpop.xlane.xlu1 %964 }
  0xf8   : > { %1188 = vst.msk [vmem:[%s1822_s5 + $0x40] sm:$0xff] %vm791_vm0, %v1569_v24  ;;  %1578 = vrsqrt.f32 %v1131_v20  ;;  %v1037_v56 = vadd.f32 %v965_v42, %v845_v15  ;;  %v960_v8 = vpop.xlane.xlu0 %959  ;;  %v854_v15 = vld [vmem:[%s1822_s5 + $0xf0] sm:$0xff] }
  0xf9   : > { %1580 = vrsqrt.f32 %v1130_v25  ;;  %v1101_v10 = vld [vmem:[%s1822_s5 + $0x88] sm:$0xff]  ;;  %v1036_v50 = vadd.f32 %v960_v8, %v844_v23 }
  0xfa   : > { %v1571_v13 = vpop.eup %1570  ;;  %v1133_v14 = vmax.f32 %v1101_v10, 1.0  ;;  %v1100_v57 = vld [vmem:[%s1822_s5 + $0x80] sm:$0xff]  ;;  %1070 = vst.msk [vmem:[%s1822_s5 + $0xa8] sm:$0xff] %vm791_vm0, %v1037_v56 }
  0xfb   : > { %v1573_v21 = vpop.eup %1572  ;;  %1191 = vst.msk [vmem:[%s1822_s5 + $0x58] sm:$0xff] %vm791_vm0, %v1571_v13  ;;  %v1132_v27 = vmax.f32 %v1100_v57, 1.0  ;;  %1069 = vst.msk [vmem:[%s1822_s5 + $0xa0] sm:$0xff] %vm791_vm0, %v1036_v50  ;;  %v975_v4 = vpop.xlane.xlu1 %974 }
  0xfc   : > { %1190 = vst.msk [vmem:[%s1822_s5 + $0x50] sm:$0xff] %vm791_vm0, %v1573_v21  ;;  %1582 = vrsqrt.f32 %v1133_v14  ;;  %v1039_v17 = vadd.f32 %v975_v4, %v847_v3  ;;  %v970_v9 = vpop.xlane.xlu0 %969 }
  0xfd   : > { %1584 = vrsqrt.f32 %v1132_v27  ;;  %v1103_v2 = vld [vmem:[%s1822_s5 + $0x98] sm:$0xff]  ;;  %v1038_v28 = vadd.f32 %v970_v9, %v846_v11 }
  0xfe   : > { %v1575_v31 = vpop.eup %1574  ;;  %v1135_v19 = vmax.f32 %v1103_v2, 1.0  ;;  %v1102_v32 = vld [vmem:[%s1822_s5 + $0x90] sm:$0xff]  ;;  %1072 = vst.msk [vmem:[%s1822_s5 + $0xb8] sm:$0xff] %vm791_vm0, %v1039_v17 }
  0xff   : > { %v1577_v34 = vpop.eup %1576  ;;  %1193 = vst.msk [vmem:[%s1822_s5 + $0x68] sm:$0xff] %vm791_vm0, %v1575_v31  ;;  %v1134_v35 = vmax.f32 %v1102_v32, 1.0  ;;  %1071 = vst.msk [vmem:[%s1822_s5 + $0xb0] sm:$0xff] %vm791_vm0, %v1038_v28  ;;  %v985_v36 = vpop.xlane.xlu1 %984 }
 0x100   : > { %1192 = vst.msk [vmem:[%s1822_s5 + $0x60] sm:$0xff] %vm791_vm0, %v1577_v34  ;;  %1586 = vrsqrt.f32 %v1135_v19  ;;  %v1041_v18 = vadd.f32 %v985_v36, %v849_v30  ;;  %v980_v37 = vpop.xlane.xlu0 %979 }
 0x101   : > { %1588 = vrsqrt.f32 %v1134_v35  ;;  %v1105_v38 = vld [vmem:[%s1822_s5 + $0xa8] sm:$0xff]  ;;  %v1040_v39 = vadd.f32 %v980_v37, %v848_v29 }
 0x102   : > { %v1579_v43 = vpop.eup %1578  ;;  %v1137_v44 = vmax.f32 %v1105_v38, 1.0  ;;  %v1104_v45 = vld [vmem:[%s1822_s5 + $0xa0] sm:$0xff]  ;;  %1074 = vst.msk [vmem:[%s1822_s5 + $0xc8] sm:$0xff] %vm791_vm0, %v1041_v18 }
 0x103   : > { %v1581_v47 = vpop.eup %1580  ;;  %1195 = vst.msk [vmem:[%s1822_s5 + $0x78] sm:$0xff] %vm791_vm0, %v1579_v43  ;;  %v1136_v26 = vmax.f32 %v1104_v45, 1.0  ;;  %1073 = vst.msk [vmem:[%s1822_s5 + $0xc0] sm:$0xff] %vm791_vm0, %v1040_v39  ;;  %v995_v48 = vpop.xlane.xlu1 %994 }
 0x104   : > { %1194 = vst.msk [vmem:[%s1822_s5 + $0x70] sm:$0xff] %vm791_vm0, %v1581_v47  ;;  %1590 = vrsqrt.f32 %v1137_v44  ;;  %v1043_v51 = vadd.f32 %v995_v48, %v851_v40  ;;  %v990_v54 = vpop.xlane.xlu0 %989 }
 0x105   : > { %1592 = vrsqrt.f32 %v1136_v26  ;;  %v1107_v55 = vld [vmem:[%s1822_s5 + $0xb8] sm:$0xff]  ;;  %v1042_v59 = vadd.f32 %v990_v54, %v850_v46 }
 0x106   : > { %v1583_v33 = vpop.eup %1582  ;;  %v1139_v41 = vmax.f32 %v1107_v55, 1.0  ;;  %v1106_v52 = vld [vmem:[%s1822_s5 + $0xb0] sm:$0xff]  ;;  %1076 = vst.msk [vmem:[%s1822_s5 + $0xd8] sm:$0xff] %vm791_vm0, %v1043_v51 }
 0x107   : > { %v1585_v62 = vpop.eup %1584  ;;  %1197 = vst.msk [vmem:[%s1822_s5 + $0x88] sm:$0xff] %vm791_vm0, %v1583_v33  ;;  %v1138_v63 = vmax.f32 %v1106_v52, 1.0  ;;  %1075 = vst.msk [vmem:[%s1822_s5 + $0xd0] sm:$0xff] %vm791_vm0, %v1042_v59  ;;  %v1005_v0 = vpop.xlane.xlu1 %1004 }
 0x108   : > { %1196 = vst.msk [vmem:[%s1822_s5 + $0x80] sm:$0xff] %vm791_vm0, %v1585_v62  ;;  %1594 = vrsqrt.f32 %v1139_v41  ;;  %v1045_v58 = vadd.f32 %v1005_v0, %v853_v61  ;;  %v1000_v5 = vpop.xlane.xlu0 %999 }
 0x109   : > { %1596 = vrsqrt.f32 %v1138_v63  ;;  %v1109_v6 = vld [vmem:[%s1822_s5 + $0xc8] sm:$0xff]  ;;  %v1044_v7 = vadd.f32 %v1000_v5, %v852_v53 }
 0x10a   : > { %v1587_v60 = vpop.eup %1586  ;;  %v1141_v1 = vmax.f32 %v1109_v6, 1.0  ;;  %v1108_v12 = vld [vmem:[%s1822_s5 + $0xc0] sm:$0xff]  ;;  %1078 = vst.msk [vmem:[%s1822_s5 + $0xe8] sm:$0xff] %vm791_vm0, %v1045_v58 }
 0x10b   : > { %v1589_v16 = vpop.eup %1588  ;;  %1199 = vst.msk [vmem:[%s1822_s5 + $0x98] sm:$0xff] %vm791_vm0, %v1587_v60  ;;  %v1140_v20 = vmax.f32 %v1108_v12, 1.0  ;;  %1077 = vst.msk [vmem:[%s1822_s5 + $0xe0] sm:$0xff] %vm791_vm0, %v1044_v7  ;;  %v1015_v22 = vpop.xlane.xlu1 %1014 }
 0x10c   : > { %1198 = vst.msk [vmem:[%s1822_s5 + $0x90] sm:$0xff] %vm791_vm0, %v1589_v16  ;;  %1598 = vrsqrt.f32 %v1141_v1  ;;  %v1047_v23 = vadd.f32 %v1015_v22, %v855_v49  ;;  %v1010_v24 = vpop.xlane.xlu0 %1009 }
 0x10d   : > { %1600 = vrsqrt.f32 %v1140_v20  ;;  %v1111_v25 = vld [vmem:[%s1822_s5 + $0xd8] sm:$0xff]  ;;  %v1046_v42 = vadd.f32 %v1010_v24, %v854_v15 }
 0x10e   : > { %v1591_v56 = vpop.eup %1590  ;;  %v1143_v8 = vmax.f32 %v1111_v25, 1.0  ;;  %v1110_v10 = vld [vmem:[%s1822_s5 + $0xd0] sm:$0xff]  ;;  %1080 = vst.msk [vmem:[%s1822_s5 + $0xf8] sm:$0xff] %vm791_vm0, %v1047_v23 }
 0x10f   : > { %v1593_v50 = vpop.eup %1592  ;;  %1201 = vst.msk [vmem:[%s1822_s5 + $0xa8] sm:$0xff] %vm791_vm0, %v1591_v56  ;;  %v1142_v3 = vmax.f32 %v1110_v10, 1.0  ;;  %1079 = vst.msk [vmem:[%s1822_s5 + $0xf0] sm:$0xff] %vm791_vm0, %v1046_v42 }
 0x110   : > { %1200 = vst.msk [vmem:[%s1822_s5 + $0xa0] sm:$0xff] %vm791_vm0, %v1593_v50  ;;  %1602 = vrsqrt.f32 %v1143_v8 }
 0x111   : > { %1604 = vrsqrt.f32 %v1142_v3  ;;  %v1113_v13 = vld [vmem:[%s1822_s5 + $0xe8] sm:$0xff] }
 0x112   : > { %v1595_v14 = vpop.eup %1594  ;;  %v1145_v57 = vmax.f32 %v1113_v13, 1.0  ;;  %v1112_v11 = vld [vmem:[%s1822_s5 + $0xe0] sm:$0xff] }
 0x113   : > { %v1597_v21 = vpop.eup %1596  ;;  %1203 = vst.msk [vmem:[%s1822_s5 + $0xb8] sm:$0xff] %vm791_vm0, %v1595_v14  ;;  %v1144_v27 = vmax.f32 %v1112_v11, 1.0 }
 0x114   : > { %1202 = vst.msk [vmem:[%s1822_s5 + $0xb0] sm:$0xff] %vm791_vm0, %v1597_v21  ;;  %1606 = vrsqrt.f32 %v1145_v57 }
 0x115   : > { %1608 = vrsqrt.f32 %v1144_v27  ;;  %v1115_v4 = vld [vmem:[%s1822_s5 + $0xf8] sm:$0xff] }
 0x116   : > { %v1599_v17 = vpop.eup %1598  ;;  %v1147_v9 = vmax.f32 %v1115_v4, 1.0  ;;  %v1114_v2 = vld [vmem:[%s1822_s5 + $0xf0] sm:$0xff] }
 0x117   : > { %v1601_v28 = vpop.eup %1600  ;;  %1205 = vst.msk [vmem:[%s1822_s5 + $0xc8] sm:$0xff] %vm791_vm0, %v1599_v17  ;;  %v1146_v30 = vmax.f32 %v1114_v2, 1.0 }
 0x118   : > { %1204 = vst.msk [vmem:[%s1822_s5 + $0xc0] sm:$0xff] %vm791_vm0, %v1601_v28  ;;  %1610 = vrsqrt.f32 %v1147_v9 }
 0x119   : > { %1612 = vrsqrt.f32 %v1146_v30 }
 0x11a   : > { %v1603_v31 = vpop.eup %1602 }
 0x11b   : > { %v1605_v19 = vpop.eup %1604  ;;  %1207 = vst.msk [vmem:[%s1822_s5 + $0xd8] sm:$0xff] %vm791_vm0, %v1603_v31 }
 0x11c   : > { %1206 = vst.msk [vmem:[%s1822_s5 + $0xd0] sm:$0xff] %vm791_vm0, %v1605_v19 }
 0x11e   : > { %v1607_v32 = vpop.eup %1606 }
 0x11f   : > { %v1609_v29 = vpop.eup %1608  ;;  %1209 = vst.msk [vmem:[%s1822_s5 + $0xe8] sm:$0xff] %vm791_vm0, %v1607_v32 }
 0x120   : > { %1208 = vst.msk [vmem:[%s1822_s5 + $0xe0] sm:$0xff] %vm791_vm0, %v1609_v29 }
 0x122   : > { %v1611_v34 = vpop.eup %1610 }
 0x123   : > { %v1613_v35 = vpop.eup %1612  ;;  %1211 = vst.msk [vmem:[%s1822_s5 + $0xf8] sm:$0xff] %vm791_vm0, %v1611_v34 }
 0x124   : > { %1210 = vst.msk [vmem:[%s1822_s5 + $0xf0] sm:$0xff] %vm791_vm0, %v1613_v35 }
 0x125 PF: > { %s16_s14 = sadd.s32 1, %s1694_s14   ;;  %s2493_s9 = smov %s1678_s10 }
 0x126   : > { %p13_p7 = scmp.ge.s32.totalorder %s16_s14, 4   ;;  %s2494_s10 = smov %s1682_s11 }
 0x127   : > { %s2495_s11 = smov %s1764_s21  ;;  %s2496_s12 = smov %s1690_s13 }
 0x128   : > { %s2497_s13 = smov %s2499_s16  ;;  %15 = sbr.rel (!%p13_p7) target bundleno = 4 (0x4), region = 84 }
 0x12f   :  { %1262 = vsyncpa [#allocation3], 1 }
 0x130   :  { %1264 = vsyncpa [#allocation3 + $0x1], 1 }

// kernel: gcn_layer.4
= control target key start
LH: loop header
LB: loop body
LE: loop exit
PB: predicated region body
PF: predicated region fallthrough
CT: control target
= control target key end

     0   :  { %s4479_s13 = smov 0   ;;  %s4481_s14 = smov 0   ;;  %s5948_s0 = inlined_call_operand.vmem [shape: bf16[512,512], index: 0, kind: input, shape index: {}]   ;;  %s5949_s1 = inlined_call_operand.vmem [shape: f32[512,32], index: 1, kind: input, shape index: {}, may-alias: {1,3}]   ;;  %s5950_s2 = inlined_call_operand.vmem [shape: f32[512,1], index: 2, kind: input, shape index: {}, may-alias: {2,4}]   ;;  %s5951_s3 = inlined_call_operand.vmem [shape: f32[512,32], index: 3, kind: input, shape index: {}, may-alias: {1,3}]   ;;  %s5952_s4 = inlined_call_operand.vmem [shape: f32[512,1], index: 4, kind: input, shape index: {}, may-alias: {2,4}]   ;;  %s5953_s5 = inlined_call_operand.vmem [shape: f32[32,16], index: 5, kind: input, shape index: {}]   ;;  %s5954_s6 = inlined_call_operand.vmem [shape: f32[1,16], index: 6, kind: input, shape index: {}]   ;;  %s5955_s7 = inlined_call_operand.vmem [shape: f32[32,16], index: 7, kind: input, shape index: {}]   ;;  %s5956_s8 = inlined_call_operand.vmem [shape: f32[1,16], index: 8, kind: input, shape index: {}]   ;;  %s5957_s9 = inlined_call_operand.vmem [shape: f32[512,16], index: 9, kind: output, shape index: {0}]   ;;  %s5958_s10 = inlined_call_operand.vmem [shape: f32[16,16], index: 10, kind: output, shape index: {1}]  }
   0x1   :  { %s4483_s15 = smov 0  }
   0x2 LB: > { %s33_s16 = sadd.s32 1, %s4416_s14  ;;  %p3590_p0 = scmp.ge.s32.totalorder %s4420_s15, 1  ;;  %s4420_s15 = sphi %s4483_s15, %s21_s15   ;;  %s4416_s14 = sphi %s4481_s14, %s5960_s14   ;;  %s4412_s13 = sphi %s4479_s13, %s5959_s13  }
   0x3   : > { %p35_p1 = scmp.ge.s32.totalorder %s33_s16, 2  ;;  %p380_p2 = scmp.lt.s32.totalorder %s4420_s15, 3 }
   0x5   : > { %s5962_s16 = smov (%p35_p1, %s33_s16), 0  ;;  %p381_p3 = pnand %p3590_p0, %p380_p2 }
   0x6   : > { %v533_v0 = vld [vmem:[%s5950_s2 + $0x10] sm:$0xff] (!%p381_p3)  ;;  %v531_v1 = vld [vmem:[%s5950_s2] sm:$0xff] (!%p381_p3)  ;;  %v4422_v2 = vmov (!%p381_p3), 0   ;;  %v534_v3 = vld [vmem:[%s5950_s2 + $0x18] sm:$0xff] (!%p381_p3)  ;;  %s3591_s29 = sshll.u32 (!%p381_p3), %s4412_s13, 5  ;;  %vm1047_vm0 = vcmask (!%p381_p3), 261120  }
   0x7   : > { %384 = sbr.rel (%p381_p3) target bundleno = 937 (0x3a9), region = 56  ;;  %4301 = vset.pattern.permute.xlu1 (!%p381_p3), %v4422_v2  ;;  %4300 = vset.pattern.permute.xlu0 (!%p381_p3), %v4422_v2  ;;  %v532_v4 = vld [vmem:[%s5950_s2 + $0x8] sm:$0xff] (!%p381_p3)  ;;  %v535_v6 = vld [vmem:[%s5950_s2 + $0x20] sm:$0xff] (!%p381_p3)  ;;  %v538_v7 = vld [vmem:[%s5950_s2 + $0x38] sm:$0xff] (!%p381_p3)  ;;  %p449_p4 = scmp.lt.s32.totalorder (!%p381_p3), %s3591_s29, 63  ;;  %vm498_vm1 = vcmask (!%p381_p3), 130048  }
   0x8   : > { %671 = vperm.xlu1 (!%p381_p3), %4301, %v533_v0   ;;  %661 = vperm.xlu0 (!%p381_p3), %4300, %v531_v1   ;;  %v536_v5 = vld [vmem:[%s5950_s2 + $0x28] sm:$0xff] (!%p381_p3)  ;;  %v537_v8 = vld [vmem:[%s5950_s2 + $0x30] sm:$0xff] (!%p381_p3)  ;;  %v539_v10 = vld [vmem:[%s5950_s2 + $0x40] sm:$0xff] (!%p381_p3)  ;;  %p489_p5 = scmp.lt.s32.totalorder (!%p381_p3), %s4412_s13, 1 }
   0x9   : > { %v540_v9 = vld [vmem:[%s5950_s2 + $0x48] sm:$0xff] (!%p381_p3)  ;;  %v542_v11 = vld [vmem:[%s5950_s2 + $0x58] sm:$0xff] (!%p381_p3)  ;;  %v541_v12 = vld [vmem:[%s5950_s2 + $0x50] sm:$0xff] (!%p381_p3) }
   0xa   : > { %v1043_v13 = vld [vmem:[%s5953_s5] sm:$0xff] (!%p381_p3)  ;;  %v1044_v14 = vld [vmem:[%s5953_s5 + $0x8] sm:$0xff] (!%p381_p3)  ;;  %v1045_v18 = vld [vmem:[%s5953_s5 + $0x10] sm:$0xff] (!%p381_p3) }
   0xb   : > { %v544_v15 = vld [vmem:[%s5950_s2 + $0x68] sm:$0xff] (!%p381_p3)  ;;  %v4254_v16 = vpack.c.bf16 (!%p381_p3), %v1044_v14, %v1043_v13  ;;  %v543_v17 = vld [vmem:[%s5950_s2 + $0x60] sm:$0xff] (!%p381_p3)  ;;  %v1046_v19 = vld [vmem:[%s5953_s5 + $0x18] sm:$0xff] (!%p381_p3) }
   0xc   : > { %676 = vperm.xlu1 (!%p381_p3), %4301, %v534_v3   ;;  %666 = vperm.xlu0 (!%p381_p3), %4300, %v532_v4   ;;  %v4258_v20 = vpack.c.bf16 (!%p381_p3), %v1046_v19, %v1045_v18  ;;  %v546_v21 = vld [vmem:[%s5950_s2 + $0x78] sm:$0xff] (!%p381_p3)  ;;  %v545_v22 = vld [vmem:[%s5950_s2 + $0x70] sm:$0xff] (!%p381_p3)  ;;  %v548_v23 = vld [vmem:[%s5950_s2 + $0x88] sm:$0xff] (!%p381_p3) }
   0xd   : > { %4255 = vmatprep.subr.bf16.mxu0 (!%p381_p3), %v4254_v16  ;;  %4270 = vmatprep.subr.bf16.mxu1 (!%p381_p3), %v4254_v16  ;;  %v547_v24 = vld [vmem:[%s5950_s2 + $0x80] sm:$0xff] (!%p381_p3)  ;;  %v550_v25 = vld [vmem:[%s5950_s2 + $0x98] sm:$0xff] (!%p381_p3)  ;;  %v549_v26 = vld [vmem:[%s5950_s2 + $0x90] sm:$0xff] (!%p381_p3) }
   0xe   : > { %4257 = vmatpush3.bf16.msra.mxu0 %v4254_v16  ;;  %4272 = vmatpush3.bf16.msra.mxu1 %v4254_v16  ;;  %s5964_s29 = smov (!%p449_p4, %s3591_s29), 63  ;;  %v552_v27 = vld [vmem:[%s5950_s2 + $0xa8] sm:$0xff]  ;;  %v551_v28 = vld [vmem:[%s5950_s2 + $0xa0] sm:$0xff]  ;;  %v554_v29 = vld [vmem:[%s5950_s2 + $0xb8] sm:$0xff]  ;;  %s5966_s13 = smov (!%p489_p5, %s4412_s13), 1 }
   0xf   : > { %4259 = vmatprep.subr.bf16.mxu0 %v4258_v20  ;;  %4271 = vmatprep.subr.bf16.mxu1 %v4258_v20  ;;  %s3765_s26 = sshll.u32 %s5964_s29, 4  ;;  %v553_v30 = vld [vmem:[%s5950_s2 + $0xb0] sm:$0xff]  ;;  %v556_v31 = vld [vmem:[%s5950_s2 + $0xc8] sm:$0xff]  ;;  %v555_v32 = vld [vmem:[%s5950_s2 + $0xc0] sm:$0xff]  ;;  %s4707_s23 = sshll.u32 %s5964_s29, 3 }
  0x10   : > { %686 = vperm.xlu1 %4301, %v536_v5   ;;  %681 = vperm.xlu0 %4300, %v535_v6   ;;  %s4572_s18 = scalar_lea.vmem %s5948_s0, %s3765_s26  ;;  %v558_v33 = vld [vmem:[%s5950_s2 + $0xd8] sm:$0xff]  ;;  %v557_v34 = vld [vmem:[%s5950_s2 + $0xd0] sm:$0xff]  ;;  %v560_v35 = vld [vmem:[%s5950_s2 + $0xe8] sm:$0xff]  ;;  %s4719_s11 = scalar_lea.vmem %s5952_s4, %s4707_s23 }
  0x11   : > { %v559_v36 = vld [vmem:[%s5950_s2 + $0xe0] sm:$0xff]  ;;  %v562_v37 = vld [vmem:[%s5950_s2 + $0xf8] sm:$0xff]  ;;  %v561_v38 = vld [vmem:[%s5950_s2 + $0xf0] sm:$0xff]  ;;  %s5073_s17 = scalar_lea.vmem %s5951_s3, %s4707_s23  ;;  %s5101_s21 = scalar_lea.vmem %s5957_s9, %s4707_s23 }
  0x12   : > { %4261 = vmatpush3.bf16.msra.mxu0 %v4258_v20  ;;  %4273 = vmatpush3.bf16.msra.mxu1 %v4258_v20  ;;  %v563_v39 = vld [vmem:[%s5950_s2 + $0x100] sm:$0xff]  ;;  %v564_v41 = vld [vmem:[%s5950_s2 + $0x108] sm:$0xff]  ;;  %v565_v43 = vld [vmem:[%s5950_s2 + $0x110] sm:$0xff]  ;;  %s3600_s25 = sshll.u32 %s5966_s13, 3 }
  0x13   : > { %v579_v40 = vld [vmem:[%s5950_s2 + $0x180] sm:$0xff]  ;;  %v580_v42 = vld [vmem:[%s5950_s2 + $0x188] sm:$0xff]  ;;  %v581_v44 = vld [vmem:[%s5950_s2 + $0x190] sm:$0xff]  ;;  %s492_s28 = scalar_lea.vmem %s5958_s10, %s3600_s25 }
  0x14   : > { %696 = vperm.xlu1 %4301, %v538_v7   ;;  %691 = vperm.xlu0 %4300, %v537_v8   ;;  %v566_v45 = vld [vmem:[%s5950_s2 + $0x118] sm:$0xff]  ;;  %v567_v47 = vld [vmem:[%s5950_s2 + $0x120] sm:$0xff]  ;;  %v568_v49 = vld [vmem:[%s5950_s2 + $0x128] sm:$0xff] }
  0x15   : > { %v582_v46 = vld [vmem:[%s5950_s2 + $0x198] sm:$0xff]  ;;  %v583_v48 = vld [vmem:[%s5950_s2 + $0x1a0] sm:$0xff]  ;;  %v584_v50 = vld [vmem:[%s5950_s2 + $0x1a8] sm:$0xff] }
  0x16   : > { %v569_v51 = vld [vmem:[%s5950_s2 + $0x130] sm:$0xff]  ;;  %v570_v53 = vld [vmem:[%s5950_s2 + $0x138] sm:$0xff]  ;;  %v571_v55 = vld [vmem:[%s5950_s2 + $0x140] sm:$0xff] }
  0x17   : > { %v585_v52 = vld [vmem:[%s5950_s2 + $0x1b0] sm:$0xff]  ;;  %v586_v54 = vld [vmem:[%s5950_s2 + $0x1b8] sm:$0xff]  ;;  %v587_v56 = vld [vmem:[%s5950_s2 + $0x1c0] sm:$0xff] }
  0x18   : > { %706 = vperm.xlu1 %4301, %v540_v9   ;;  %701 = vperm.xlu0 %4300, %v539_v10   ;;  %v572_v57 = vld [vmem:[%s5950_s2 + $0x148] sm:$0xff]  ;;  %v573_v59 = vld [vmem:[%s5950_s2 + $0x150] sm:$0xff]  ;;  %v574_v61 = vld [vmem:[%s5950_s2 + $0x158] sm:$0xff] }
  0x19   : > { %v588_v58 = vld [vmem:[%s5950_s2 + $0x1c8] sm:$0xff]  ;;  %v589_v60 = vld [vmem:[%s5950_s2 + $0x1d0] sm:$0xff]  ;;  %v590_v62 = vld [vmem:[%s5950_s2 + $0x1d8] sm:$0xff] }
  0x1a   : > { %v575_v63 = vld [vmem:[%s5950_s2 + $0x160] sm:$0xff]  ;;  %v576_v1 = vld [vmem:[%s5950_s2 + $0x168] sm:$0xff]  ;;  %v577_v3 = vld [vmem:[%s5950_s2 + $0x170] sm:$0xff] }
  0x1b   : > { %v591_v0 = vld [vmem:[%s5950_s2 + $0x1e0] sm:$0xff]  ;;  %v592_v2 = vld [vmem:[%s5950_s2 + $0x1e8] sm:$0xff]  ;;  %v593_v4 = vld [vmem:[%s5950_s2 + $0x1f0] sm:$0xff] }
  0x1c   : > { %716 = vperm.xlu1 %4301, %v542_v11   ;;  %711 = vperm.xlu0 %4300, %v541_v12   ;;  %v578_v5 = vld [vmem:[%s5950_s2 + $0x178] sm:$0xff]  ;;  %v595_v7 = vld [vmem:[%s5949_s1] sm:$0xff]  ;;  %v2860_v8 = vld [vmem:[%s4719_s11 + $0x8] sm:$0xff] }
  0x1d   : > { %v594_v6 = vld [vmem:[%s5950_s2 + $0x1f8] sm:$0xff]  ;;  %v2859_v9 = vld [vmem:[%s4719_s11] sm:$0xff]  ;;  %v596_v13 = vld [vmem:[%s5949_s1 + $0x8] sm:$0xff] }
  0x1e   : > { %v2862_v14 = vld [vmem:[%s4719_s11 + $0x18] sm:$0xff]  ;;  %v597_v16 = vld [vmem:[%s5949_s1 + $0x10] sm:$0xff] }
  0x1f   : > { %v598_v19 = vld [vmem:[%s5949_s1 + $0x18] sm:$0xff] }
  0x20   : > { %726 = vperm.xlu1 %4301, %v544_v15   ;;  %721 = vperm.xlu0 %4300, %v543_v17   ;;  %v2861_v15 = vld [vmem:[%s4719_s11 + $0x10] sm:$0xff] }
  0x24   : > { %736 = vperm.xlu1 %4301, %v546_v21   ;;  %731 = vperm.xlu0 %4300, %v545_v22   ;;  %v599_v22 = vld [vmem:[%s5949_s1 + $0x20] sm:$0xff] }
  0x28   : > { %746 = vperm.xlu1 %4301, %v548_v23   ;;  %741 = vperm.xlu0 %4300, %v547_v24   ;;  %v2864_v23 = vld [vmem:[%s4719_s11 + $0x28] sm:$0xff]  ;;  %v2863_v24 = vld [vmem:[%s4719_s11 + $0x20] sm:$0xff] }
  0x2c   : > { %756 = vperm.xlu1 %4301, %v550_v25   ;;  %751 = vperm.xlu0 %4300, %v549_v26  }
  0x30   : > { %766 = vperm.xlu1 %4301, %v552_v27   ;;  %761 = vperm.xlu0 %4300, %v551_v28   ;;  %v600_v28 = vld [vmem:[%s5949_s1 + $0x28] sm:$0xff] }
  0x34   : > { %776 = vperm.xlu1 %4301, %v554_v29   ;;  %771 = vperm.xlu0 %4300, %v553_v30   ;;  %v601_v30 = vld [vmem:[%s5949_s1 + $0x30] sm:$0xff] }
  0x38   : > { %786 = vperm.xlu1 %4301, %v556_v31   ;;  %781 = vperm.xlu0 %4300, %v555_v32   ;;  %v2866_v31 = vld [vmem:[%s4719_s11 + $0x38] sm:$0xff]  ;;  %v2865_v32 = vld [vmem:[%s4719_s11 + $0x30] sm:$0xff] }
  0x3c   : > { %796 = vperm.xlu1 %4301, %v558_v33   ;;  %791 = vperm.xlu0 %4300, %v557_v34  }
  0x40   : > { %806 = vperm.xlu1 %4301, %v560_v35   ;;  %801 = vperm.xlu0 %4300, %v559_v36   ;;  %v602_v36 = vld [vmem:[%s5949_s1 + $0x38] sm:$0xff] }
  0x44   : > { %816 = vperm.xlu1 %4301, %v562_v37   ;;  %811 = vperm.xlu0 %4300, %v561_v38   ;;  %v603_v38 = vld [vmem:[%s5949_s1 + $0x40] sm:$0xff] }
  0x48   : > { %821 = vperm.xlu1 %4301, %v563_v39   ;;  %901 = vperm.xlu0 %4300, %v579_v40   ;;  %v2868_v39 = vld [vmem:[%s4719_s11 + $0x48] sm:$0xff]  ;;  %v2867_v40 = vld [vmem:[%s4719_s11 + $0x40] sm:$0xff] }
  0x4c   : > { %826 = vperm.xlu1 %4301, %v564_v41   ;;  %906 = vperm.xlu0 %4300, %v580_v42  }
  0x50   : > { %831 = vperm.xlu1 %4301, %v565_v43   ;;  %911 = vperm.xlu0 %4300, %v581_v44   ;;  %v604_v44 = vld [vmem:[%s5949_s1 + $0x48] sm:$0xff] }
  0x54   : > { %836 = vperm.xlu1 %4301, %v566_v45   ;;  %916 = vperm.xlu0 %4300, %v582_v46   ;;  %v605_v46 = vld [vmem:[%s5949_s1 + $0x50] sm:$0xff] }
  0x58   : > { %841 = vperm.xlu1 %4301, %v567_v47   ;;  %921 = vperm.xlu0 %4300, %v583_v48   ;;  %v2870_v47 = vld [vmem:[%s4719_s11 + $0x58] sm:$0xff]  ;;  %v2869_v48 = vld [vmem:[%s4719_s11 + $0x50] sm:$0xff] }
  0x5c   : > { %846 = vperm.xlu1 %4301, %v568_v49   ;;  %926 = vperm.xlu0 %4300, %v584_v50  }
  0x60   : > { %851 = vperm.xlu1 %4301, %v569_v51   ;;  %931 = vperm.xlu0 %4300, %v585_v52   ;;  %v606_v52 = vld [vmem:[%s5949_s1 + $0x58] sm:$0xff] }
  0x64   : > { %856 = vperm.xlu1 %4301, %v570_v53   ;;  %936 = vperm.xlu0 %4300, %v586_v54   ;;  %v607_v54 = vld [vmem:[%s5949_s1 + $0x60] sm:$0xff] }
  0x68   : > { %861 = vperm.xlu1 %4301, %v571_v55   ;;  %941 = vperm.xlu0 %4300, %v587_v56   ;;  %v2872_v55 = vld [vmem:[%s4719_s11 + $0x68] sm:$0xff]  ;;  %v2871_v56 = vld [vmem:[%s4719_s11 + $0x60] sm:$0xff] }
  0x6c   : > { %866 = vperm.xlu1 %4301, %v572_v57   ;;  %946 = vperm.xlu0 %4300, %v588_v58  }
  0x70   : > { %871 = vperm.xlu1 %4301, %v573_v59   ;;  %951 = vperm.xlu0 %4300, %v589_v60   ;;  %v608_v60 = vld [vmem:[%s5949_s1 + $0x68] sm:$0xff] }
  0x74   : > { %876 = vperm.xlu1 %4301, %v574_v61   ;;  %956 = vperm.xlu0 %4300, %v590_v62   ;;  %v609_v62 = vld [vmem:[%s5949_s1 + $0x70] sm:$0xff] }
  0x78   : > { %881 = vperm.xlu1 %4301, %v575_v63   ;;  %961 = vperm.xlu0 %4300, %v591_v0   ;;  %v2874_v63 = vld [vmem:[%s4719_s11 + $0x78] sm:$0xff]  ;;  %v2873_v0 = vld [vmem:[%s4719_s11 + $0x70] sm:$0xff] }
  0x7c   : > { %886 = vperm.xlu1 %4301, %v576_v1   ;;  %966 = vperm.xlu0 %4300, %v592_v2  }
  0x80   : > { %891 = vperm.xlu1 %4301, %v577_v3   ;;  %971 = vperm.xlu0 %4300, %v593_v4   ;;  %v610_v4 = vld [vmem:[%s5949_s1 + $0x78] sm:$0xff] }
  0x84   : > { %896 = vperm.xlu1 %4301, %v578_v5   ;;  %976 = vperm.xlu0 %4300, %v594_v6   ;;  %v611_v6 = vld [vmem:[%s5949_s1 + $0x80] sm:$0xff] }
  0x87   : > { %v672_v10 = vpop.permute.xlu1 %671  ;;  %v662_v11 = vpop.permute.xlu0 %661 }
  0x88   : > { %v979_v12 = vmul.f32 %v662_v11, %v595_v7  ;;  %2898 = vperm.xlu1 %4301, %v2860_v8   ;;  %2893 = vperm.xlu0 %4300, %v2859_v9   ;;  %v981_v21 = vmul.f32 %v672_v10, %v597_v16  ;;  %v2876_v7 = vld [vmem:[%s4719_s11 + $0x88] sm:$0xff]  ;;  %v2875_v8 = vld [vmem:[%s4719_s11 + $0x80] sm:$0xff]  ;;  %v2877_v16 = vld [vmem:[%s4719_s11 + $0x90] sm:$0xff] }
  0x8a   : > { %4102 = vmatprep.mubr.msk.f32.mxu0 %vm1047_vm0, %v979_v12  ;;  %v612_v12 = vld [vmem:[%s5949_s1 + $0x88] sm:$0xff] }
  0x8b   : > { %v677_v17 = vpop.permute.xlu1 %676  ;;  %v667_v18 = vpop.permute.xlu0 %666 }
  0x8c   : > { %v980_v20 = vmul.f32 %v667_v18, %v596_v13  ;;  %2908 = vperm.xlu1 %4301, %v2862_v14   ;;  %2903 = vperm.xlu0 %4300, %v2861_v15   ;;  %v982_v27 = vmul.f32 %v677_v17, %v598_v19  ;;  %v613_v14 = vld [vmem:[%s5949_s1 + $0x90] sm:$0xff]  ;;  %v2878_v15 = vld [vmem:[%s4719_s11 + $0x98] sm:$0xff] }
  0x8e   : > { %4103 = vmatmul.mubr.msk.f32.vlgmr.msra.gmra.mrb[0].mxu0 %vm1047_vm0, %v980_v20  ;;  %v614_v20 = vld [vmem:[%s5949_s1 + $0x98] sm:$0xff] }
  0x8f   : > { %v687_v25 = vpop.permute.xlu1 %686  ;;  %4105 = vmatprep.mubr.msk.f32.mxu0 %vm1047_vm0, %v981_v21  ;;  %v682_v26 = vpop.permute.xlu0 %681 }
  0x90   : > { %v983_v29 = vmul.f32 %v682_v26, %v599_v22  ;;  %2918 = vperm.xlu1 %4301, %v2864_v23   ;;  %2913 = vperm.xlu0 %4300, %v2863_v24   ;;  %v984_v35 = vmul.f32 %v687_v25, %v600_v28  ;;  %v615_v22 = vld [vmem:[%s5949_s1 + $0xa0] sm:$0xff]  ;;  %v2880_v23 = vld [vmem:[%s4719_s11 + $0xa8] sm:$0xff] }
  0x91   : > { %v2879_v24 = vld [vmem:[%s4719_s11 + $0xa0] sm:$0xff]  ;;  %v616_v28 = vld [vmem:[%s5949_s1 + $0xa8] sm:$0xff] }
  0x92   : > { %4106 = vmatmul.mubr.msk.f32.gmra.mrb[2].mxu0 %vm1047_vm0, %v982_v27 }
  0x93   : > { %v697_v33 = vpop.permute.xlu1 %696  ;;  %4108 = vmatprep.mubr.msk.f32.mxu0 %vm1047_vm0, %v983_v29  ;;  %v692_v34 = vpop.permute.xlu0 %691 }
  0x94   : > { %v985_v37 = vmul.f32 %v692_v34, %v601_v30  ;;  %2928 = vperm.xlu1 %4301, %v2866_v31   ;;  %2923 = vperm.xlu0 %4300, %v2865_v32   ;;  %v986_v43 = vmul.f32 %v697_v33, %v602_v36  ;;  %v617_v30 = vld [vmem:[%s5949_s1 + $0xb0] sm:$0xff]  ;;  %v2882_v31 = vld [vmem:[%s4719_s11 + $0xb8] sm:$0xff] }
  0x95   : > { %v2881_v32 = vld [vmem:[%s4719_s11 + $0xb0] sm:$0xff]  ;;  %v618_v36 = vld [vmem:[%s5949_s1 + $0xb8] sm:$0xff] }
  0x96   : > { %4109 = vmatmul.mubr.msk.f32.gmra.mrb[4].mxu0 %vm1047_vm0, %v984_v35 }
  0x97   : > { %v707_v41 = vpop.permute.xlu1 %706  ;;  %4111 = vmatprep.mubr.msk.f32.mxu0 %vm1047_vm0, %v985_v37  ;;  %v702_v42 = vpop.permute.xlu0 %701 }
  0x98   : > { %v987_v45 = vmul.f32 %v702_v42, %v603_v38  ;;  %2938 = vperm.xlu1 %4301, %v2868_v39   ;;  %2933 = vperm.xlu0 %4300, %v2867_v40   ;;  %v988_v51 = vmul.f32 %v707_v41, %v604_v44  ;;  %v619_v38 = vld [vmem:[%s5949_s1 + $0xc0] sm:$0xff]  ;;  %v2884_v39 = vld [vmem:[%s4719_s11 + $0xc8] sm:$0xff] }
  0x99   : > { %v2883_v40 = vld [vmem:[%s4719_s11 + $0xc0] sm:$0xff]  ;;  %v620_v44 = vld [vmem:[%s5949_s1 + $0xc8] sm:$0xff] }
  0x9a   : > { %4112 = vmatmul.mubr.msk.f32.gmra.mrb[6].mxu0 %vm1047_vm0, %v986_v43 }
  0x9b   : > { %v717_v49 = vpop.permute.xlu1 %716  ;;  %4114 = vmatprep.mubr.msk.f32.mxu0 %vm1047_vm0, %v987_v45  ;;  %v712_v50 = vpop.permute.xlu0 %711 }
  0x9c   : > { %v989_v53 = vmul.f32 %v712_v50, %v605_v46  ;;  %2948 = vperm.xlu1 %4301, %v2870_v47   ;;  %2943 = vperm.xlu0 %4300, %v2869_v48   ;;  %v990_v59 = vmul.f32 %v717_v49, %v606_v52  ;;  %v621_v46 = vld [vmem:[%s5949_s1 + $0xd0] sm:$0xff]  ;;  %v2886_v47 = vld [vmem:[%s4719_s11 + $0xd8] sm:$0xff] }
  0x9d   : > { %v2885_v48 = vld [vmem:[%s4719_s11 + $0xd0] sm:$0xff]  ;;  %v622_v52 = vld [vmem:[%s5949_s1 + $0xd8] sm:$0xff] }
  0x9e   : > { %4115 = vmatmul.mubr.msk.f32.gmra.mrb[8].mxu0 %vm1047_vm0, %v988_v51 }
  0x9f   : > { %v727_v57 = vpop.permute.xlu1 %726  ;;  %4117 = vmatprep.mubr.msk.f32.mxu0 %vm1047_vm0, %v989_v53  ;;  %v722_v58 = vpop.permute.xlu0 %721 }
  0xa0   : > { %v991_v61 = vmul.f32 %v722_v58, %v607_v54  ;;  %2958 = vperm.xlu1 %4301, %v2872_v55   ;;  %2953 = vperm.xlu0 %4300, %v2871_v56   ;;  %v992_v3 = vmul.f32 %v727_v57, %v608_v60  ;;  %v623_v54 = vld [vmem:[%s5949_s1 + $0xe0] sm:$0xff]  ;;  %v2888_v55 = vld [vmem:[%s4719_s11 + $0xe8] sm:$0xff] }
  0xa1   : > { %v2887_v56 = vld [vmem:[%s4719_s11 + $0xe0] sm:$0xff]  ;;  %v624_v60 = vld [vmem:[%s5949_s1 + $0xe8] sm:$0xff] }
  0xa2   : > { %4118 = vmatmul.mubr.msk.f32.gmra.mrb[10].mxu0 %vm1047_vm0, %v990_v59 }
  0xa3   : > { %v737_v1 = vpop.permute.xlu1 %736  ;;  %4120 = vmatprep.mubr.msk.f32.mxu0 %vm1047_vm0, %v991_v61  ;;  %v732_v2 = vpop.permute.xlu0 %731 }
  0xa4   : > { %v993_v5 = vmul.f32 %v732_v2, %v609_v62  ;;  %2968 = vperm.xlu1 %4301, %v2874_v63   ;;  %2963 = vperm.xlu0 %4300, %v2873_v0   ;;  %v994_v11 = vmul.f32 %v737_v1, %v610_v4  ;;  %v625_v62 = vld [vmem:[%s5949_s1 + $0xf0] sm:$0xff]  ;;  %v2890_v63 = vld [vmem:[%s4719_s11 + $0xf8] sm:$0xff] }
  0xa5   : > { %v2889_v0 = vld [vmem:[%s4719_s11 + $0xf0] sm:$0xff] }
  0xa6   : > { %4121 = vmatmul.mubr.msk.f32.gmra.mrb[12].mxu0 %vm1047_vm0, %v992_v3 }
  0xa7   : > { %v747_v9 = vpop.permute.xlu1 %746  ;;  %4123 = vmatprep.mubr.msk.f32.mxu0 %vm1047_vm0, %v993_v5  ;;  %v742_v10 = vpop.permute.xlu0 %741  ;;  %v626_v5 = vld [vmem:[%s5949_s1 + $0xf8] sm:$0xff] }
  0xa8   : > { %v995_v13 = vmul.f32 %v742_v10, %v611_v6  ;;  %2978 = vperm.xlu1 %4301, %v2876_v7   ;;  %2973 = vperm.xlu0 %4300, %v2875_v8   ;;  %v996_v19 = vmul.f32 %v747_v9, %v612_v12  ;;  %v627_v6 = vld [vmem:[%s5949_s1 + $0x100] sm:$0xff] }
  0xa9   : > { %v643_v7 = vld [vmem:[%s5949_s1 + $0x180] sm:$0xff] }
  0xaa   : > { %4124 = vmatmul.mubr.msk.f32.gmra.mrb[14].mxu0 %vm1047_vm0, %v994_v11 }
  0xab   : > { %v757_v17 = vpop.permute.xlu1 %756  ;;  %4126 = vmatprep.mubr.msk.f32.mxu0 %vm1047_vm0, %v995_v13  ;;  %v752_v18 = vpop.permute.xlu0 %751  ;;  %v628_v13 = vld [vmem:[%s5949_s1 + $0x108] sm:$0xff] }
  0xac   : > { %v997_v21 = vmul.f32 %v752_v18, %v613_v14  ;;  %2988 = vperm.xlu1 %4301, %v2878_v15   ;;  %2983 = vperm.xlu0 %4300, %v2877_v16   ;;  %v998_v27 = vmul.f32 %v757_v17, %v614_v20  ;;  %v644_v14 = vld [vmem:[%s5949_s1 + $0x188] sm:$0xff]  ;;  %v645_v20 = vld [vmem:[%s5949_s1 + $0x190] sm:$0xff] }
  0xae   : > { %4127 = vmatmul.mubr.msk.f32.gmra.mrb[16].mxu0 %vm1047_vm0, %v996_v19  ;;  %v629_v19 = vld [vmem:[%s5949_s1 + $0x110] sm:$0xff] }
  0xaf   : > { %v767_v25 = vpop.permute.xlu1 %766  ;;  %4129 = vmatprep.mubr.msk.f32.mxu0 %vm1047_vm0, %v997_v21  ;;  %v762_v26 = vpop.permute.xlu0 %761 }
  0xb0   : > { %v999_v29 = vmul.f32 %v762_v26, %v615_v22  ;;  %2998 = vperm.xlu1 %4301, %v2880_v23   ;;  %2993 = vperm.xlu0 %4300, %v2879_v24   ;;  %v1000_v35 = vmul.f32 %v767_v25, %v616_v28  ;;  %v630_v25 = vld [vmem:[%s5949_s1 + $0x118] sm:$0xff] }
  0xb1   : > { %v646_v26 = vld [vmem:[%s5949_s1 + $0x198] sm:$0xff] }
  0xb2   : > { %4130 = vmatmul.mubr.msk.f32.gmra.mrb[18].mxu0 %vm1047_vm0, %v998_v27 }
  0xb3   : > { %v777_v33 = vpop.permute.xlu1 %776  ;;  %4132 = vmatprep.mubr.msk.f32.mxu0 %vm1047_vm0, %v999_v29  ;;  %v772_v34 = vpop.permute.xlu0 %771 }
  0xb4   : > { %v1001_v37 = vmul.f32 %v772_v34, %v617_v30  ;;  %3008 = vperm.xlu1 %4301, %v2882_v31   ;;  %3003 = vperm.xlu0 %4300, %v2881_v32   ;;  %v1002_v43 = vmul.f32 %v777_v33, %v618_v36  ;;  %v631_v31 = vld [vmem:[%s5949_s1 + $0x120] sm:$0xff] }
  0xb5   : > { %v647_v32 = vld [vmem:[%s5949_s1 + $0x1a0] sm:$0xff] }
  0xb6   : > { %4133 = vmatmul.mubr.msk.f32.gmra.mrb[20].mxu0 %vm1047_vm0, %v1000_v35 }
  0xb7   : > { %v787_v41 = vpop.permute.xlu1 %786  ;;  %4135 = vmatprep.mubr.msk.f32.mxu0 %vm1047_vm0, %v1001_v37  ;;  %v782_v42 = vpop.permute.xlu0 %781  ;;  %v632_v37 = vld [vmem:[%s5949_s1 + $0x128] sm:$0xff] }
  0xb8   : > { %v1003_v45 = vmul.f32 %v782_v42, %v619_v38  ;;  %3018 = vperm.xlu1 %4301, %v2884_v39   ;;  %3013 = vperm.xlu0 %4300, %v2883_v40   ;;  %v1004_v51 = vmul.f32 %v787_v41, %v620_v44  ;;  %v648_v38 = vld [vmem:[%s5949_s1 + $0x1a8] sm:$0xff]  ;;  %v649_v44 = vld [vmem:[%s5949_s1 + $0x1b0] sm:$0xff] }
  0xba   : > { %4136 = vmatmul.mubr.msk.f32.gmra.mrb[22].mxu0 %vm1047_vm0, %v1002_v43  ;;  %v633_v43 = vld [vmem:[%s5949_s1 + $0x130] sm:$0xff] }
  0xbb   : > { %v797_v49 = vpop.permute.xlu1 %796  ;;  %4138 = vmatprep.mubr.msk.f32.mxu0 %vm1047_vm0, %v1003_v45  ;;  %v792_v50 = vpop.permute.xlu0 %791 }
  0xbc   : > { %v1005_v53 = vmul.f32 %v792_v50, %v621_v46  ;;  %3028 = vperm.xlu1 %4301, %v2886_v47   ;;  %3023 = vperm.xlu0 %4300, %v2885_v48   ;;  %v1006_v59 = vmul.f32 %v797_v49, %v622_v52  ;;  %v634_v49 = vld [vmem:[%s5949_s1 + $0x138] sm:$0xff] }
  0xbd   : > { %v650_v50 = vld [vmem:[%s5949_s1 + $0x1b8] sm:$0xff] }
  0xbe   : > { %4139 = vmatmul.mubr.msk.f32.gmra.mrb[24].mxu0 %vm1047_vm0, %v1004_v51 }
  0xbf   : > { %v807_v57 = vpop.permute.xlu1 %806  ;;  %4141 = vmatprep.mubr.msk.f32.mxu0 %vm1047_vm0, %v1005_v53  ;;  %v802_v58 = vpop.permute.xlu0 %801 }
  0xc0   : > { %v1007_v61 = vmul.f32 %v802_v58, %v623_v54  ;;  %3038 = vperm.xlu1 %4301, %v2888_v55   ;;  %3033 = vperm.xlu0 %4300, %v2887_v56   ;;  %v1008_v3 = vmul.f32 %v807_v57, %v624_v60  ;;  %v635_v55 = vld [vmem:[%s5949_s1 + $0x140] sm:$0xff] }
  0xc1   : > { %v651_v56 = vld [vmem:[%s5949_s1 + $0x1c0] sm:$0xff] }
  0xc2   : > { %4142 = vmatmul.mubr.msk.f32.gmra.mrb[26].mxu0 %vm1047_vm0, %v1006_v59 }
  0xc3   : > { %v817_v1 = vpop.permute.xlu1 %816  ;;  %4144 = vmatprep.mubr.msk.f32.mxu0 %vm1047_vm0, %v1007_v61  ;;  %v812_v2 = vpop.permute.xlu0 %811  ;;  %v636_v61 = vld [vmem:[%s5949_s1 + $0x148] sm:$0xff] }
  0xc4   : > { %v1009_v4 = vmul.f32 %v812_v2, %v625_v62  ;;  %3048 = vperm.xlu1 %4301, %v2890_v63   ;;  %3043 = vperm.xlu0 %4300, %v2889_v0   ;;  %v1010_v10 = vmul.f32 %v817_v1, %v626_v5  ;;  %v652_v62 = vld [vmem:[%s5949_s1 + $0x1c8] sm:$0xff] }
  0xc6   : > { %4145 = vmatmul.mubr.msk.f32.gmra.mrb[28].mxu0 %vm1047_vm0, %v1008_v3  ;;  %v637_v3 = vld [vmem:[%s5949_s1 + $0x150] sm:$0xff] }
  0xc7   : > { %v822_v8 = vpop.permute.xlu1 %821  ;;  %4147 = vmatprep.mubr.msk.f32.mxu0 %vm1047_vm0, %v1009_v4  ;;  %v902_v9 = vpop.permute.xlu0 %901  ;;  %v653_v4 = vld [vmem:[%s5949_s1 + $0x1d0] sm:$0xff] }
  0xc8   : > { %v1011_v11 = vmul.f32 %v822_v8, %v627_v6  ;;  %v1027_v12 = vmul.f32 %v902_v9, %v643_v7  ;;  %v638_v9 = vld [vmem:[%s5949_s1 + $0x158] sm:$0xff] }
  0xca   : > { %4148 = vmatmul.mubr.msk.f32.gmra.mrb[30].mxu0 %vm1047_vm0, %v1010_v10  ;;  %4174 = vmatprep.mubr.msk.f32.mxu1 %vm1047_vm0, %v1027_v12  ;;  %v654_v10 = vld [vmem:[%s5949_s1 + $0x1d8] sm:$0xff] }
  0xcb   : > { %v827_v15 = vpop.permute.xlu1 %826  ;;  %4150 = vmatprep.mubr.msk.f32.mxu0 %vm1047_vm0, %v1011_v11  ;;  %v907_v16 = vpop.permute.xlu0 %906 }
  0xcc   : > { %v1012_v17 = vmul.f32 %v827_v15, %v628_v13  ;;  %v1028_v18 = vmul.f32 %v907_v16, %v644_v14  ;;  %v639_v15 = vld [vmem:[%s5949_s1 + $0x160] sm:$0xff] }
  0xcd   : > { %v655_v16 = vld [vmem:[%s5949_s1 + $0x1e0] sm:$0xff] }
  0xce   : > { %4151 = vmatmul.mubr.msk.f32.gmra.mrb[32].mxu0 %vm1047_vm0, %v1012_v17  ;;  %4175 = vmatmul.mubr.msk.f32.vlgmr.msra.gmra.mrb[0].mxu1 %vm1047_vm0, %v1028_v18 }
  0xcf   : > { %v832_v21 = vpop.permute.xlu1 %831  ;;  %v912_v22 = vpop.permute.xlu0 %911 }
  0xd0   : > { %v1013_v23 = vmul.f32 %v832_v21, %v629_v19  ;;  %v1029_v24 = vmul.f32 %v912_v22, %v645_v20  ;;  %v640_v21 = vld [vmem:[%s5949_s1 + $0x168] sm:$0xff] }
  0xd1   : > { %v656_v22 = vld [vmem:[%s5949_s1 + $0x1e8] sm:$0xff] }
  0xd2   : > { %4153 = vmatprep.mubr.msk.f32.mxu0 %vm1047_vm0, %v1013_v23  ;;  %4177 = vmatprep.mubr.msk.f32.mxu1 %vm1047_vm0, %v1029_v24 }
  0xd3   : > { %v837_v27 = vpop.permute.xlu1 %836  ;;  %v917_v28 = vpop.permute.xlu0 %916 }
  0xd4   : > { %v1014_v29 = vmul.f32 %v837_v27, %v630_v25  ;;  %v1030_v30 = vmul.f32 %v917_v28, %v646_v26  ;;  %v641_v27 = vld [vmem:[%s5949_s1 + $0x170] sm:$0xff] }
  0xd5   : > { %v657_v28 = vld [vmem:[%s5949_s1 + $0x1f0] sm:$0xff] }
  0xd6   : > { %4154 = vmatmul.mubr.msk.f32.gmra.mrb[34].mxu0 %vm1047_vm0, %v1014_v29  ;;  %4178 = vmatmul.mubr.msk.f32.gmra.mrb[2].mxu1 %vm1047_vm0, %v1030_v30 }
  0xd7   : > { %v842_v33 = vpop.permute.xlu1 %841  ;;  %v922_v34 = vpop.permute.xlu0 %921 }
  0xd8   : > { %v1015_v35 = vmul.f32 %v842_v33, %v631_v31  ;;  %v1031_v36 = vmul.f32 %v922_v34, %v647_v32  ;;  %v642_v33 = vld [vmem:[%s5949_s1 + $0x178] sm:$0xff] }
  0xd9   : > { %v658_v34 = vld [vmem:[%s5949_s1 + $0x1f8] sm:$0xff] }
  0xda   : > { %4156 = vmatprep.mubr.msk.f32.mxu0 %vm1047_vm0, %v1015_v35  ;;  %4180 = vmatprep.mubr.msk.f32.mxu1 %vm1047_vm0, %v1031_v36 }
  0xdb   : > { %v847_v39 = vpop.permute.xlu1 %846  ;;  %v927_v40 = vpop.permute.xlu0 %926 }
  0xdc   : > { %v1016_v41 = vmul.f32 %v847_v39, %v632_v37  ;;  %v1032_v42 = vmul.f32 %v927_v40, %v648_v38  ;;  %v4304_v39 = vld [vmem:[%s4572_s18 + $0x4] ss:$16 sps:$4 sm:$0xff]   ;;  %v4328_v40 = vld [vmem:[%s4572_s18 + $0xc] ss:$16 sps:$4 sm:$0xff]  }
  0xde   : > { %4157 = vmatmul.mubr.msk.f32.gmra.mrb[36].mxu0 %vm1047_vm0, %v1016_v41  ;;  %4181 = vmatmul.mubr.msk.f32.gmra.mrb[4].mxu1 %vm1047_vm0, %v1032_v42 }
  0xdf   : > { %v852_v45 = vpop.permute.xlu1 %851  ;;  %v932_v46 = vpop.permute.xlu0 %931 }
  0xe0   : > { %v1017_v47 = vmul.f32 %v852_v45, %v633_v43  ;;  %v1033_v48 = vmul.f32 %v932_v46, %v649_v44 }
  0xe2   : > { %4159 = vmatprep.mubr.msk.f32.mxu0 %vm1047_vm0, %v1017_v47  ;;  %4183 = vmatprep.mubr.msk.f32.mxu1 %vm1047_vm0, %v1033_v48 }
  0xe3   : > { %v857_v51 = vpop.permute.xlu1 %856  ;;  %v937_v52 = vpop.permute.xlu0 %936 }
  0xe4   : > { %v1018_v53 = vmul.f32 %v857_v51, %v634_v49  ;;  %v1034_v54 = vmul.f32 %v937_v52, %v650_v50 }
  0xe6   : > { %4160 = vmatmul.mubr.msk.f32.gmra.mrb[38].mxu0 %vm1047_vm0, %v1018_v53  ;;  %4184 = vmatmul.mubr.msk.f32.gmra.mrb[6].mxu1 %vm1047_vm0, %v1034_v54 }
  0xe7   : > { %v862_v57 = vpop.permute.xlu1 %861  ;;  %v942_v58 = vpop.permute.xlu0 %941 }
  0xe8   : > { %v1019_v59 = vmul.f32 %v862_v57, %v635_v55  ;;  %v1035_v60 = vmul.f32 %v942_v58, %v651_v56 }
  0xea   : > { %4162 = vmatprep.mubr.msk.f32.mxu0 %vm1047_vm0, %v1019_v59  ;;  %4186 = vmatprep.mubr.msk.f32.mxu1 %vm1047_vm0, %v1035_v60 }
  0xeb   : > { %v867_v63 = vpop.permute.xlu1 %866  ;;  %v947_v0 = vpop.permute.xlu0 %946 }
  0xec   : > { %v1020_v1 = vmul.f32 %v867_v63, %v636_v61  ;;  %v1036_v2 = vmul.f32 %v947_v0, %v652_v62 }
  0xee   : > { %4163 = vmatmul.mubr.msk.f32.gmra.mrb[40].mxu0 %vm1047_vm0, %v1020_v1  ;;  %4187 = vmatmul.mubr.msk.f32.gmra.mrb[8].mxu1 %vm1047_vm0, %v1036_v2 }
  0xef   : > { %v872_v5 = vpop.permute.xlu1 %871  ;;  %v952_v6 = vpop.permute.xlu0 %951 }
  0xf0   : > { %v1021_v7 = vmul.f32 %v872_v5, %v637_v3  ;;  %v1037_v8 = vmul.f32 %v952_v6, %v653_v4 }
  0xf2   : > { %4165 = vmatprep.mubr.msk.f32.mxu0 %vm1047_vm0, %v1021_v7  ;;  %4189 = vmatprep.mubr.msk.f32.mxu1 %vm1047_vm0, %v1037_v8 }
  0xf3   : > { %v877_v11 = vpop.permute.xlu1 %876  ;;  %v957_v12 = vpop.permute.xlu0 %956 }
  0xf4   : > { %v1022_v13 = vmul.f32 %v877_v11, %v638_v9  ;;  %v1038_v14 = vmul.f32 %v957_v12, %v654_v10 }
  0xf6   : > { %4166 = vmatmul.mubr.msk.f32.gmra.mrb[42].mxu0 %vm1047_vm0, %v1022_v13  ;;  %4190 = vmatmul.mubr.msk.f32.gmra.mrb[10].mxu1 %vm1047_vm0, %v1038_v14 }
  0xf7   : > { %v882_v17 = vpop.permute.xlu1 %881  ;;  %v962_v18 = vpop.permute.xlu0 %961 }
  0xf8   : > { %v1023_v19 = vmul.f32 %v882_v17, %v639_v15  ;;  %v1039_v20 = vmul.f32 %v962_v18, %v655_v16 }
  0xfa   : > { %4168 = vmatprep.mubr.msk.f32.mxu0 %vm1047_vm0, %v1023_v19  ;;  %4192 = vmatprep.mubr.msk.f32.mxu1 %vm1047_vm0, %v1039_v20 }
  0xfb   : > { %v887_v23 = vpop.permute.xlu1 %886  ;;  %v967_v24 = vpop.permute.xlu0 %966 }
  0xfc   : > { %v1024_v25 = vmul.f32 %v887_v23, %v640_v21  ;;  %v1040_v26 = vmul.f32 %v967_v24, %v656_v22  ;;  %v2495_v22 = vld [vmem:[%s5955_s7] sm:$0xff]  ;;  %v2496_v23 = vld [vmem:[%s5955_s7 + $0x8] sm:$0xff] }
  0xfe   : > { %4169 = vmatmul.mubr.msk.f32.gmra.mrb[44].mxu0 %vm1047_vm0, %v1024_v25  ;;  %4193 = vmatmul.mubr.msk.f32.gmra.mrb[12].mxu1 %vm1047_vm0, %v1040_v26 }
  0xff   : > { %v892_v29 = vpop.permute.xlu1 %891  ;;  %v972_v30 = vpop.permute.xlu0 %971 }
 0x100   : > { %v1025_v31 = vmul.f32 %v892_v29, %v641_v27  ;;  %v1041_v32 = vmul.f32 %v972_v30, %v657_v28  ;;  %v4262_v27 = vpack.c.bf16 %v2496_v23, %v2495_v22  ;;  %v4302_v30 = vld [vmem:[%s4572_s18] ss:$16 sps:$4 sm:$0xff]  }
 0x102   : > { %4171 = vmatprep.mubr.msk.f32.mxu0 %vm1047_vm0, %v1025_v31  ;;  %4195 = vmatprep.mubr.msk.f32.mxu1 %vm1047_vm0, %v1041_v32  ;;  %v2497_v31 = vld [vmem:[%s5955_s7 + $0x10] sm:$0xff]  ;;  %v2498_v32 = vld [vmem:[%s5955_s7 + $0x18] sm:$0xff] }
 0x103   : > { %v897_v35 = vpop.permute.xlu1 %896  ;;  %v977_v36 = vpop.permute.xlu0 %976 }
 0x104   : > { %v1026_v37 = vmul.f32 %v897_v35, %v642_v33  ;;  %v1042_v38 = vmul.f32 %v977_v36, %v658_v34  ;;  %v4305_v35 = vld [vmem:[%s4572_s18 + $0x24] ss:$16 sps:$4 sm:$0xff]  }
 0x106   : > { %4172 = vmatmul.mubr.msk.f32.gmra.mrb[46].mxu0 %vm1047_vm0, %v1026_v37  ;;  %4196 = vmatmul.mubr.msk.f32.gmra.mrb[14].mxu1 %vm1047_vm0, %v1042_v38  ;;  %v4266_v38 = vpack.c.bf16 %v2498_v32, %v2497_v31  ;;  %v4326_v31 = vld [vmem:[%s4572_s18 + $0x8] ss:$16 sps:$4 sm:$0xff]   ;;  %v4332_v32 = vld [vmem:[%s4572_s18 + $0x2c] ss:$16 sps:$4 sm:$0xff]  }
 0x107   : > { %2105 = vmatprep.mubr.bf16.mxu1 %v4304_v39  ;;  %2266 = vmatprep.mubr.bf16.mxu0 %v4328_v40 }
 0x161   : > { %v4104_v41 = vpop.f32.mrb[0].mxu0 }
 0x162   : > { %v1306_v42 = vpop.f32.mrb[1].mxu0 }
 0x163   : > { %v1625_v43 = vpack.c.bf16 %v4104_v41, %v1306_v42  ;;  %v4307_v41 = vld [vmem:[%s4572_s18 + $0x20] ss:$16 sps:$4 sm:$0xff]  }
 0x165   : > { %v4107_v44 = vpop.f32.mrb[2].mxu0 }
 0x166   : > { %v1316_v45 = vpop.f32.mrb[3].mxu0 }
 0x167   : > { %v1626_v46 = vpack.c.bf16 %v4107_v44, %v1316_v45  ;;  %v4308_v44 = vld [vmem:[%s4572_s18 + $0x44] ss:$16 sps:$4 sm:$0xff]  }
 0x169   : > { %v4110_v47 = vpop.f32.mrb[4].mxu0 }
 0x16a   : > { %v1326_v48 = vpop.f32.mrb[5].mxu0 }
 0x16b   : > { %v1627_v49 = vpack.c.bf16 %v4110_v47, %v1326_v48 }
 0x16d   : > { %v4113_v50 = vpop.f32.mrb[6].mxu0 }
 0x16e   : > { %v1336_v51 = vpop.f32.mrb[7].mxu0 }
 0x16f   : > { %v1628_v52 = vpack.c.bf16 %v4113_v50, %v1336_v51 }
 0x171   : > { %v4116_v53 = vpop.f32.mrb[8].mxu0 }
 0x172   : > { %v1346_v54 = vpop.f32.mrb[9].mxu0 }
 0x173   : > { %v1629_v55 = vpack.c.bf16 %v4116_v53, %v1346_v54 }
 0x175   : > { %v4119_v56 = vpop.f32.mrb[10].mxu0 }
 0x176   : > { %v1356_v57 = vpop.f32.mrb[11].mxu0 }
 0x177   : > { %v1630_v58 = vpack.c.bf16 %v4119_v56, %v1356_v57  ;;  %v4313_v57 = vld [vmem:[%s4572_s18 + $0x60] ss:$16 sps:$4 sm:$0xff]  }
 0x179   : > { %v4122_v59 = vpop.f32.mrb[12].mxu0 }
 0x17a   : > { %v1366_v60 = vpop.f32.mrb[13].mxu0 }
 0x17b   : > { %v1631_v61 = vpack.c.bf16 %v4122_v59, %v1366_v60  ;;  %v4314_v60 = vld [vmem:[%s4572_s18 + $0x84] ss:$16 sps:$4 sm:$0xff]  }
 0x17d   : > { %v4125_v62 = vpop.f32.mrb[14].mxu0 }
 0x17e   : > { %v1376_v63 = vpop.f32.mrb[15].mxu0 }
 0x17f   : > { %v1632_v0 = vpack.c.bf16 %v4125_v62, %v1376_v63 }
 0x181   : > { %v4128_v1 = vpop.f32.mrb[16].mxu0 }
 0x182   : > { %v1386_v2 = vpop.f32.mrb[17].mxu0 }
 0x183   : > { %v1633_v3 = vpack.c.bf16 %v4128_v1, %v1386_v2  ;;  %v4316_v1 = vld [vmem:[%s4572_s18 + $0x80] ss:$16 sps:$4 sm:$0xff]  }
 0x185   : > { %v4131_v4 = vpop.f32.mrb[18].mxu0  ;;  %3834 = vmatprep.subr.bf16.mxu1 %v1633_v3 }
 0x186   : > { %v1396_v5 = vpop.f32.mrb[19].mxu0  ;;  %3835 = vmatpush3.bf16.msra.mxu1 %v1625_v43 }
 0x187   : > { %v1634_v6 = vpack.c.bf16 %v4131_v4, %v1396_v5  ;;  %v4317_v4 = vld [vmem:[%s4572_s18 + $0xa4] ss:$16 sps:$4 sm:$0xff]  }
 0x189   : > { %v4134_v7 = vpop.f32.mrb[20].mxu0  ;;  %3836 = vmatprep.subr.bf16.mxu1 %v1634_v6 }
 0x18a   : > { %v1406_v8 = vpop.f32.mrb[21].mxu0  ;;  %3837 = vmatpush3.bf16.msra.mxu1 %v1626_v46 }
 0x18b   : > { %v1635_v9 = vpack.c.bf16 %v4134_v7, %v1406_v8 }
 0x18d   : > { %v4137_v10 = vpop.f32.mrb[22].mxu0  ;;  %3838 = vmatprep.subr.bf16.mxu1 %v1635_v9  ;;  %v4319_v9 = vld [vmem:[%s4572_s18 + $0xa0] ss:$16 sps:$4 sm:$0xff]  }
 0x18e   : > { %v1416_v11 = vpop.f32.mrb[23].mxu0  ;;  %3839 = vmatpush3.bf16.msra.mxu1 %v1627_v49  ;;  %v4310_v49 = vld [vmem:[%s4572_s18 + $0x40] ss:$16 sps:$4 sm:$0xff]  }
 0x18f   : > { %v1636_v12 = vpack.c.bf16 %v4137_v10, %v1416_v11 }
 0x191   : > { %v4140_v13 = vpop.f32.mrb[24].mxu0  ;;  %3840 = vmatprep.subr.bf16.mxu1 %v1636_v12  ;;  %v4320_v12 = vld [vmem:[%s4572_s18 + $0xc4] ss:$16 sps:$4 sm:$0xff]  }
 0x192   : > { %v1426_v14 = vpop.f32.mrb[25].mxu0  ;;  %3841 = vmatpush3.bf16.msra.mxu1 %v1628_v52  ;;  %v4311_v52 = vld [vmem:[%s4572_s18 + $0x64] ss:$16 sps:$4 sm:$0xff]  }
 0x193   : > { %v1637_v15 = vpack.c.bf16 %v4140_v13, %v1426_v14 }
 0x195   : > { %v4143_v16 = vpop.f32.mrb[26].mxu0  ;;  %3842 = vmatprep.subr.bf16.mxu1 %v1637_v15 }
 0x196   : > { %v1436_v17 = vpop.f32.mrb[27].mxu0  ;;  %3843 = vmatpush3.bf16.msra.mxu1 %v1629_v55 }
 0x197   : > { %v1638_v18 = vpack.c.bf16 %v4143_v16, %v1436_v17  ;;  %v4322_v17 = vld [vmem:[%s4572_s18 + $0xc0] ss:$16 sps:$4 sm:$0xff]  }
 0x199   : > { %v4146_v19 = vpop.f32.mrb[28].mxu0  ;;  %3844 = vmatprep.subr.bf16.mxu1 %v1638_v18 }
 0x19a   : > { %v1446_v20 = vpop.f32.mrb[29].mxu0  ;;  %3845 = vmatpush3.bf16.msra.mxu1 %v1630_v58 }
 0x19b   : > { %v1639_v21 = vpack.c.bf16 %v4146_v19, %v1446_v20  ;;  %v4323_v20 = vld [vmem:[%s4572_s18 + $0xe4] ss:$16 sps:$4 sm:$0xff]  }
 0x19d   : > { %v4149_v24 = vpop.f32.mrb[30].mxu0  ;;  %3846 = vmatprep.subr.bf16.mxu1 %v1639_v21 }
 0x19e   : > { %v1456_v25 = vpop.f32.mrb[31].mxu0  ;;  %3847 = vmatpush3.bf16.msra.mxu1 %v1631_v61 }
 0x19f   : > { %v1640_v26 = vpack.c.bf16 %v4149_v24, %v1456_v25  ;;  %v4325_v25 = vld [vmem:[%s4572_s18 + $0xe0] ss:$16 sps:$4 sm:$0xff]  }
 0x1a1   : > { %v4152_v28 = vpop.f32.mrb[32].mxu0  ;;  %v4176_v29 = vpop.f32.mrb[0].mxu1  ;;  %3848 = vmatprep.subr.bf16.mxu1 %v1640_v26 }
 0x1a2   : > { %v1466_v33 = vpop.f32.mrb[33].mxu0  ;;  %v1546_v34 = vpop.f32.mrb[1].mxu1  ;;  %3849 = vmatpush3.bf16.msra.mxu1 %v1632_v0 }
 0x1a3   : > { %v1641_v36 = vpack.c.bf16 %v4152_v28, %v1466_v33  ;;  %v1649_v37 = vpack.c.bf16 %v4176_v29, %v1546_v34  ;;  %4263 = vmatprep.subr.bf16.mxu1 %v4262_v27  ;;  %v4329_v28 = vld [vmem:[%s4572_s18 + $0x104] ss:$16 sps:$4 sm:$0xff]   ;;  %v4331_v33 = vld [vmem:[%s4572_s18 + $0x100] ss:$16 sps:$4 sm:$0xff]  }
 0x1a4   : > { %v4335_v34 = vld [vmem:[%s4572_s18 + $0x124] ss:$16 sps:$4 sm:$0xff]  }
 0x1a5   : > { %2106 = vmatmul.mubr.bf16.vlgmr.msra.gmra.mrb[16].mxu1 %v4302_v30  ;;  %3946 = vmatprep.subr.bf16.mxu0 %v1649_v37  ;;  %v4337_v37 = vld [vmem:[%s4572_s18 + $0x120] ss:$16 sps:$4 sm:$0xff]  }
 0x1a6   : > { %3947 = vmatpush3.bf16.msra.mxu0 %v1641_v36  ;;  %2113 = vmatprep.mubr.bf16.mxu1 %v4305_v35  ;;  %v4334_v35 = vld [vmem:[%s4572_s18 + $0x28] ss:$16 sps:$4 sm:$0xff]   ;;  %v4338_v36 = vld [vmem:[%s4572_s18 + $0x4c] ss:$16 sps:$4 sm:$0xff]  }
 0x1a7   : > { %4265 = vmatpush3.bf16.msra.mxu1 %v4262_v27 }
 0x1a8   : > { %4267 = vmatprep.subr.bf16.mxu1 %v4266_v38 }
 0x1a9   : > { %v4155_v39 = vpop.f32.mrb[34].mxu0  ;;  %v4179_v40 = vpop.f32.mrb[2].mxu1 }
 0x1aa   : > { %v1476_v42 = vpop.f32.mrb[35].mxu0  ;;  %v1556_v43 = vpop.f32.mrb[3].mxu1 }
 0x1ab   : > { %v1642_v45 = vpack.c.bf16 %v4155_v39, %v1476_v42  ;;  %v1650_v46 = vpack.c.bf16 %v4179_v40, %v1556_v43  ;;  %4269 = vmatpush3.bf16.msra.mxu1 %v4266_v38  ;;  %v4341_v38 = vld [vmem:[%s4572_s18 + $0x144] ss:$16 sps:$4 sm:$0xff]   ;;  %v4340_v39 = vld [vmem:[%s4572_s18 + $0x48] ss:$16 sps:$4 sm:$0xff]   ;;  %v4344_v40 = vld [vmem:[%s4572_s18 + $0x6c] ss:$16 sps:$4 sm:$0xff]  }
 0x1ac   : > { %v4347_v42 = vld [vmem:[%s4572_s18 + $0x164] ss:$16 sps:$4 sm:$0xff]   ;;  %v4346_v43 = vld [vmem:[%s4572_s18 + $0x68] ss:$16 sps:$4 sm:$0xff]  }
 0x1ad   : > { %2114 = vmatmul.mubr.bf16.gmra.mrb[20].mxu1 %v4307_v41  ;;  %3948 = vmatprep.subr.bf16.mxu0 %v1650_v46  ;;  %v4343_v41 = vld [vmem:[%s4572_s18 + $0x140] ss:$16 sps:$4 sm:$0xff]   ;;  %v4353_v46 = vld [vmem:[%s4572_s18 + $0x184] ss:$16 sps:$4 sm:$0xff]  }
 0x1ae   : > { %3949 = vmatpush3.bf16.msra.mxu0 %v1642_v45  ;;  %2121 = vmatprep.mubr.bf16.mxu1 %v4308_v44  ;;  %v4350_v44 = vld [vmem:[%s4572_s18 + $0x8c] ss:$16 sps:$4 sm:$0xff]   ;;  %v4349_v45 = vld [vmem:[%s4572_s18 + $0x160] ss:$16 sps:$4 sm:$0xff]  }
 0x1b1   : > { %v4158_v47 = vpop.f32.mrb[36].mxu0  ;;  %v4182_v48 = vpop.f32.mrb[4].mxu1 }
 0x1b2   : > { %v1486_v50 = vpop.f32.mrb[37].mxu0  ;;  %v1566_v51 = vpop.f32.mrb[5].mxu1 }
 0x1b3   : > { %v1643_v53 = vpack.c.bf16 %v4158_v47, %v1486_v50  ;;  %v1651_v54 = vpack.c.bf16 %v4182_v48, %v1566_v51  ;;  %v4352_v47 = vld [vmem:[%s4572_s18 + $0x88] ss:$16 sps:$4 sm:$0xff]   ;;  %v4356_v48 = vld [vmem:[%s4572_s18 + $0xac] ss:$16 sps:$4 sm:$0xff]   ;;  %v4359_v50 = vld [vmem:[%s4572_s18 + $0x1a4] ss:$16 sps:$4 sm:$0xff]  }
 0x1b4   : > { %v4358_v51 = vld [vmem:[%s4572_s18 + $0xa8] ss:$16 sps:$4 sm:$0xff]  }
 0x1b5   : > { %2122 = vmatmul.mubr.bf16.gmra.mrb[24].mxu1 %v4310_v49  ;;  %3950 = vmatprep.subr.bf16.mxu0 %v1651_v54  ;;  %v4355_v49 = vld [vmem:[%s4572_s18 + $0x180] ss:$16 sps:$4 sm:$0xff]   ;;  %v4365_v54 = vld [vmem:[%s4572_s18 + $0x1c4] ss:$16 sps:$4 sm:$0xff]  }
 0x1b6   : > { %3951 = vmatpush3.bf16.msra.mxu0 %v1643_v53  ;;  %2129 = vmatprep.mubr.bf16.mxu1 %v4311_v52  ;;  %v4362_v52 = vld [vmem:[%s4572_s18 + $0xcc] ss:$16 sps:$4 sm:$0xff]   ;;  %v4361_v53 = vld [vmem:[%s4572_s18 + $0x1a0] ss:$16 sps:$4 sm:$0xff]  }
 0x1b9   : > { %v4161_v55 = vpop.f32.mrb[38].mxu0  ;;  %v4185_v56 = vpop.f32.mrb[6].mxu1 }
 0x1ba   : > { %v1496_v58 = vpop.f32.mrb[39].mxu0  ;;  %v1576_v59 = vpop.f32.mrb[7].mxu1 }
 0x1bb   : > { %v1644_v61 = vpack.c.bf16 %v4161_v55, %v1496_v58  ;;  %v1652_v62 = vpack.c.bf16 %v4185_v56, %v1576_v59  ;;  %v4364_v55 = vld [vmem:[%s4572_s18 + $0xc8] ss:$16 sps:$4 sm:$0xff]   ;;  %v4368_v56 = vld [vmem:[%s4572_s18 + $0xec] ss:$16 sps:$4 sm:$0xff]   ;;  %v4371_v58 = vld [vmem:[%s4572_s18 + $0x1e4] ss:$16 sps:$4 sm:$0xff]  }
 0x1bc   : > { %v4370_v59 = vld [vmem:[%s4572_s18 + $0xe8] ss:$16 sps:$4 sm:$0xff]  }
 0x1bd   : > { %2130 = vmatmul.mubr.bf16.gmra.mrb[28].mxu1 %v4313_v57  ;;  %3952 = vmatprep.subr.bf16.mxu0 %v1652_v62  ;;  %v4367_v57 = vld [vmem:[%s4572_s18 + $0x1c0] ss:$16 sps:$4 sm:$0xff]  }
 0x1be   : > { %3953 = vmatpush3.bf16.msra.mxu0 %v1644_v61  ;;  %2137 = vmatprep.mubr.bf16.mxu1 %v4314_v60  ;;  %v4374_v60 = vld [vmem:[%s4572_s18 + $0x10c] ss:$16 sps:$4 sm:$0xff]   ;;  %v4373_v61 = vld [vmem:[%s4572_s18 + $0x1e0] ss:$16 sps:$4 sm:$0xff]  }
 0x1bf   : > { %v2463_v62 = vld [vmem:[%s5073_s17] sm:$0xff] }
 0x1c1   : > { %v4164_v63 = vpop.f32.mrb[40].mxu0  ;;  %v4188_v0 = vpop.f32.mrb[8].mxu1 }
 0x1c2   : > { %v1506_v2 = vpop.f32.mrb[41].mxu0  ;;  %v1586_v3 = vpop.f32.mrb[9].mxu1 }
 0x1c3   : > { %v1645_v5 = vpack.c.bf16 %v4164_v63, %v1506_v2  ;;  %v1653_v6 = vpack.c.bf16 %v4188_v0, %v1586_v3  ;;  %v4376_v63 = vld [vmem:[%s4572_s18 + $0x108] ss:$16 sps:$4 sm:$0xff]   ;;  %v4377_v0 = vld [vmem:[%s4572_s18 + $0x12c] ss:$16 sps:$4 sm:$0xff]   ;;  %v2465_v2 = vld [vmem:[%s5073_s17 + $0x10] sm:$0xff] }
 0x1c4   : > { %v4379_v3 = vld [vmem:[%s4572_s18 + $0x128] ss:$16 sps:$4 sm:$0xff]  }
 0x1c5   : > { %2138 = vmatmul.mubr.bf16.gmra.mrb[32].mxu1 %v4316_v1  ;;  %3954 = vmatprep.subr.bf16.mxu0 %v1653_v6  ;;  %v2464_v1 = vld [vmem:[%s5073_s17 + $0x8] sm:$0xff]  ;;  %v2467_v6 = vld [vmem:[%s5073_s17 + $0x20] sm:$0xff] }
 0x1c6   : > { %3955 = vmatpush3.bf16.msra.mxu0 %v1645_v5  ;;  %2145 = vmatprep.mubr.bf16.mxu1 %v4317_v4  ;;  %v2466_v4 = vld [vmem:[%s5073_s17 + $0x18] sm:$0xff] }
 0x1c7   : > { %v4380_v5 = vld [vmem:[%s4572_s18 + $0x14c] ss:$16 sps:$4 sm:$0xff]  }
 0x1c9   : > { %v4167_v7 = vpop.f32.mrb[42].mxu0  ;;  %v4191_v8 = vpop.f32.mrb[10].mxu1 }
 0x1ca   : > { %v1516_v10 = vpop.f32.mrb[43].mxu0  ;;  %v1596_v11 = vpop.f32.mrb[11].mxu1 }
 0x1cb   : > { %v1646_v13 = vpack.c.bf16 %v4167_v7, %v1516_v10  ;;  %v1654_v14 = vpack.c.bf16 %v4191_v8, %v1596_v11  ;;  %v2468_v7 = vld [vmem:[%s5073_s17 + $0x28] sm:$0xff]  ;;  %v2469_v8 = vld [vmem:[%s5073_s17 + $0x30] sm:$0xff]  ;;  %v2470_v10 = vld [vmem:[%s5073_s17 + $0x38] sm:$0xff] }
 0x1cc   : > { %v4383_v11 = vld [vmem:[%s4572_s18 + $0x16c] ss:$16 sps:$4 sm:$0xff]  }
 0x1cd   : > { %2146 = vmatmul.mubr.bf16.gmra.mrb[36].mxu1 %v4319_v9  ;;  %3956 = vmatprep.subr.bf16.mxu0 %v1654_v14  ;;  %v4382_v9 = vld [vmem:[%s4572_s18 + $0x148] ss:$16 sps:$4 sm:$0xff]   ;;  %v4423_v14 = vmov 0.0  }
 0x1ce   : > { %3957 = vmatpush3.bf16.msra.mxu0 %v1646_v13  ;;  %2153 = vmatprep.mubr.bf16.mxu1 %v4320_v12  ;;  %v2471_v12 = vld [vmem:[%s5073_s17 + $0x40] sm:$0xff]  ;;  %v2472_v13 = vld [vmem:[%s5073_s17 + $0x48] sm:$0xff]  ;;  %499 = vst.msk [vmem:[%s5101_s21] sm:$0xff] %vm498_vm1, %v4423_v14  ;;  %500 = vst.msk [vmem:[%s5101_s21 + $0x8] sm:$0xff] %vm498_vm1, %v4423_v14 }
 0x1cf   : > { %501 = vst.msk [vmem:[%s5101_s21 + $0x10] sm:$0xff] %vm498_vm1, %v4423_v14  ;;  %502 = vst.msk [vmem:[%s5101_s21 + $0x18] sm:$0xff] %vm498_vm1, %v4423_v14 }
 0x1d0   : > { %503 = vst.msk [vmem:[%s5101_s21 + $0x20] sm:$0xff] %vm498_vm1, %v4423_v14  ;;  %504 = vst.msk [vmem:[%s5101_s21 + $0x28] sm:$0xff] %vm498_vm1, %v4423_v14 }
 0x1d1   : > { %v4170_v15 = vpop.f32.mrb[44].mxu0  ;;  %v4194_v16 = vpop.f32.mrb[12].mxu1  ;;  %505 = vst.msk [vmem:[%s5101_s21 + $0x30] sm:$0xff] %vm498_vm1, %v4423_v14  ;;  %506 = vst.msk [vmem:[%s5101_s21 + $0x38] sm:$0xff] %vm498_vm1, %v4423_v14 }
 0x1d2   : > { %v1526_v18 = vpop.f32.mrb[45].mxu0  ;;  %v1606_v19 = vpop.f32.mrb[13].mxu1  ;;  %507 = vst.msk [vmem:[%s5101_s21 + $0x40] sm:$0xff] %vm498_vm1, %v4423_v14  ;;  %508 = vst.msk [vmem:[%s5101_s21 + $0x48] sm:$0xff] %vm498_vm1, %v4423_v14 }
 0x1d3   : > { %v1647_v21 = vpack.c.bf16 %v4170_v15, %v1526_v18  ;;  %v1655_v22 = vpack.c.bf16 %v4194_v16, %v1606_v19  ;;  %509 = vst.msk [vmem:[%s5101_s21 + $0x50] sm:$0xff] %vm498_vm1, %v4423_v14  ;;  %510 = vst.msk [vmem:[%s5101_s21 + $0x58] sm:$0xff] %vm498_vm1, %v4423_v14  ;;  %v2473_v15 = vld [vmem:[%s5073_s17 + $0x50] sm:$0xff]  ;;  %v4385_v16 = vld [vmem:[%s4572_s18 + $0x168] ss:$16 sps:$4 sm:$0xff]  }
 0x1d4   : > { %511 = vst.msk [vmem:[%s5101_s21 + $0x60] sm:$0xff] %vm498_vm1, %v4423_v14  ;;  %512 = vst.msk [vmem:[%s5101_s21 + $0x68] sm:$0xff] %vm498_vm1, %v4423_v14  ;;  %v4386_v18 = vld [vmem:[%s4572_s18 + $0x18c] ss:$16 sps:$4 sm:$0xff]   ;;  %v2475_v19 = vld [vmem:[%s5073_s17 + $0x60] sm:$0xff] }
 0x1d5   : > { %2154 = vmatmul.mubr.bf16.gmra.mrb[40].mxu1 %v4322_v17  ;;  %3958 = vmatprep.subr.bf16.mxu0 %v1655_v22  ;;  %513 = vst.msk [vmem:[%s5101_s21 + $0x70] sm:$0xff] %vm498_vm1, %v4423_v14  ;;  %514 = vst.msk [vmem:[%s5101_s21 + $0x78] sm:$0xff] %vm498_vm1, %v4423_v14  ;;  %v2474_v17 = vld [vmem:[%s5073_s17 + $0x58] sm:$0xff] }
 0x1d6   : > { %3959 = vmatpush3.bf16.msra.mxu0 %v1647_v21  ;;  %2161 = vmatprep.mubr.bf16.mxu1 %v4323_v20  ;;  %515 = vst.msk [vmem:[%s5101_s21 + $0x80] sm:$0xff] %vm498_vm1, %v4423_v14  ;;  %516 = vst.msk [vmem:[%s5101_s21 + $0x88] sm:$0xff] %vm498_vm1, %v4423_v14  ;;  %v2476_v20 = vld [vmem:[%s5073_s17 + $0x68] sm:$0xff]  ;;  %v2477_v21 = vld [vmem:[%s5073_s17 + $0x70] sm:$0xff] }
 0x1d7   : > { %517 = vst.msk [vmem:[%s5101_s21 + $0x90] sm:$0xff] %vm498_vm1, %v4423_v14  ;;  %518 = vst.msk [vmem:[%s5101_s21 + $0x98] sm:$0xff] %vm498_vm1, %v4423_v14  ;;  %v4388_v22 = vld [vmem:[%s4572_s18 + $0x188] ss:$16 sps:$4 sm:$0xff]  }
 0x1d8   : > { %519 = vst.msk [vmem:[%s5101_s21 + $0xa0] sm:$0xff] %vm498_vm1, %v4423_v14  ;;  %520 = vst.msk [vmem:[%s5101_s21 + $0xa8] sm:$0xff] %vm498_vm1, %v4423_v14 }
 0x1d9   : > { %v4173_v23 = vpop.f32.mrb[46].mxu0  ;;  %v4197_v24 = vpop.f32.mrb[14].mxu1  ;;  %521 = vst.msk [vmem:[%s5101_s21 + $0xb0] sm:$0xff] %vm498_vm1, %v4423_v14  ;;  %522 = vst.msk [vmem:[%s5101_s21 + $0xb8] sm:$0xff] %vm498_vm1, %v4423_v14 }
 0x1da   : > { %v1536_v26 = vpop.f32.mrb[47].mxu0  ;;  %v1616_v27 = vpop.f32.mrb[15].mxu1  ;;  %523 = vst.msk [vmem:[%s5101_s21 + $0xc0] sm:$0xff] %vm498_vm1, %v4423_v14  ;;  %524 = vst.msk [vmem:[%s5101_s21 + $0xc8] sm:$0xff] %vm498_vm1, %v4423_v14 }
 0x1db   : > { %v1648_v29 = vpack.c.bf16 %v4173_v23, %v1536_v26  ;;  %v1656_v30 = vpack.c.bf16 %v4197_v24, %v1616_v27  ;;  %525 = vst.msk [vmem:[%s5101_s21 + $0xd0] sm:$0xff] %vm498_vm1, %v4423_v14  ;;  %526 = vst.msk [vmem:[%s5101_s21 + $0xd8] sm:$0xff] %vm498_vm1, %v4423_v14  ;;  %v2478_v23 = vld [vmem:[%s5073_s17 + $0x78] sm:$0xff]  ;;  %v2480_v26 = vld [vmem:[%s5073_s17 + $0x88] sm:$0xff] }
 0x1dc   : > { %527 = vst.msk [vmem:[%s5101_s21 + $0xe0] sm:$0xff] %vm498_vm1, %v4423_v14  ;;  %528 = vst.msk [vmem:[%s5101_s21 + $0xe8] sm:$0xff] %vm498_vm1, %v4423_v14  ;;  %v4389_v24 = vld [vmem:[%s4572_s18 + $0x1ac] ss:$16 sps:$4 sm:$0xff]   ;;  %v2481_v27 = vld [vmem:[%s5073_s17 + $0x90] sm:$0xff] }
 0x1dd   : > { %2162 = vmatmul.mubr.bf16.gmra.mrb[44].mxu1 %v4325_v25  ;;  %3960 = vmatprep.subr.bf16.mxu0 %v1656_v30  ;;  %529 = vst.msk [vmem:[%s5101_s21 + $0xf0] sm:$0xff] %vm498_vm1, %v4423_v14  ;;  %530 = vst.msk [vmem:[%s5101_s21 + $0xf8] sm:$0xff] %vm498_vm1, %v4423_v14  ;;  %v2479_v25 = vld [vmem:[%s5073_s17 + $0x80] sm:$0xff]  ;;  %v4392_v30 = vld [vmem:[%s4572_s18 + $0x1cc] ss:$16 sps:$4 sm:$0xff]  }
 0x1de   : > { %3961 = vmatpush3.bf16.msra.mxu0 %v1648_v29  ;;  %2169 = vmatprep.mubr.bf16.mxu1 %v4329_v28  ;;  %v4391_v28 = vld [vmem:[%s4572_s18 + $0x1a8] ss:$16 sps:$4 sm:$0xff]  }
 0x1df   : > { %v2482_v29 = vld [vmem:[%s5073_s17 + $0x98] sm:$0xff] }
 0x1e1   : > { %2267 = vmatmul.mubr.bf16.vlgmr.msra.gmra.mrb[48].mxu0 %v4326_v31  ;;  %v2483_v31 = vld [vmem:[%s5073_s17 + $0xa0] sm:$0xff] }
 0x1e2   : > { %2274 = vmatprep.mubr.bf16.mxu0 %v4332_v32  ;;  %v2484_v32 = vld [vmem:[%s5073_s17 + $0xa8] sm:$0xff] }
 0x1e5   : > { %2170 = vmatmul.mubr.bf16.gmra.mrb[48].mxu1 %v4331_v33  ;;  %v2485_v33 = vld [vmem:[%s5073_s17 + $0xb0] sm:$0xff] }
 0x1e6   : > { %2177 = vmatprep.mubr.bf16.mxu1 %v4335_v34  ;;  %v4394_v34 = vld [vmem:[%s4572_s18 + $0x1c8] ss:$16 sps:$4 sm:$0xff]  }
 0x1e9   : > { %2275 = vmatmul.mubr.bf16.gmra.mrb[52].mxu0 %v4334_v35  ;;  %v2486_v35 = vld [vmem:[%s5073_s17 + $0xb8] sm:$0xff] }
 0x1ea   : > { %2282 = vmatprep.mubr.bf16.mxu0 %v4338_v36  ;;  %v4395_v36 = vld [vmem:[%s4572_s18 + $0x1ec] ss:$16 sps:$4 sm:$0xff]  }
 0x1ed   : > { %2178 = vmatmul.mubr.bf16.gmra.mrb[52].mxu1 %v4337_v37  ;;  %v2487_v37 = vld [vmem:[%s5073_s17 + $0xc0] sm:$0xff] }
 0x1ee   : > { %2185 = vmatprep.mubr.bf16.mxu1 %v4341_v38  ;;  %v2488_v38 = vld [vmem:[%s5073_s17 + $0xc8] sm:$0xff] }
 0x1f1   : > { %2283 = vmatmul.mubr.bf16.gmra.mrb[56].mxu0 %v4340_v39  ;;  %v2489_v39 = vld [vmem:[%s5073_s17 + $0xd0] sm:$0xff] }
 0x1f2   : > { %2290 = vmatprep.mubr.bf16.mxu0 %v4344_v40  ;;  %v4397_v40 = vld [vmem:[%s4572_s18 + $0x1e8] ss:$16 sps:$4 sm:$0xff]  }
 0x1f5   : > { %2186 = vmatmul.mubr.bf16.gmra.mrb[56].mxu1 %v4343_v41  ;;  %v2490_v41 = vld [vmem:[%s5073_s17 + $0xd8] sm:$0xff] }
 0x1f6   : > { %2193 = vmatprep.mubr.bf16.mxu1 %v4347_v42  ;;  %v2491_v42 = vld [vmem:[%s5073_s17 + $0xe0] sm:$0xff] }
 0x1f9   : > { %2291 = vmatmul.mubr.bf16.gmra.mrb[60].mxu0 %v4346_v43  ;;  %v2492_v43 = vld [vmem:[%s5073_s17 + $0xe8] sm:$0xff] }
 0x1fa   : > { %2298 = vmatprep.mubr.bf16.mxu0 %v4350_v44  ;;  %v2493_v44 = vld [vmem:[%s5073_s17 + $0xf0] sm:$0xff] }
 0x1fd   : > { %2194 = vmatmul.mubr.bf16.gmra.mrb[60].mxu1 %v4349_v45  ;;  %v2494_v45 = vld [vmem:[%s5073_s17 + $0xf8] sm:$0xff] }
 0x1fe   : > { %2201 = vmatprep.mubr.bf16.mxu1 %v4353_v46 }
 0x201   : > { %2299 = vmatmul.mubr.bf16.gmra.mrb[64].mxu0 %v4352_v47 }
 0x202   : > { %2306 = vmatprep.mubr.bf16.mxu0 %v4356_v48 }
 0x205   : > { %2202 = vmatmul.mubr.bf16.gmra.mrb[64].mxu1 %v4355_v49 }
 0x206   : > { %2209 = vmatprep.mubr.bf16.mxu1 %v4359_v50 }
 0x209   : > { %2307 = vmatmul.mubr.bf16.gmra.mrb[68].mxu0 %v4358_v51 }
 0x20a   : > { %2314 = vmatprep.mubr.bf16.mxu0 %v4362_v52 }
 0x20d   : > { %2210 = vmatmul.mubr.bf16.gmra.mrb[68].mxu1 %v4361_v53 }
 0x20e   : > { %2217 = vmatprep.mubr.bf16.mxu1 %v4365_v54 }
 0x211   : > { %2315 = vmatmul.mubr.bf16.gmra.mrb[72].mxu0 %v4364_v55 }
 0x212   : > { %2322 = vmatprep.mubr.bf16.mxu0 %v4368_v56 }
 0x215   : > { %2218 = vmatmul.mubr.bf16.gmra.mrb[72].mxu1 %v4367_v57 }
 0x216   : > { %2225 = vmatprep.mubr.bf16.mxu1 %v4371_v58 }
 0x219   : > { %2323 = vmatmul.mubr.bf16.gmra.mrb[76].mxu0 %v4370_v59 }
 0x21a   : > { %2330 = vmatprep.mubr.bf16.mxu0 %v4374_v60 }
 0x21d   : > { %2226 = vmatmul.mubr.bf16.gmra.mrb[76].mxu1 %v4373_v61 }
 0x21e   : > { %4206 = vmatprep.mubr.msk.f32.mxu1 %vm1047_vm0, %v2463_v62 }
 0x221   : > { %2331 = vmatmul.mubr.bf16.gmra.mrb[80].mxu0 %v4376_v63 }
 0x222   : > { %2338 = vmatprep.mubr.bf16.mxu0 %v4377_v0 }
 0x225   : > { %4207 = vmatmul.mubr.msk.f32.vlgmr.msra.gmra.mrb[80].mxu1 %vm1047_vm0, %v2464_v1 }
 0x226   : > { %4209 = vmatprep.mubr.msk.f32.mxu1 %vm1047_vm0, %v2465_v2 }
 0x229   : > { %2339 = vmatmul.mubr.bf16.gmra.mrb[84].mxu0 %v4379_v3  ;;  %4210 = vmatmul.mubr.msk.f32.gmra.mrb[82].mxu1 %vm1047_vm0, %v2466_v4 }
 0x22a   : > { %4212 = vmatprep.mubr.msk.f32.mxu1 %vm1047_vm0, %v2467_v6  ;;  %2346 = vmatprep.mubr.bf16.mxu0 %v4380_v5 }
 0x22d   : > { %4213 = vmatmul.mubr.msk.f32.gmra.mrb[84].mxu1 %vm1047_vm0, %v2468_v7 }
 0x22e   : > { %4215 = vmatprep.mubr.msk.f32.mxu1 %vm1047_vm0, %v2469_v8 }
 0x231   : > { %2347 = vmatmul.mubr.bf16.gmra.mrb[88].mxu0 %v4382_v9  ;;  %4216 = vmatmul.mubr.msk.f32.gmra.mrb[86].mxu1 %vm1047_vm0, %v2470_v10 }
 0x232   : > { %4218 = vmatprep.mubr.msk.f32.mxu1 %vm1047_vm0, %v2471_v12  ;;  %2354 = vmatprep.mubr.bf16.mxu0 %v4383_v11 }
 0x235   : > { %4219 = vmatmul.mubr.msk.f32.gmra.mrb[88].mxu1 %vm1047_vm0, %v2472_v13 }
 0x236   : > { %4221 = vmatprep.mubr.msk.f32.mxu1 %vm1047_vm0, %v2473_v15 }
 0x239   : > { %2355 = vmatmul.mubr.bf16.gmra.mrb[92].mxu0 %v4385_v16  ;;  %4222 = vmatmul.mubr.msk.f32.gmra.mrb[90].mxu1 %vm1047_vm0, %v2474_v17 }
 0x23a   : > { %4224 = vmatprep.mubr.msk.f32.mxu1 %vm1047_vm0, %v2475_v19  ;;  %2362 = vmatprep.mubr.bf16.mxu0 %v4386_v18 }
 0x23d   : > { %4225 = vmatmul.mubr.msk.f32.gmra.mrb[92].mxu1 %vm1047_vm0, %v2476_v20 }
 0x23e   : > { %4227 = vmatprep.mubr.msk.f32.mxu1 %vm1047_vm0, %v2477_v21 }
 0x241   : > { %2363 = vmatmul.mubr.bf16.gmra.mrb[96].mxu0 %v4388_v22  ;;  %4228 = vmatmul.mubr.msk.f32.gmra.mrb[94].mxu1 %vm1047_vm0, %v2478_v23 }
 0x242   : > { %4230 = vmatprep.mubr.msk.f32.mxu1 %vm1047_vm0, %v2479_v25  ;;  %2370 = vmatprep.mubr.bf16.mxu0 %v4389_v24 }
 0x245   : > { %4231 = vmatmul.mubr.msk.f32.gmra.mrb[96].mxu1 %vm1047_vm0, %v2480_v26 }
 0x246   : > { %4233 = vmatprep.mubr.msk.f32.mxu1 %vm1047_vm0, %v2481_v27 }
 0x249   : > { %2371 = vmatmul.mubr.bf16.gmra.mrb[100].mxu0 %v4391_v28  ;;  %4234 = vmatmul.mubr.msk.f32.gmra.mrb[98].mxu1 %vm1047_vm0, %v2482_v29 }
 0x24a   : > { %4236 = vmatprep.mubr.msk.f32.mxu1 %vm1047_vm0, %v2483_v31  ;;  %2378 = vmatprep.mubr.bf16.mxu0 %v4392_v30 }
 0x24d   : > { %4237 = vmatmul.mubr.msk.f32.gmra.mrb[100].mxu1 %vm1047_vm0, %v2484_v32 }
 0x24e   : > { %4239 = vmatprep.mubr.msk.f32.mxu1 %vm1047_vm0, %v2485_v33 }
 0x251   : > { %2379 = vmatmul.mubr.bf16.gmra.mrb[104].mxu0 %v4394_v34  ;;  %4240 = vmatmul.mubr.msk.f32.gmra.mrb[102].mxu1 %vm1047_vm0, %v2486_v35  ;;  %v1657_v34 = vld [vmem:[%s5101_s21] sm:$0xff] }
 0x252   : > { %4242 = vmatprep.mubr.msk.f32.mxu1 %vm1047_vm0, %v2487_v37  ;;  %2386 = vmatprep.mubr.bf16.mxu0 %v4395_v36 }
 0x255   : > { %4243 = vmatmul.mubr.msk.f32.gmra.mrb[104].mxu1 %vm1047_vm0, %v2488_v38 }
 0x256   : > { %4245 = vmatprep.mubr.msk.f32.mxu1 %vm1047_vm0, %v2489_v39  ;;  %v1658_v39 = vld [vmem:[%s5101_s21 + $0x8] sm:$0xff] }
 0x259   : > { %2387 = vmatmul.mubr.bf16.gmra.mrb[108].mxu0 %v4397_v40  ;;  %4246 = vmatmul.mubr.msk.f32.gmra.mrb[106].mxu1 %vm1047_vm0, %v2490_v41 }
 0x25a   : > { %4248 = vmatprep.mubr.msk.f32.mxu1 %vm1047_vm0, %v2491_v42 }
 0x25d   : > { %4249 = vmatmul.mubr.msk.f32.gmra.mrb[108].mxu1 %vm1047_vm0, %v2492_v43 }
 0x25e   : > { %4251 = vmatprep.mubr.msk.f32.mxu1 %vm1047_vm0, %v2493_v44 }
 0x261   : > { %4252 = vmatmul.mubr.msk.f32.gmra.mrb[110].mxu1 %vm1047_vm0, %v2494_v45 }
 0x278   : > { %v3850_v46 = vpop.f32.mrb[16].mxu1 }
 0x279   : > { %v3851_v47 = vpop.f32.mrb[17].mxu1 }
 0x27a   : > { %v3852_v48 = vadd.f32 %v3851_v47, %v3850_v46  ;;  %v3853_v49 = vpop.f32.mrb[18].mxu1 }
 0x27b   : > { %v3854_v50 = vpop.f32.mrb[19].mxu1 }
 0x27c   : > { %v3855_v51 = vadd.f32 %v3854_v50, %v3853_v49 }
 0x280   : > { %v3856_v52 = vpop.f32.mrb[20].mxu1 }
 0x281   : > { %v3857_v53 = vpop.f32.mrb[21].mxu1 }
 0x282   : > { %v5225_v54 = vadd.f32 %v3857_v53, %v3856_v52  ;;  %v3859_v55 = vpop.f32.mrb[22].mxu1  ;;  %v1659_v53 = vld [vmem:[%s5101_s21 + $0x10] sm:$0xff] }
 0x283   : > { %v3860_v56 = vpop.f32.mrb[23].mxu1 }
 0x284   : > { %v5227_v57 = vadd.f32 %v3860_v56, %v3859_v55 }
 0x288   : > { %v3862_v58 = vpop.f32.mrb[24].mxu1 }
 0x289   : > { %v3863_v59 = vpop.f32.mrb[25].mxu1 }
 0x28a   : > { %v5229_v60 = vadd.f32 %v3863_v59, %v3862_v58  ;;  %v3865_v61 = vpop.f32.mrb[26].mxu1  ;;  %v1660_v59 = vld [vmem:[%s5101_s21 + $0x18] sm:$0xff] }
 0x28b   : > { %v3866_v62 = vpop.f32.mrb[27].mxu1 }
 0x28c   : > { %v5231_v63 = vadd.f32 %v3866_v62, %v3865_v61 }
 0x290   : > { %v3868_v0 = vpop.f32.mrb[28].mxu1 }
 0x291   : > { %v3869_v1 = vpop.f32.mrb[29].mxu1 }
 0x292   : > { %v5233_v2 = vadd.f32 %v3869_v1, %v3868_v0  ;;  %v3871_v3 = vpop.f32.mrb[30].mxu1 }
 0x293   : > { %v3872_v4 = vpop.f32.mrb[31].mxu1 }
 0x294   : > { %v5235_v5 = vadd.f32 %v3872_v4, %v3871_v3 }
 0x298   : > { %v3874_v6 = vpop.f32.mrb[32].mxu1 }
 0x299   : > { %v3875_v7 = vpop.f32.mrb[33].mxu1 }
 0x29a   : > { %v5237_v8 = vadd.f32 %v3875_v7, %v3874_v6  ;;  %v3877_v9 = vpop.f32.mrb[34].mxu1 }
 0x29b   : > { %v3878_v10 = vpop.f32.mrb[35].mxu1 }
 0x29c   : > { %v5239_v11 = vadd.f32 %v3878_v10, %v3877_v9 }
 0x2a0   : > { %v3880_v12 = vpop.f32.mrb[36].mxu1 }
 0x2a1   : > { %v3881_v13 = vpop.f32.mrb[37].mxu1 }
 0x2a2   : > { %v5241_v14 = vadd.f32 %v3881_v13, %v3880_v12  ;;  %v3883_v15 = vpop.f32.mrb[38].mxu1  ;;  %v1661_v13 = vld [vmem:[%s5101_s21 + $0x20] sm:$0xff] }
 0x2a3   : > { %v3884_v16 = vpop.f32.mrb[39].mxu1 }
 0x2a4   : > { %v5243_v17 = vadd.f32 %v3884_v16, %v3883_v15 }
 0x2a8   : > { %v3886_v18 = vpop.f32.mrb[40].mxu1 }
 0x2a9   : > { %v3887_v19 = vpop.f32.mrb[41].mxu1 }
 0x2aa   : > { %v5245_v20 = vadd.f32 %v3887_v19, %v3886_v18  ;;  %v3889_v21 = vpop.f32.mrb[42].mxu1  ;;  %v1662_v19 = vld [vmem:[%s5101_s21 + $0x28] sm:$0xff] }
 0x2ab   : > { %v3890_v22 = vpop.f32.mrb[43].mxu1 }
 0x2ac   : > { %v5247_v23 = vadd.f32 %v3890_v22, %v3889_v21 }
 0x2b0   : > { %v3892_v24 = vpop.f32.mrb[44].mxu1 }
 0x2b1   : > { %v3893_v25 = vpop.f32.mrb[45].mxu1 }
 0x2b2   : > { %v5249_v26 = vadd.f32 %v3893_v25, %v3892_v24  ;;  %v3895_v27 = vpop.f32.mrb[46].mxu1 }
 0x2b3   : > { %v3896_v28 = vpop.f32.mrb[47].mxu1 }
 0x2b4   : > { %v3962_v29 = vpop.f32.mrb[48].mxu0  ;;  %v5251_v30 = vadd.f32 %v3896_v28, %v3895_v27 }
 0x2b5   : > { %v3963_v31 = vpop.f32.mrb[49].mxu0 }
 0x2b6   : > { %v3964_v32 = vadd.f32 %v3963_v31, %v3962_v29  ;;  %v3965_v33 = vpop.f32.mrb[50].mxu0 }
 0x2b7   : > { %v3966_v35 = vpop.f32.mrb[51].mxu0 }
 0x2b8   : > { %v2269_v36 = vadd.f32 %v3964_v32, %v3852_v48  ;;  %v3967_v37 = vadd.f32 %v3966_v35, %v3965_v33  ;;  %v3898_v38 = vpop.f32.mrb[48].mxu1  ;;  %v1663_v35 = vld [vmem:[%s5101_s21 + $0x30] sm:$0xff] }
 0x2b9   : > { %v3899_v40 = vpop.f32.mrb[49].mxu1 }
 0x2ba   : > { %v2395_v41 = vadd.f32 %v2269_v36, %v1657_v34  ;;  %v2272_v42 = vadd.f32 %v3967_v37, %v3855_v51  ;;  %v5255_v43 = vadd.f32 %v3899_v40, %v3898_v38  ;;  %v3901_v44 = vpop.f32.mrb[50].mxu1  ;;  %v5291_v40 = vpop.permute.xlu0 %2893 }
 0x2bb   : > { %v3902_v45 = vpop.f32.mrb[51].mxu1 }
 0x2bc   : > { %2428 = vst.msk [vmem:[%s5101_s21] sm:$0xff] %vm498_vm1, %v2395_v41  ;;  %v2396_v46 = vadd.f32 %v2272_v42, %v1658_v39  ;;  %v3968_v47 = vpop.f32.mrb[52].mxu0  ;;  %v5259_v49 = vadd.f32 %v3902_v45, %v3901_v44  ;;  %v1664_v41 = vld [vmem:[%s5101_s21 + $0x38] sm:$0xff] }
 0x2bd   : > { %v3969_v50 = vpop.f32.mrb[53].mxu0 }
 0x2be   : > { %2429 = vst.msk [vmem:[%s5101_s21 + $0x8] sm:$0xff] %vm498_vm1, %v2396_v46  ;;  %v3970_v48 = vadd.f32 %v3969_v50, %v3968_v47  ;;  %v3971_v52 = vpop.f32.mrb[54].mxu0 }
 0x2bf   : > { %v3972_v55 = vpop.f32.mrb[55].mxu0 }
 0x2c0   : > { %v2277_v51 = vadd.f32 %v3970_v48, %v5225_v54  ;;  %v3973_v56 = vadd.f32 %v3972_v55, %v3971_v52  ;;  %v3904_v58 = vpop.f32.mrb[52].mxu1 }
 0x2c1   : > { %v3905_v61 = vpop.f32.mrb[53].mxu1 }
 0x2c2   : > { %v2397_v62 = vadd.f32 %v2277_v51, %v1659_v53  ;;  %v2280_v0 = vadd.f32 %v3973_v56, %v5227_v57  ;;  %v5267_v1 = vadd.f32 %v3905_v61, %v3904_v58  ;;  %v3907_v3 = vpop.f32.mrb[54].mxu1  ;;  %v1665_v58 = vld [vmem:[%s5101_s21 + $0x40] sm:$0xff] }
 0x2c3   : > { %v3908_v4 = vpop.f32.mrb[55].mxu1 }
 0x2c4   : > { %2430 = vst.msk [vmem:[%s5101_s21 + $0x10] sm:$0xff] %vm498_vm1, %v2397_v62  ;;  %v2398_v6 = vadd.f32 %v2280_v0, %v1660_v59  ;;  %v3974_v7 = vpop.f32.mrb[56].mxu0  ;;  %v5271_v9 = vadd.f32 %v3908_v4, %v3907_v3  ;;  %v1666_v3 = vld [vmem:[%s5101_s21 + $0x48] sm:$0xff] }
 0x2c5   : > { %v3975_v54 = vpop.f32.mrb[57].mxu0 }
 0x2c6   : > { %2431 = vst.msk [vmem:[%s5101_s21 + $0x18] sm:$0xff] %vm498_vm1, %v2398_v6  ;;  %v3976_v10 = vadd.f32 %v3975_v54, %v3974_v7  ;;  %v3977_v12 = vpop.f32.mrb[58].mxu0 }
 0x2c7   : > { %v3978_v15 = vpop.f32.mrb[59].mxu0 }
 0x2c8   : > { %v2285_v57 = vadd.f32 %v3976_v10, %v5229_v60  ;;  %v3979_v16 = vadd.f32 %v3978_v15, %v3977_v12  ;;  %v3910_v18 = vpop.f32.mrb[56].mxu1 }
 0x2c9   : > { %v3911_v21 = vpop.f32.mrb[57].mxu1 }
 0x2ca   : > { %v2399_v22 = vadd.f32 %v2285_v57, %v1661_v13  ;;  %v2288_v24 = vadd.f32 %v3979_v16, %v5231_v63  ;;  %v5279_v25 = vadd.f32 %v3911_v21, %v3910_v18  ;;  %v3913_v27 = vpop.f32.mrb[58].mxu1  ;;  %v5288_v63 = vpop.permute.xlu1 %2898  ;;  %v1667_v21 = vld [vmem:[%s5101_s21 + $0x50] sm:$0xff] }
 0x2cb   : > { %v3914_v28 = vpop.f32.mrb[59].mxu1 }
 0x2cc   : > { %2432 = vst.msk [vmem:[%s5101_s21 + $0x20] sm:$0xff] %vm498_vm1, %v2399_v22  ;;  %v2400_v29 = vadd.f32 %v2288_v24, %v1662_v19  ;;  %v3980_v31 = vpop.f32.mrb[60].mxu0  ;;  %v5283_v32 = vadd.f32 %v3914_v28, %v3913_v27 }
 0x2cd   : > { %v3981_v60 = vpop.f32.mrb[61].mxu0 }
 0x2ce   : > { %2433 = vst.msk [vmem:[%s5101_s21 + $0x28] sm:$0xff] %vm498_vm1, %v2400_v29  ;;  %v3982_v33 = vadd.f32 %v3981_v60, %v3980_v31  ;;  %v3983_v34 = vpop.f32.mrb[62].mxu0  ;;  %v5301_v55 = vpop.permute.xlu1 %2908  ;;  %v1668_v29 = vld [vmem:[%s5101_s21 + $0x58] sm:$0xff] }
 0x2cf   : > { %v3984_v36 = vpop.f32.mrb[63].mxu0 }
 0x2d0   : > { %v2293_v37 = vadd.f32 %v3982_v33, %v5233_v2  ;;  %v3985_v38 = vadd.f32 %v3984_v36, %v3983_v34  ;;  %v3916_v39 = vpop.f32.mrb[60].mxu1 }
 0x2d1   : > { %v3917_v42 = vpop.f32.mrb[61].mxu1 }
 0x2d2   : > { %v2401_v44 = vadd.f32 %v2293_v37, %v1663_v35  ;;  %v2296_v45 = vadd.f32 %v3985_v38, %v5235_v5  ;;  %v5295_v46 = vadd.f32 %v3917_v42, %v3916_v39  ;;  %v3919_v47 = vpop.f32.mrb[62].mxu1  ;;  %v5305_v5 = vpop.permute.xlu0 %2903 }
 0x2d3   : > { %v3920_v50 = vpop.f32.mrb[63].mxu1  ;;  %v5313_v13 = vpop.permute.xlu1 %2918 }
 0x2d4   : > { %2434 = vst.msk [vmem:[%s5101_s21 + $0x30] sm:$0xff] %vm498_vm1, %v2401_v44  ;;  %v2402_v48 = vadd.f32 %v2296_v45, %v1664_v41  ;;  %v3986_v2 = vpop.f32.mrb[64].mxu0  ;;  %v5299_v52 = vadd.f32 %v3920_v50, %v3919_v47 }
 0x2d5   : > { %v3987_v53 = vpop.f32.mrb[65].mxu0 }
 0x2d6   : > { %2435 = vst.msk [vmem:[%s5101_s21 + $0x38] sm:$0xff] %vm498_vm1, %v2402_v48  ;;  %v3988_v51 = vadd.f32 %v3987_v53, %v3986_v2  ;;  %v3989_v56 = vpop.f32.mrb[66].mxu0  ;;  %v5319_v16 = vpop.permute.xlu0 %2913 }
 0x2d7   : > { %v3990_v59 = vpop.f32.mrb[67].mxu0  ;;  %v5326_v60 = vpop.permute.xlu1 %2928 }
 0x2d8   : > { %v2301_v61 = vadd.f32 %v3988_v51, %v5237_v8  ;;  %v3991_v62 = vadd.f32 %v3990_v59, %v3989_v56  ;;  %v3922_v0 = vpop.f32.mrb[64].mxu1  ;;  %v1670_v56 = vld [vmem:[%s5101_s21 + $0x68] sm:$0xff] }
 0x2d9   : > { %v3923_v4 = vpop.f32.mrb[65].mxu1 }
 0x2da   : > { %v2403_v6 = vadd.f32 %v2301_v61, %v1665_v58  ;;  %v2304_v7 = vadd.f32 %v3991_v62, %v5239_v11  ;;  %v5311_v54 = vadd.f32 %v3923_v4, %v3922_v0  ;;  %v3925_v10 = vpop.f32.mrb[66].mxu1  ;;  %v5331_v37 = vpop.permute.xlu0 %2923 }
 0x2db   : > { %v3926_v12 = vpop.f32.mrb[67].mxu1  ;;  %v5340_v50 = vpop.permute.xlu1 %2938 }
 0x2dc   : > { %2436 = vst.msk [vmem:[%s5101_s21 + $0x40] sm:$0xff] %vm498_vm1, %v2403_v6  ;;  %v2404_v15 = vadd.f32 %v2304_v7, %v1666_v3  ;;  %v3992_v8 = vpop.f32.mrb[68].mxu0  ;;  %v5317_v57 = vadd.f32 %v3926_v12, %v3925_v10 }
 0x2dd   : > { %v3993_v18 = vpop.f32.mrb[69].mxu0 }
 0x2de   : > { %2437 = vst.msk [vmem:[%s5101_s21 + $0x48] sm:$0xff] %vm498_vm1, %v2404_v15  ;;  %v3994_v19 = vadd.f32 %v3993_v18, %v3992_v8  ;;  %v3995_v11 = vpop.f32.mrb[70].mxu0  ;;  %v5343_v51 = vpop.permute.xlu0 %2933  ;;  %v2828_v15 = vld [vmem:[%s5101_s21 + $0x8] sm:$0xff]  ;;  %v1671_v18 = vld [vmem:[%s5101_s21 + $0x70] sm:$0xff] }
 0x2df   : > { %v3996_v22 = vpop.f32.mrb[71].mxu0  ;;  %v5353_v10 = vpop.permute.xlu1 %2948 }
 0x2e0   : > { %v2309_v24 = vadd.f32 %v3994_v19, %v5241_v14  ;;  %v3997_v27 = vadd.f32 %v3996_v22, %v3995_v11  ;;  %v3928_v28 = vpop.f32.mrb[68].mxu1  ;;  %v2827_v11 = vld [vmem:[%s5101_s21] sm:$0xff] }
 0x2e1   : > { %v3929_v31 = vpop.f32.mrb[69].mxu1 }
 0x2e2   : > { %v2405_v33 = vadd.f32 %v2309_v24, %v1667_v21  ;;  %v2312_v34 = vadd.f32 %v3997_v27, %v5243_v17  ;;  %v5329_v35 = vadd.f32 %v3929_v31, %v3928_v28  ;;  %v3931_v36 = vpop.f32.mrb[70].mxu1  ;;  %v1669_v17 = vld [vmem:[%s5101_s21 + $0x60] sm:$0xff]  ;;  %v5358_v8 = vpop.permute.xlu0 %2943  ;;  %v2829_v27 = vld [vmem:[%s5101_s21 + $0x10] sm:$0xff]  ;;  %v1672_v28 = vld [vmem:[%s5101_s21 + $0x78] sm:$0xff]  ;;  %v3052_v31 = vmul.f32 %v5288_v63, %v2828_v15 }
 0x2e3   : > { %v3932_v38 = vpop.f32.mrb[71].mxu1  ;;  %v3053_v63 = vmul.f32 %v5305_v5, %v2829_v27 }
 0x2e4   : > { %2438 = vst.msk [vmem:[%s5101_s21 + $0x50] sm:$0xff] %vm498_vm1, %v2405_v33  ;;  %v2406_v14 = vadd.f32 %v2312_v34, %v1668_v29  ;;  %v3998_v39 = vpop.f32.mrb[72].mxu0  ;;  %v5335_v41 = vadd.f32 %v3932_v38, %v3931_v36  ;;  %v2830_v33 = vld [vmem:[%s5101_s21 + $0x18] sm:$0xff] }
 0x2e5   : > { %v3999_v42 = vpop.f32.mrb[73].mxu0 }
 0x2e6   : > { %2439 = vst.msk [vmem:[%s5101_s21 + $0x58] sm:$0xff] %vm498_vm1, %v2406_v14  ;;  %v4000_v44 = vadd.f32 %v3999_v42, %v3998_v39  ;;  %v4001_v45 = vpop.f32.mrb[74].mxu0  ;;  %v3051_v39 = vmul.f32 %v5291_v40, %v2827_v11  ;;  %v2831_v42 = vld [vmem:[%s5101_s21 + $0x20] sm:$0xff]  ;;  %v3054_v40 = vmul.f32 %v5301_v55, %v2830_v33  ;;  %v1674_v11 = vld [vmem:[%s5101_s21 + $0x88] sm:$0xff] }
 0x2e7   : > { %v4002_v47 = vpop.f32.mrb[75].mxu0  ;;  %v5398_v55 = vld [vmem:[%s5956_s8] ss:$0 sm:$0xff]  ;;  %v2836_v33 = vld [vmem:[%s5101_s21 + $0x48] sm:$0xff] }
 0x2e8   : > { %v2317_v48 = vadd.f32 %v4000_v44, %v5245_v20  ;;  %v4003_v2 = vadd.f32 %v4002_v47, %v4001_v45  ;;  %v3934_v53 = vpop.f32.mrb[72].mxu1  ;;  %v5376_v45 = vld [vmem:[%s5954_s6] ss:$0 sm:$0xff] }
 0x2e9   : > { %v3935_v58 = vpop.f32.mrb[73].mxu1 }
 0x2ea   : > { %v2407_v59 = vadd.f32 %v2317_v48, %v1669_v17  ;;  %v2320_v61 = vadd.f32 %v4003_v2, %v5247_v23  ;;  %v5347_v62 = vadd.f32 %v3935_v58, %v3934_v53  ;;  %v3937_v0 = vpop.f32.mrb[74].mxu1  ;;  %v5379_v17 = vpop.permute.xlu1 %2958  ;;  %v2834_v2 = vld [vmem:[%s5101_s21 + $0x38] sm:$0xff]  ;;  %v2833_v53 = vld [vmem:[%s5101_s21 + $0x30] sm:$0xff] }
 0x2eb   : > { %v3938_v3 = vpop.f32.mrb[75].mxu1 }
 0x2ec   : > { %2440 = vst.msk [vmem:[%s5101_s21 + $0x60] sm:$0xff] %vm498_vm1, %v2407_v59  ;;  %v2408_v20 = vadd.f32 %v2320_v61, %v1670_v56  ;;  %v4004_v4 = vpop.f32.mrb[76].mxu0  ;;  %v5351_v6 = vadd.f32 %v3938_v3, %v3937_v0  ;;  %v5388_v56 = vpop.permute.xlu0 %2953  ;;  %v3091_v59 = vadd.f32 %v5376_v45, %v3052_v31  ;;  %v3055_v61 = vmul.f32 %v5319_v16, %v2831_v42 }
 0x2ed   : > { %v4005_v7 = vpop.f32.mrb[77].mxu0  ;;  %v3057_v16 = vmul.f32 %v5331_v37, %v2833_v53  ;;  %v2835_v37 = vld [vmem:[%s5101_s21 + $0x40] sm:$0xff] }
 0x2ee   : > { %2441 = vst.msk [vmem:[%s5101_s21 + $0x68] sm:$0xff] %vm498_vm1, %v2408_v20  ;;  %v4006_v23 = vadd.f32 %v4005_v7, %v4004_v4  ;;  %v4007_v12 = vpop.f32.mrb[78].mxu0  ;;  %v3090_v20 = vadd.f32 %v5376_v45, %v3051_v39  ;;  %v1673_v4 = vld [vmem:[%s5101_s21 + $0x80] sm:$0xff] }
 0x2ef   : > { %v4008_v19 = vpop.f32.mrb[79].mxu0  ;;  %v5429_v42 = vadd.f32 %v5376_v45, %v3057_v16 }
 0x2f0   : > { %v2325_v21 = vadd.f32 %v4006_v23, %v5249_v26  ;;  %v4009_v22 = vadd.f32 %v4008_v19, %v4007_v12  ;;  %v3940_v24 = vpop.f32.mrb[76].mxu1  ;;  %v2832_v26 = vld [vmem:[%s5101_s21 + $0x28] sm:$0xff]  ;;  %v3092_v23 = vadd.f32 %v5376_v45, %v3053_v63  ;;  %v3093_v19 = vadd.f32 %v5376_v45, %v3054_v40 }
 0x2f1   : > { %v3941_v29 = vpop.f32.mrb[77].mxu1  ;;  %v3056_v5 = vmul.f32 %v5313_v13, %v2832_v26  ;;  %v3058_v13 = vmul.f32 %v5326_v60, %v2834_v2  ;;  %v5413_v60 = vadd.f32 %v5376_v45, %v3055_v61  ;;  %v3122_v31 = vmax.f32 %v3090_v20, 0.0  ;;  %v2837_v2 = vld [vmem:[%s5101_s21 + $0x50] sm:$0xff] }
 0x2f2   : > { %v2409_v34 = vadd.f32 %v2325_v21, %v1671_v18  ;;  %v2328_v36 = vadd.f32 %v4009_v22, %v5251_v30  ;;  %v5368_v38 = vadd.f32 %v3941_v29, %v3940_v24  ;;  %v3943_v14 = vpop.f32.mrb[78].mxu1  ;;  %v3123_v22 = vmax.f32 %v3091_v59, 0.0 }
 0x2f3   : > { %v3944_v44 = vpop.f32.mrb[79].mxu1  ;;  %v5410_v27 = vadd.f32 %v5376_v45, %v3056_v5  ;;  %v3124_v39 = vmax.f32 %v3092_v23, 0.0  ;;  %v5426_v26 = vadd.f32 %v5376_v45, %v3058_v13  ;;  %v3059_v40 = vmul.f32 %v5343_v51, %v2835_v37  ;;  %v2838_v23 = vld [vmem:[%s5101_s21 + $0x58] sm:$0xff]  ;;  %v1675_v13 = vld [vmem:[%s5101_s21 + $0x90] sm:$0xff] }
 0x2f4   : > { %2442 = vst.msk [vmem:[%s5101_s21 + $0x70] sm:$0xff] %vm498_vm1, %v2409_v34  ;;  %v2410_v30 = vadd.f32 %v2328_v36, %v1672_v28  ;;  %v4010_v47 = vpop.f32.mrb[80].mxu0  ;;  %v5383_v48 = vadd.f32 %v3944_v44, %v3943_v14  ;;  %v5419_v34 = vpop.permute.xlu1 %2968  ;;  %v3126_v61 = vmax.f32 %v5413_v60, 0.0  ;;  %v1676_v37 = vld [vmem:[%s5101_s21 + $0x98] sm:$0xff] }
 0x2f5   : > { %v4011_v58 = vpop.f32.mrb[81].mxu0  ;;  %v5421_v36 = vpop.permute.xlu0 %2963  ;;  %v3127_v5 = vmax.f32 %v5410_v27, 0.0  ;;  %v2839_v27 = vld [vmem:[%s5101_s21 + $0x60] sm:$0xff] }
 0x2f6   : > { %2443 = vst.msk [vmem:[%s5101_s21 + $0x78] sm:$0xff] %vm498_vm1, %v2410_v30  ;;  %v4012_v0 = vadd.f32 %v4011_v58, %v4010_v47  ;;  %v4013_v3 = vpop.f32.mrb[82].mxu0  ;;  %v3125_v47 = vmax.f32 %v3093_v19, 0.0 }
 0x2f7   : > { %v4014_v7 = vpop.f32.mrb[83].mxu0 }
 0x2f8   : > { %v2333_v12 = vadd.f32 %v4012_v0, %v5255_v43  ;;  %v4015_v15 = vadd.f32 %v4014_v7, %v4013_v3  ;;  %v4208_v18 = vpop.f32.mrb[80].mxu1  ;;  %v3060_v0 = vmul.f32 %v5340_v50, %v2836_v33 }
 0x2f9   : > { %v2674_v21 = vadd.f32 %v4208_v18, %v5398_v55  ;;  %v2668_v24 = vpop.f32.mrb[81].mxu1  ;;  %v3061_v18 = vmul.f32 %v5358_v8, %v2837_v2  ;;  %v3062_v8 = vmul.f32 %v5353_v10, %v2838_v23 }
 0x2fa   : > { %v2411_v28 = vadd.f32 %v2333_v12, %v1673_v4  ;;  %v2336_v43 = vadd.f32 %v4015_v15, %v5259_v49  ;;  %v2669_v29 = vadd.f32 %v5398_v55, %v2668_v24  ;;  %v3129_v12 = vmax.f32 %v5426_v26, 0.0  ;;  %v2840_v26 = vld [vmem:[%s5101_s21 + $0x68] sm:$0xff] }
 0x2fb   : > { %v5423_v14 = vadd.f32 %v3123_v22, %v2674_v21  ;;  %v3128_v15 = vmax.f32 %v5429_v42, 0.0  ;;  %v5465_v24 = vadd.f32 %v5376_v45, %v3059_v40  ;;  %v5485_v42 = vpop.permute.xlu1 %2978  ;;  %v5492_v10 = vadd.f32 %v5376_v45, %v3061_v18 }
 0x2fc   : > { %2444 = vst.msk [vmem:[%s5101_s21 + $0x80] sm:$0xff] %vm498_vm1, %v2411_v28  ;;  %v2412_v49 = vadd.f32 %v2336_v43, %v1674_v11  ;;  %v5433_v44 = vadd.f32 %v3122_v31, %v2669_v29  ;;  %v4016_v63 = vpop.f32.mrb[84].mxu0  ;;  %v4211_v30 = vpop.f32.mrb[82].mxu1 }
 0x2fd   : > { %3187 = vst.msk [vmem:[%s5101_s21 + $0x8] sm:$0xff] %vm498_vm1, %v5423_v14  ;;  %v2684_v53 = vadd.f32 %v4211_v30, %v5398_v55  ;;  %v4017_v58 = vpop.f32.mrb[85].mxu0  ;;  %v2678_v59 = vpop.f32.mrb[83].mxu1  ;;  %v3219_v51 = vsel %vm498_vm1, %v5423_v14, 0.0 }
 0x2fe   : > { %2445 = vst.msk [vmem:[%s5101_s21 + $0x88] sm:$0xff] %vm498_vm1, %v2412_v49  ;;  %3186 = vst.msk [vmem:[%s5101_s21] sm:$0xff] %vm498_vm1, %v5433_v44  ;;  %v3218_v3 = vsel %vm498_vm1, %v5433_v44, 0.0  ;;  %v4018_v20 = vadd.f32 %v4017_v58, %v4016_v63  ;;  %v2679_v4 = vadd.f32 %v5398_v55, %v2678_v59  ;;  %v4019_v7 = vpop.f32.mrb[86].mxu0  ;;  %v5487_v49 = vpop.permute.xlu0 %2973  ;;  %v3130_v59 = vmax.f32 %v5465_v24, 0.0 }
 0x2ff   : > { %v5455_v50 = vadd.f32 %v3125_v47, %v2684_v53  ;;  %v4020_v16 = vpop.f32.mrb[87].mxu0  ;;  %v3220_v60 = vadd.f32 %v3219_v51, %v3218_v3  ;;  %v3063_v47 = vmul.f32 %v5388_v56, %v2839_v27 }
 0x300   : > { %v2341_v19 = vadd.f32 %v4018_v20, %v5267_v1  ;;  %v5462_v11 = vadd.f32 %v3124_v39, %v2679_v4  ;;  %v4021_v21 = vadd.f32 %v4020_v16, %v4019_v7  ;;  %v4214_v22 = vpop.f32.mrb[84].mxu1  ;;  %v5474_v1 = vadd.f32 %v5376_v45, %v3060_v0  ;;  %v2841_v16 = vld [vmem:[%s5101_s21 + $0x70] sm:$0xff] }
 0x301   : > { %3189 = vst.msk [vmem:[%s5101_s21 + $0x18] sm:$0xff] %vm498_vm1, %v5455_v50  ;;  %v2694_v28 = vadd.f32 %v4214_v22, %v5398_v55  ;;  %v2688_v43 = vpop.f32.mrb[85].mxu1  ;;  %v3064_v20 = vmul.f32 %v5379_v17, %v2840_v26  ;;  %v3132_v22 = vmax.f32 %v5492_v10, 0.0  ;;  %v5523_v24 = vadd.f32 %v5376_v45, %v3063_v47  ;;  %v5548_v47 = vpop.permute.xlu1 %2988 }
 0x302   : > { %v2413_v29 = vadd.f32 %v2341_v19, %v1675_v13  ;;  %3188 = vst.msk [vmem:[%s5101_s21 + $0x10] sm:$0xff] %vm498_vm1, %v5462_v11  ;;  %v3221_v31 = vsel %vm498_vm1, %v5462_v11, 0.0  ;;  %v2344_v33 = vadd.f32 %v4021_v21, %v5271_v9  ;;  %v2689_v39 = vadd.f32 %v5398_v55, %v2688_v43  ;;  %v1677_v19 = vld [vmem:[%s5101_s21 + $0xa0] sm:$0xff] }
 0x303   : > { %v3222_v63 = vadd.f32 %v3221_v31, %v3220_v60  ;;  %v5489_v30 = vadd.f32 %v3127_v5, %v2694_v28  ;;  %v3223_v9 = vsel %vm498_vm1, %v5455_v50, 0.0  ;;  %v3131_v3 = vmax.f32 %v5474_v1, 0.0  ;;  %v2843_v10 = vld [vmem:[%s5101_s21 + $0x80] sm:$0xff] }
 0x304   : > { %2446 = vst.msk [vmem:[%s5101_s21 + $0x90] sm:$0xff] %vm498_vm1, %v2413_v29  ;;  %v2414_v40 = vadd.f32 %v2344_v33, %v1676_v37  ;;  %v5499_v2 = vadd.f32 %v3126_v61, %v2689_v39  ;;  %v4022_v53 = vpop.f32.mrb[88].mxu0  ;;  %v4217_v58 = vpop.f32.mrb[86].mxu1  ;;  %v3101_v13 = vadd.f32 %v5376_v45, %v3062_v8  ;;  %v1678_v8 = vld [vmem:[%s5101_s21 + $0xa8] sm:$0xff]  ;;  %v5537_v33 = vadd.f32 %v5376_v45, %v3064_v20 }
 0x305   : > { %3191 = vst.msk [vmem:[%s5101_s21 + $0x28] sm:$0xff] %vm498_vm1, %v5489_v30  ;;  %v3224_v5 = vadd.f32 %v3223_v9, %v3222_v63  ;;  %v2704_v56 = vadd.f32 %v4217_v58, %v5398_v55  ;;  %v4023_v0 = vpop.f32.mrb[89].mxu0  ;;  %v2698_v51 = vpop.f32.mrb[87].mxu1  ;;  %v3227_v27 = vsel %vm498_vm1, %v5489_v30, 0.0  ;;  %v3134_v20 = vmax.f32 %v5523_v24, 0.0 }
 0x306   : > { %2447 = vst.msk [vmem:[%s5101_s21 + $0x98] sm:$0xff] %vm498_vm1, %v2414_v40  ;;  %3190 = vst.msk [vmem:[%s5101_s21 + $0x20] sm:$0xff] %vm498_vm1, %v5499_v2  ;;  %v3225_v61 = vsel %vm498_vm1, %v5499_v2, 0.0  ;;  %v4024_v4 = vadd.f32 %v4023_v0, %v4022_v53  ;;  %v2699_v7 = vadd.f32 %v5398_v55, %v2698_v51  ;;  %v4025_v23 = vpop.f32.mrb[90].mxu0  ;;  %v2984_v9 = vpop.permute.xlu0 %2983 }
 0x307   : > { %v3226_v18 = vadd.f32 %v3225_v61, %v3224_v5  ;;  %v5518_v17 = vadd.f32 %v3129_v12, %v2704_v56  ;;  %v4026_v21 = vpop.f32.mrb[91].mxu0  ;;  %v2842_v12 = vld [vmem:[%s5101_s21 + $0x78] sm:$0xff] }
 0x308   : > { %v2349_v60 = vadd.f32 %v4024_v4, %v5279_v25  ;;  %v5528_v37 = vadd.f32 %v3128_v15, %v2699_v7  ;;  %v4027_v28 = vadd.f32 %v4026_v21, %v4025_v23  ;;  %v4220_v43 = vpop.f32.mrb[88].mxu1  ;;  %v3065_v25 = vmul.f32 %v5421_v36, %v2841_v16 }
 0x309   : > { %3193 = vst.msk [vmem:[%s5101_s21 + $0x38] sm:$0xff] %vm498_vm1, %v5518_v17  ;;  %v3228_v1 = vadd.f32 %v3227_v27, %v3226_v18  ;;  %v2714_v29 = vadd.f32 %v4220_v43, %v5398_v55  ;;  %v2708_v31 = vpop.f32.mrb[89].mxu1  ;;  %v3133_v36 = vmax.f32 %v3101_v13, 0.0  ;;  %v3066_v58 = vmul.f32 %v5419_v34, %v2842_v12 }
 0x30a   : > { %v2415_v15 = vadd.f32 %v2349_v60, %v1677_v19  ;;  %3192 = vst.msk [vmem:[%s5101_s21 + $0x30] sm:$0xff] %vm498_vm1, %v5528_v37  ;;  %v3229_v39 = vsel %vm498_vm1, %v5528_v37, 0.0  ;;  %v2352_v26 = vadd.f32 %v4027_v28, %v5283_v32  ;;  %v2709_v63 = vadd.f32 %v5398_v55, %v2708_v31  ;;  %v1679_v60 = vld [vmem:[%s5101_s21 + $0xb0] sm:$0xff] }
 0x30b   : > { %v3230_v40 = vadd.f32 %v3229_v39, %v3228_v1  ;;  %v5550_v53 = vadd.f32 %v3131_v3, %v2714_v29  ;;  %v3231_v5 = vsel %vm498_vm1, %v5518_v17, 0.0  ;;  %v2844_v3 = vld [vmem:[%s5101_s21 + $0x88] sm:$0xff]  ;;  %v3135_v23 = vmax.f32 %v5537_v33, 0.0  ;;  %v2845_v24 = vld [vmem:[%s5101_s21 + $0x90] sm:$0xff] }
 0x30c   : > { %2448 = vst.msk [vmem:[%s5101_s21 + $0xa0] sm:$0xff] %vm498_vm1, %v2415_v15  ;;  %v2416_v32 = vadd.f32 %v2352_v26, %v1678_v8  ;;  %v5557_v56 = vadd.f32 %v3130_v59, %v2709_v63  ;;  %v4028_v0 = vpop.f32.mrb[92].mxu0  ;;  %v4223_v51 = vpop.f32.mrb[90].mxu1  ;;  %v3067_v59 = vmul.f32 %v5487_v49, %v2843_v10  ;;  %v5576_v21 = vadd.f32 %v5376_v45, %v3065_v25  ;;  %v1680_v15 = vld [vmem:[%s5101_s21 + $0xb8] sm:$0xff] }
 0x30d   : > { %3195 = vst.msk [vmem:[%s5101_s21 + $0x48] sm:$0xff] %vm498_vm1, %v5550_v53  ;;  %v3232_v34 = vadd.f32 %v3231_v5, %v3230_v40  ;;  %v2724_v61 = vadd.f32 %v4223_v51, %v5398_v55  ;;  %v4029_v4 = vpop.f32.mrb[93].mxu0  ;;  %v2718_v7 = vpop.f32.mrb[91].mxu1  ;;  %v3105_v43 = vadd.f32 %v5376_v45, %v3066_v58  ;;  %v3068_v12 = vmul.f32 %v5485_v42, %v2844_v3 }
 0x30e   : > { %2449 = vst.msk [vmem:[%s5101_s21 + $0xa8] sm:$0xff] %vm498_vm1, %v2416_v32  ;;  %3194 = vst.msk [vmem:[%s5101_s21 + $0x40] sm:$0xff] %vm498_vm1, %v5557_v56  ;;  %v3233_v13 = vsel %vm498_vm1, %v5557_v56, 0.0  ;;  %v4030_v16 = vadd.f32 %v4029_v4, %v4028_v0  ;;  %v2719_v18 = vadd.f32 %v5398_v55, %v2718_v7  ;;  %v4031_v19 = vpop.f32.mrb[94].mxu0  ;;  %v3235_v1 = vsel %vm498_vm1, %v5550_v53, 0.0  ;;  %v2999_v58 = vpop.permute.xlu1 %2998 }
 0x30f   : > { %v3234_v27 = vadd.f32 %v3233_v13, %v3232_v34  ;;  %v5579_v49 = vadd.f32 %v3133_v36, %v2724_v61  ;;  %v4032_v28 = vpop.f32.mrb[95].mxu0  ;;  %v5595_v42 = vadd.f32 %v5376_v45, %v3067_v59  ;;  %v3069_v63 = vmul.f32 %v2984_v9, %v2845_v24  ;;  %v2846_v36 = vld [vmem:[%s5101_s21 + $0x98] sm:$0xff]  ;;  %v2994_v5 = vpop.permute.xlu0 %2993 }
 0x310   : > { %v2357_v8 = vadd.f32 %v4030_v16, %v5295_v46  ;;  %v5587_v29 = vadd.f32 %v3132_v22, %v2719_v18  ;;  %v4033_v31 = vadd.f32 %v4032_v28, %v4031_v19  ;;  %v4226_v33 = vpop.f32.mrb[92].mxu1  ;;  %v3137_v9 = vmax.f32 %v3105_v43, 0.0 }
 0x311   : > { %3197 = vst.msk [vmem:[%s5101_s21 + $0x58] sm:$0xff] %vm498_vm1, %v5579_v49  ;;  %v3236_v25 = vadd.f32 %v3235_v1, %v3234_v27  ;;  %v2734_v39 = vadd.f32 %v4226_v33, %v5398_v55  ;;  %v2728_v26 = vpop.f32.mrb[93].mxu1  ;;  %v3136_v51 = vmax.f32 %v5576_v21, 0.0  ;;  %v3239_v3 = vsel %vm498_vm1, %v5579_v49, 0.0 }
 0x312   : > { %v2417_v10 = vadd.f32 %v2357_v8, %v1679_v60  ;;  %3196 = vst.msk [vmem:[%s5101_s21 + $0x50] sm:$0xff] %vm498_vm1, %v5587_v29  ;;  %v3237_v46 = vsel %vm498_vm1, %v5587_v29, 0.0  ;;  %v2360_v22 = vadd.f32 %v4033_v31, %v5299_v52  ;;  %v2729_v40 = vadd.f32 %v5398_v55, %v2728_v26 }
 0x313   : > { %v3238_v32 = vadd.f32 %v3237_v46, %v3236_v25  ;;  %v5605_v0 = vadd.f32 %v3135_v23, %v2734_v39  ;;  %v3107_v7 = vadd.f32 %v5376_v45, %v3068_v12  ;;  %v2847_v23 = vld [vmem:[%s5101_s21 + $0xa0] sm:$0xff]  ;;  %v3138_v19 = vmax.f32 %v5595_v42, 0.0 }
 0x314   : > { %2450 = vst.msk [vmem:[%s5101_s21 + $0xb0] sm:$0xff] %vm498_vm1, %v2417_v10  ;;  %v2418_v52 = vadd.f32 %v2360_v22, %v1680_v15  ;;  %v5612_v34 = vadd.f32 %v3134_v20, %v2729_v40  ;;  %v4034_v61 = vpop.f32.mrb[96].mxu0  ;;  %v4229_v4 = vpop.f32.mrb[94].mxu1  ;;  %v3070_v21 = vmul.f32 %v5548_v47, %v2846_v36  ;;  %v3108_v43 = vadd.f32 %v5376_v45, %v3069_v63  ;;  %v1681_v47 = vld [vmem:[%s5101_s21 + $0xc0] sm:$0xff]  ;;  %v1682_v10 = vld [vmem:[%s5101_s21 + $0xc8] sm:$0xff] }
 0x315   : > { %3199 = vst.msk [vmem:[%s5101_s21 + $0x68] sm:$0xff] %vm498_vm1, %v5605_v0  ;;  %v3240_v59 = vadd.f32 %v3239_v3, %v3238_v32  ;;  %v2744_v13 = vadd.f32 %v4229_v4, %v5398_v55  ;;  %v4035_v16 = vpop.f32.mrb[97].mxu0  ;;  %v2738_v18 = vpop.f32.mrb[95].mxu1  ;;  %v2848_v20 = vld [vmem:[%s5101_s21 + $0xa8] sm:$0xff]  ;;  %v3071_v33 = vmul.f32 %v2994_v5, %v2847_v23  ;;  %v3243_v25 = vsel %vm498_vm1, %v5605_v0, 0.0 }
 0x316   : > { %2451 = vst.msk [vmem:[%s5101_s21 + $0xb8] sm:$0xff] %vm498_vm1, %v2418_v52  ;;  %3198 = vst.msk [vmem:[%s5101_s21 + $0x60] sm:$0xff] %vm498_vm1, %v5612_v34  ;;  %v3241_v24 = vsel %vm498_vm1, %v5612_v34, 0.0  ;;  %v4036_v27 = vadd.f32 %v4035_v16, %v4034_v61  ;;  %v2739_v60 = vadd.f32 %v5398_v55, %v2738_v18  ;;  %v4037_v28 = vpop.f32.mrb[98].mxu0  ;;  %v3072_v31 = vmul.f32 %v2999_v58, %v2848_v20 }
 0x317   : > { %v3242_v12 = vadd.f32 %v3241_v24, %v3240_v59  ;;  %v5632_v1 = vadd.f32 %v3137_v9, %v2744_v13  ;;  %v4038_v8 = vpop.f32.mrb[99].mxu0  ;;  %v3139_v22 = vmax.f32 %v3107_v7, 0.0  ;;  %v3109_v36 = vadd.f32 %v5376_v45, %v3070_v21  ;;  %v3009_v9 = vpop.permute.xlu1 %3008 }
 0x318   : > { %v2365_v15 = vadd.f32 %v4036_v27, %v5311_v54  ;;  %v5638_v39 = vadd.f32 %v3136_v51, %v2739_v60  ;;  %v4039_v26 = vadd.f32 %v4038_v8, %v4037_v28  ;;  %v4232_v42 = vpop.f32.mrb[96].mxu1  ;;  %v3004_v51 = vpop.permute.xlu0 %3003  ;;  %v3111_v61 = vadd.f32 %v5376_v45, %v3072_v31 }
 0x319   : > { %3201 = vst.msk [vmem:[%s5101_s21 + $0x78] sm:$0xff] %vm498_vm1, %v5632_v1  ;;  %v3244_v63 = vadd.f32 %v3243_v25, %v3242_v12  ;;  %v2754_v46 = vadd.f32 %v4232_v42, %v5398_v55  ;;  %v2748_v40 = vpop.f32.mrb[97].mxu1  ;;  %v3110_v4 = vadd.f32 %v5376_v45, %v3071_v33  ;;  %v3247_v23 = vsel %vm498_vm1, %v5632_v1, 0.0 }
 0x31a   : > { %v2419_v58 = vadd.f32 %v2365_v15, %v1681_v47  ;;  %3200 = vst.msk [vmem:[%s5101_s21 + $0x70] sm:$0xff] %vm498_vm1, %v5638_v39  ;;  %v3245_v54 = vsel %vm498_vm1, %v5638_v39, 0.0  ;;  %v2368_v5 = vadd.f32 %v4039_v26, %v5317_v57  ;;  %v2749_v32 = vadd.f32 %v5398_v55, %v2748_v40  ;;  %v1683_v15 = vld [vmem:[%s5101_s21 + $0xd0] sm:$0xff] }
 0x31b   : > { %v3246_v3 = vadd.f32 %v3245_v54, %v3244_v63  ;;  %v5653_v52 = vadd.f32 %v3139_v22, %v2754_v46  ;;  %v2849_v7 = vld [vmem:[%s5101_s21 + $0xb0] sm:$0xff]  ;;  %v3140_v18 = vmax.f32 %v3108_v43, 0.0  ;;  %v3141_v24 = vmax.f32 %v3109_v36, 0.0  ;;  %v1684_v54 = vld [vmem:[%s5101_s21 + $0xd8] sm:$0xff] }
 0x31c   : > { %2452 = vst.msk [vmem:[%s5101_s21 + $0xc0] sm:$0xff] %vm498_vm1, %v2419_v58  ;;  %v2420_v57 = vadd.f32 %v2368_v5, %v1682_v10  ;;  %v5662_v59 = vadd.f32 %v3138_v19, %v2749_v32  ;;  %v4040_v13 = vpop.f32.mrb[100].mxu0  ;;  %v4235_v16 = vpop.f32.mrb[98].mxu1  ;;  %v3073_v12 = vmul.f32 %v3004_v51, %v2849_v7  ;;  %v3143_v42 = vmax.f32 %v3111_v61, 0.0 }
 0x31d   : > { %3203 = vst.msk [vmem:[%s5101_s21 + $0x88] sm:$0xff] %vm498_vm1, %v5653_v52  ;;  %v3248_v21 = vadd.f32 %v3247_v23, %v3246_v3  ;;  %v2764_v20 = vadd.f32 %v4235_v16, %v5398_v55  ;;  %v4041_v27 = vpop.f32.mrb[101].mxu0  ;;  %v2758_v60 = vpop.f32.mrb[99].mxu1  ;;  %v2850_v28 = vld [vmem:[%s5101_s21 + $0xb8] sm:$0xff]  ;;  %v3142_v63 = vmax.f32 %v3110_v4, 0.0  ;;  %v3251_v10 = vsel %vm498_vm1, %v5653_v52, 0.0 }
 0x31e   : > { %2453 = vst.msk [vmem:[%s5101_s21 + $0xc8] sm:$0xff] %vm498_vm1, %v2420_v57  ;;  %3202 = vst.msk [vmem:[%s5101_s21 + $0x80] sm:$0xff] %vm498_vm1, %v5662_v59  ;;  %v3249_v19 = vsel %vm498_vm1, %v5662_v59, 0.0  ;;  %v4042_v43 = vadd.f32 %v4041_v27, %v4040_v13  ;;  %v2759_v47 = vadd.f32 %v5398_v55, %v2758_v60  ;;  %v4043_v8 = vpop.f32.mrb[102].mxu0  ;;  %v3074_v31 = vmul.f32 %v3009_v9, %v2850_v28  ;;  %v3019_v7 = vpop.permute.xlu1 %3018 }
 0x31f   : > { %v3250_v33 = vadd.f32 %v3249_v19, %v3248_v21  ;;  %v5677_v25 = vadd.f32 %v3141_v24, %v2764_v20  ;;  %v4044_v26 = vpop.f32.mrb[103].mxu0  ;;  %v3112_v51 = vadd.f32 %v5376_v45, %v3073_v12  ;;  %v3014_v23 = vpop.permute.xlu0 %3013 }
 0x320   : > { %v2373_v46 = vadd.f32 %v4042_v43, %v5329_v35  ;;  %v5683_v22 = vadd.f32 %v3140_v18, %v2759_v47  ;;  %v4045_v40 = vadd.f32 %v4044_v26, %v4043_v8  ;;  %v4238_v36 = vpop.f32.mrb[100].mxu1  ;;  %v3113_v9 = vadd.f32 %v5376_v45, %v3074_v31 }
 0x321   : > { %3205 = vst.msk [vmem:[%s5101_s21 + $0x98] sm:$0xff] %vm498_vm1, %v5677_v25  ;;  %v3252_v58 = vadd.f32 %v3251_v10, %v3250_v33  ;;  %v2774_v5 = vadd.f32 %v4238_v36, %v5398_v55  ;;  %v2768_v32 = vpop.f32.mrb[101].mxu1  ;;  %v3255_v18 = vsel %vm498_vm1, %v5677_v25, 0.0  ;;  %v3144_v47 = vmax.f32 %v3112_v51, 0.0 }
 0x322   : > { %v2421_v3 = vadd.f32 %v2373_v46, %v1683_v15  ;;  %3204 = vst.msk [vmem:[%s5101_s21 + $0x90] sm:$0xff] %vm498_vm1, %v5683_v22  ;;  %v3253_v35 = vsel %vm498_vm1, %v5683_v22, 0.0  ;;  %v2376_v61 = vadd.f32 %v4045_v40, %v5335_v41  ;;  %v2769_v4 = vadd.f32 %v5398_v55, %v2768_v32  ;;  %v1685_v40 = vld [vmem:[%s5101_s21 + $0xe0] sm:$0xff] }
 0x323   : > { %v3254_v57 = vadd.f32 %v3253_v35, %v3252_v58  ;;  %v5699_v13 = vadd.f32 %v3143_v42, %v2774_v5  ;;  %v2851_v16 = vld [vmem:[%s5101_s21 + $0xc0] sm:$0xff]  ;;  %v3145_v12 = vmax.f32 %v3113_v9, 0.0  ;;  %v1686_v35 = vld [vmem:[%s5101_s21 + $0xe8] sm:$0xff] }
 0x324   : > { %2454 = vst.msk [vmem:[%s5101_s21 + $0xd0] sm:$0xff] %vm498_vm1, %v2421_v3  ;;  %v2422_v21 = vadd.f32 %v2376_v61, %v1684_v54  ;;  %v5706_v20 = vadd.f32 %v3142_v63, %v2769_v4  ;;  %v4046_v41 = vpop.f32.mrb[104].mxu0  ;;  %v4241_v24 = vpop.f32.mrb[102].mxu1  ;;  %v3075_v27 = vmul.f32 %v3014_v23, %v2851_v16 }
 0x325   : > { %3207 = vst.msk [vmem:[%s5101_s21 + $0xa8] sm:$0xff] %vm498_vm1, %v5699_v13  ;;  %v3256_v60 = vadd.f32 %v3255_v18, %v3254_v57  ;;  %v2784_v28 = vadd.f32 %v4241_v24, %v5398_v55  ;;  %v4047_v19 = vpop.f32.mrb[105].mxu0  ;;  %v2778_v43 = vpop.f32.mrb[103].mxu1  ;;  %v2852_v8 = vld [vmem:[%s5101_s21 + $0xc8] sm:$0xff]  ;;  %v3259_v63 = vsel %vm498_vm1, %v5699_v13, 0.0 }
 0x326   : > { %2455 = vst.msk [vmem:[%s5101_s21 + $0xd8] sm:$0xff] %vm498_vm1, %v2422_v21  ;;  %3206 = vst.msk [vmem:[%s5101_s21 + $0xa0] sm:$0xff] %vm498_vm1, %v5706_v20  ;;  %v3257_v31 = vsel %vm498_vm1, %v5706_v20, 0.0  ;;  %v4048_v33 = vadd.f32 %v4047_v19, %v4046_v41  ;;  %v2779_v15 = vadd.f32 %v5398_v55, %v2778_v43  ;;  %v4049_v26 = vpop.f32.mrb[106].mxu0  ;;  %v3076_v42 = vmul.f32 %v3019_v7, %v2852_v8  ;;  %v3029_v16 = vpop.permute.xlu1 %3028 }
 0x327   : > { %v3258_v10 = vadd.f32 %v3257_v31, %v3256_v60  ;;  %v5723_v46 = vadd.f32 %v3145_v12, %v2784_v28  ;;  %v4050_v36 = vpop.f32.mrb[107].mxu0  ;;  %v3114_v58 = vadd.f32 %v5376_v45, %v3075_v27  ;;  %v3024_v18 = vpop.permute.xlu0 %3023 }
 0x328   : > { %v2381_v54 = vadd.f32 %v4048_v33, %v5347_v62  ;;  %v5728_v5 = vadd.f32 %v3144_v47, %v2779_v15  ;;  %v4051_v32 = vadd.f32 %v4050_v36, %v4049_v26  ;;  %v4244_v9 = vpop.f32.mrb[104].mxu1  ;;  %v3115_v51 = vadd.f32 %v5376_v45, %v3076_v42 }
 0x329   : > { %3209 = vst.msk [vmem:[%s5101_s21 + $0xb8] sm:$0xff] %vm498_vm1, %v5723_v46  ;;  %v3260_v3 = vadd.f32 %v3259_v63, %v3258_v10  ;;  %v2794_v61 = vadd.f32 %v4244_v9, %v5398_v55  ;;  %v2788_v4 = vpop.f32.mrb[105].mxu1  ;;  %v3146_v24 = vmax.f32 %v3114_v58, 0.0  ;;  %v3263_v60 = vsel %vm498_vm1, %v5723_v46, 0.0 }
 0x32a   : > { %v2423_v7 = vadd.f32 %v2381_v54, %v1685_v40  ;;  %3208 = vst.msk [vmem:[%s5101_s21 + $0xb0] sm:$0xff] %vm498_vm1, %v5728_v5  ;;  %v3261_v62 = vsel %vm498_vm1, %v5728_v5, 0.0  ;;  %v2384_v23 = vadd.f32 %v4051_v32, %v5351_v6  ;;  %v3147_v57 = vmax.f32 %v3115_v51, 0.0  ;;  %v1687_v40 = vld [vmem:[%s5101_s21 + $0xf0] sm:$0xff] }
 0x32b   : > { %v3262_v21 = vadd.f32 %v3261_v62, %v3260_v3  ;;  %v2789_v41 = vadd.f32 %v5398_v55, %v2788_v4  ;;  %v2853_v27 = vld [vmem:[%s5101_s21 + $0xd0] sm:$0xff] }
 0x32c   : > { %2456 = vst.msk [vmem:[%s5101_s21 + $0xe0] sm:$0xff] %vm498_vm1, %v2423_v7  ;;  %v2424_v28 = vadd.f32 %v2384_v23, %v1686_v35  ;;  %v5748_v12 = vadd.f32 %v3147_v57, %v2794_v61  ;;  %v4052_v6 = vpop.f32.mrb[108].mxu0  ;;  %v4247_v19 = vpop.f32.mrb[106].mxu1  ;;  %v3077_v43 = vmul.f32 %v3024_v18, %v2853_v27  ;;  %v1688_v7 = vld [vmem:[%s5101_s21 + $0xf8] sm:$0xff] }
 0x32d   : > { %v5750_v47 = vadd.f32 %v3146_v24, %v2789_v41  ;;  %v3264_v8 = vadd.f32 %v3263_v60, %v3262_v21  ;;  %v4053_v31 = vpop.f32.mrb[109].mxu0  ;;  %v2854_v33 = vld [vmem:[%s5101_s21 + $0xd8] sm:$0xff]  ;;  %v2798_v15 = vpop.f32.mrb[107].mxu1  ;;  %v2804_v36 = vadd.f32 %v4247_v19, %v5398_v55 }
 0x32e   : > { %2457 = vst.msk [vmem:[%s5101_s21 + $0xe8] sm:$0xff] %vm498_vm1, %v2424_v28  ;;  %3211 = vst.msk [vmem:[%s5101_s21 + $0xc8] sm:$0xff] %vm498_vm1, %v5748_v12  ;;  %v4054_v26 = vadd.f32 %v4053_v31, %v4052_v6  ;;  %v4055_v42 = vpop.f32.mrb[110].mxu0  ;;  %v3078_v63 = vmul.f32 %v3029_v16, %v2854_v33  ;;  %v2799_v54 = vadd.f32 %v5398_v55, %v2798_v15  ;;  %v3267_v4 = vsel %vm498_vm1, %v5748_v12, 0.0  ;;  %v3034_v41 = vpop.permute.xlu0 %3033 }
 0x32f   : > { %3210 = vst.msk [vmem:[%s5101_s21 + $0xc0] sm:$0xff] %vm498_vm1, %v5750_v47  ;;  %v3265_v10 = vsel %vm498_vm1, %v5750_v47, 0.0  ;;  %v4056_v58 = vpop.f32.mrb[111].mxu0  ;;  %v3116_v32 = vadd.f32 %v5376_v45, %v3077_v43  ;;  %v3039_v43 = vpop.permute.xlu1 %3038 }
 0x330   : > { %v3266_v9 = vadd.f32 %v3265_v10, %v3264_v8  ;;  %v2389_v51 = vadd.f32 %v4054_v26, %v5368_v38  ;;  %v3117_v3 = vadd.f32 %v5376_v45, %v3078_v63  ;;  %v4057_v35 = vadd.f32 %v4056_v58, %v4055_v42  ;;  %v4250_v61 = vpop.f32.mrb[108].mxu1 }
 0x331   : > { %v3148_v62 = vmax.f32 %v3116_v32, 0.0  ;;  %v2814_v23 = vadd.f32 %v4250_v61, %v5398_v55  ;;  %v2808_v57 = vpop.f32.mrb[109].mxu1 }
 0x332   : > { %v2425_v16 = vadd.f32 %v2389_v51, %v1687_v40  ;;  %v3149_v18 = vmax.f32 %v3117_v3, 0.0  ;;  %v2392_v21 = vadd.f32 %v4057_v35, %v5383_v48  ;;  %v3268_v38 = vadd.f32 %v3267_v4, %v3266_v9  ;;  %v3044_v51 = vpop.permute.xlu0 %3043 }
 0x333   : > { %v5774_v24 = vadd.f32 %v3148_v62, %v2799_v54  ;;  %v2855_v27 = vld [vmem:[%s5101_s21 + $0xe0] sm:$0xff]  ;;  %v2809_v31 = vadd.f32 %v5398_v55, %v2808_v57 }
 0x334   : > { %2458 = vst.msk [vmem:[%s5101_s21 + $0xf0] sm:$0xff] %vm498_vm1, %v2425_v16  ;;  %v5779_v60 = vadd.f32 %v3149_v18, %v2804_v36  ;;  %v2426_v28 = vadd.f32 %v2392_v21, %v1688_v7  ;;  %v3079_v6 = vmul.f32 %v3034_v41, %v2855_v27  ;;  %v4253_v19 = vpop.f32.mrb[110].mxu1 }
 0x335   : > { %3212 = vst.msk [vmem:[%s5101_s21 + $0xd0] sm:$0xff] %vm498_vm1, %v5774_v24  ;;  %v3269_v48 = vsel %vm498_vm1, %v5774_v24, 0.0  ;;  %v2856_v8 = vld [vmem:[%s5101_s21 + $0xe8] sm:$0xff]  ;;  %v2824_v33 = vadd.f32 %v4253_v19, %v5398_v55  ;;  %v2818_v15 = vpop.f32.mrb[111].mxu1 }
 0x336   : > { %3213 = vst.msk [vmem:[%s5101_s21 + $0xd8] sm:$0xff] %vm498_vm1, %v5779_v60  ;;  %v3271_v26 = vsel %vm498_vm1, %v5779_v60, 0.0  ;;  %2459 = vst.msk [vmem:[%s5101_s21 + $0xf8] sm:$0xff] %vm498_vm1, %v2426_v28  ;;  %v3270_v42 = vadd.f32 %v3269_v48, %v3268_v38  ;;  %v3080_v63 = vmul.f32 %v3039_v43, %v2856_v8  ;;  %v3118_v10 = vadd.f32 %v5376_v45, %v3079_v6 }
 0x337   : > { %v2819_v40 = vadd.f32 %v5398_v55, %v2818_v15  ;;  %v3049_v55 = vpop.permute.xlu1 %3048 }
 0x338   : > { %v3119_v36 = vadd.f32 %v5376_v45, %v3080_v63  ;;  %v3150_v58 = vmax.f32 %v3118_v10, 0.0  ;;  %v3272_v54 = vadd.f32 %v3271_v26, %v3270_v42 }
 0x33a   : > { %v3151_v32 = vmax.f32 %v3119_v36, 0.0  ;;  %v5799_v9 = vadd.f32 %v3150_v58, %v2809_v31 }
 0x33b   : > { %v2857_v3 = vld [vmem:[%s5101_s21 + $0xf0] sm:$0xff] }
 0x33c   : > { %v5802_v35 = vadd.f32 %v3151_v32, %v2814_v23  ;;  %3214 = vst.msk [vmem:[%s5101_s21 + $0xe0] sm:$0xff] %vm498_vm1, %v5799_v9  ;;  %v3273_v61 = vsel %vm498_vm1, %v5799_v9, 0.0  ;;  %v3081_v4 = vmul.f32 %v3044_v51, %v2857_v3 }
 0x33d   : > { %v3274_v7 = vadd.f32 %v3273_v61, %v3272_v54  ;;  %v2858_v62 = vld [vmem:[%s5101_s21 + $0xf8] sm:$0xff] }
 0x33e   : > { %3215 = vst.msk [vmem:[%s5101_s21 + $0xe8] sm:$0xff] %vm498_vm1, %v5802_v35  ;;  %v3275_v57 = vsel %vm498_vm1, %v5802_v35, 0.0  ;;  %v3082_v23 = vmul.f32 %v3049_v55, %v2858_v62  ;;  %v3120_v16 = vadd.f32 %v5376_v45, %v3081_v4 }
 0x33f   : > { %v3276_v18 = vadd.f32 %v3275_v57, %v3274_v7 }
 0x340   : > { %v3121_v21 = vadd.f32 %v5376_v45, %v3082_v23  ;;  %v3152_v38 = vmax.f32 %v3120_v16, 0.0 }
 0x342   : > { %v3153_v41 = vmax.f32 %v3121_v21, 0.0  ;;  %v5817_v27 = vadd.f32 %v3152_v38, %v2819_v40 }
 0x344   : > { %v5819_v28 = vadd.f32 %v3153_v41, %v2824_v33  ;;  %3216 = vst.msk [vmem:[%s5101_s21 + $0xf0] sm:$0xff] %vm498_vm1, %v5817_v27  ;;  %v3277_v6 = vsel %vm498_vm1, %v5817_v27, 0.0 }
 0x345   : > { %v3278_v19 = vadd.f32 %v3277_v6, %v3276_v18 }
 0x346   : > { %3217 = vst.msk [vmem:[%s5101_s21 + $0xf8] sm:$0xff] %vm498_vm1, %v5819_v28  ;;  %v3279_v43 = vsel %vm498_vm1, %v5819_v28, 0.0 }
 0x347   : > { %v3280_v45 = vadd.f32 %v3279_v43, %v3278_v19 }
 0x349   : > { %v3281_v48 = vrot.slane %v3280_v45, 4 }
 0x34b   : > { %v3282_v8 = vadd.f32 %v3281_v48, %v3280_v45 }
 0x34d   : > { %v3283_v31 = vrot.slane %v3282_v8, 2 }
 0x34f   : > { %v3284_v15 = vadd.f32 %v3283_v31, %v3282_v8 }
 0x351   : > { %v3285_v33 = vrot.slane %v3284_v15, 1 }
 0x353   : > { %v5831_v26 = vadd.f32 %v3285_v33, %v3284_v15 }
 0x355   : > { %v5834_v42 = vmul.f32 0.00390625, %v5831_v26 }
 0x357   : > { %v3288_v63 = vsub.f32 %v5433_v44, %v5834_v42  ;;  %v3289_v10 = vsub.f32 %v5423_v14, %v5834_v42  ;;  %v3290_v40 = vsub.f32 %v5462_v11, %v5834_v42  ;;  %v3291_v36 = vsub.f32 %v5455_v50, %v5834_v42 }
 0x358   : > { %v3292_v32 = vsub.f32 %v5499_v2, %v5834_v42  ;;  %v3293_v3 = vsub.f32 %v5489_v30, %v5834_v42  ;;  %v3294_v11 = vsub.f32 %v5528_v37, %v5834_v42  ;;  %v3295_v2 = vsub.f32 %v5518_v17, %v5834_v42 }
 0x359   : > { %v3320_v58 = vmul.f32 %v3288_v63, %v3288_v63  ;;  %v3321_v54 = vmul.f32 %v3289_v10, %v3289_v10  ;;  %v3322_v51 = vmul.f32 %v3290_v40, %v3290_v40  ;;  %v3323_v61 = vmul.f32 %v3291_v36, %v3291_v36 }
 0x35a   : > { %v3324_v55 = vmul.f32 %v3292_v32, %v3292_v32  ;;  %v3325_v62 = vmul.f32 %v3293_v3, %v3293_v3  ;;  %v3296_v23 = vsub.f32 %v5557_v56, %v5834_v42  ;;  %v3326_v16 = vmul.f32 %v3294_v11, %v3294_v11 }
 0x35b   : > { %v3352_v44 = vsel %vm498_vm1, %v3320_v58, 0.0  ;;  %v3353_v14 = vsel %vm498_vm1, %v3321_v54, 0.0  ;;  %v3355_v50 = vsel %vm498_vm1, %v3322_v51, 0.0  ;;  %v3357_v57 = vsel %vm498_vm1, %v3323_v61, 0.0 }
 0x35c   : > { %v3354_v4 = vadd.f32 %v3353_v14, %v3352_v44  ;;  %v3359_v18 = vsel %vm498_vm1, %v3324_v55, 0.0  ;;  %v3297_v37 = vsub.f32 %v5550_v53, %v5834_v42  ;;  %v3327_v38 = vmul.f32 %v3295_v2, %v3295_v2 }
 0x35d   : > { %v3361_v41 = vsel %vm498_vm1, %v3325_v62, 0.0  ;;  %v3298_v17 = vsub.f32 %v5587_v29, %v5834_v42  ;;  %v3328_v19 = vmul.f32 %v3296_v23, %v3296_v23  ;;  %v3363_v43 = vsel %vm498_vm1, %v3326_v16, 0.0 }
 0x35e   : > { %v3356_v7 = vadd.f32 %v3355_v50, %v3354_v4  ;;  %v3299_v56 = vsub.f32 %v5579_v49, %v5834_v42  ;;  %v3329_v48 = vmul.f32 %v3297_v37, %v3297_v37  ;;  %v3365_v8 = vsel %vm498_vm1, %v3327_v38, 0.0 }
 0x35f   : > { %v3300_v53 = vsub.f32 %v5612_v34, %v5834_v42  ;;  %v3330_v15 = vmul.f32 %v3298_v17, %v3298_v17  ;;  %v3367_v33 = vsel %vm498_vm1, %v3328_v19, 0.0  ;;  %v3301_v29 = vsub.f32 %v5605_v0, %v5834_v42 }
 0x360   : > { %v3358_v30 = vadd.f32 %v3357_v57, %v3356_v7  ;;  %v3331_v10 = vmul.f32 %v3299_v56, %v3299_v56  ;;  %v3369_v40 = vsel %vm498_vm1, %v3329_v48, 0.0  ;;  %v3302_v49 = vsub.f32 %v5638_v39, %v5834_v42 }
 0x361   : > { %v3332_v58 = vmul.f32 %v3300_v53, %v3300_v53  ;;  %v3371_v54 = vsel %vm498_vm1, %v3330_v15, 0.0  ;;  %v3303_v34 = vsub.f32 %v5632_v1, %v5834_v42  ;;  %v3333_v51 = vmul.f32 %v3301_v29, %v3301_v29 }
 0x362   : > { %v3360_v21 = vadd.f32 %v3359_v18, %v3358_v30  ;;  %v3373_v3 = vsel %vm498_vm1, %v3331_v10, 0.0  ;;  %v3304_v0 = vsub.f32 %v5662_v59, %v5834_v42  ;;  %v3334_v44 = vmul.f32 %v3302_v49, %v3302_v49 }
 0x363   : > { %v3375_v14 = vsel %vm498_vm1, %v3332_v58, 0.0  ;;  %v3305_v39 = vsub.f32 %v5653_v52, %v5834_v42  ;;  %v3335_v11 = vmul.f32 %v3303_v34, %v3303_v34  ;;  %v3377_v55 = vsel %vm498_vm1, %v3333_v51, 0.0 }
 0x364   : > { %v3362_v6 = vadd.f32 %v3361_v41, %v3360_v21  ;;  %v3306_v1 = vsub.f32 %v5683_v22, %v5834_v42  ;;  %v3336_v7 = vmul.f32 %v3304_v0, %v3304_v0  ;;  %v3379_v2 = vsel %vm498_vm1, %v3334_v44, 0.0 }
 0x365   : > { %v3307_v59 = vsub.f32 %v5677_v25, %v5834_v42  ;;  %v3337_v57 = vmul.f32 %v3305_v39, %v3305_v39  ;;  %v3381_v30 = vsel %vm498_vm1, %v3335_v11, 0.0  ;;  %v3308_v52 = vsub.f32 %v5706_v20, %v5834_v42 }
 0x366   : > { %v3364_v45 = vadd.f32 %v3363_v43, %v3362_v6  ;;  %v3338_v16 = vmul.f32 %v3306_v1, %v3306_v1  ;;  %v3383_v18 = vsel %vm498_vm1, %v3336_v7, 0.0  ;;  %v3309_v22 = vsub.f32 %v5699_v13, %v5834_v42 }
 0x367   : > { %v3339_v37 = vmul.f32 %v3307_v59, %v3307_v59  ;;  %v3385_v38 = vsel %vm498_vm1, %v3337_v57, 0.0  ;;  %v3310_v25 = vsub.f32 %v5728_v5, %v5834_v42  ;;  %v3340_v6 = vmul.f32 %v3308_v52, %v3308_v52 }
 0x368   : > { %v3366_v31 = vadd.f32 %v3365_v8, %v3364_v45  ;;  %v3387_v17 = vsel %vm498_vm1, %v3338_v16, 0.0  ;;  %v3311_v20 = vsub.f32 %v5723_v46, %v5834_v42  ;;  %v3341_v43 = vmul.f32 %v3309_v22, %v3309_v22 }
 0x369   : > { %v3389_v45 = vsel %vm498_vm1, %v3339_v37, 0.0  ;;  %v3312_v13 = vsub.f32 %v5750_v47, %v5834_v42  ;;  %v3342_v48 = vmul.f32 %v3310_v25, %v3310_v25  ;;  %v3391_v8 = vsel %vm498_vm1, %v3340_v6, 0.0 }
 0x36a   : > { %v3368_v63 = vadd.f32 %v3367_v33, %v3366_v31  ;;  %v3313_v5 = vsub.f32 %v5748_v12, %v5834_v42  ;;  %v3343_v53 = vmul.f32 %v3311_v20, %v3311_v20  ;;  %v3393_v15 = vsel %vm498_vm1, %v3341_v43, 0.0 }
 0x36b   : > { %v3314_v46 = vsub.f32 %v5774_v24, %v5834_v42  ;;  %v3395_v29 = vsel %vm498_vm1, %v3342_v48, 0.0  ;;  %v3315_v47 = vsub.f32 %v5779_v60, %v5834_v42  ;;  %v3316_v12 = vsub.f32 %v5799_v9, %v5834_v42 }
 0x36c   : > { %v3370_v36 = vadd.f32 %v3369_v40, %v3368_v63  ;;  %v3344_v63 = vmul.f32 %v3312_v13, %v3312_v13  ;;  %v3345_v40 = vmul.f32 %v3313_v5, %v3313_v5  ;;  %v3317_v24 = vsub.f32 %v5802_v35, %v5834_v42 }
 0x36d   : > { %v3346_v58 = vmul.f32 %v3314_v46, %v3314_v46  ;;  %v3347_v34 = vmul.f32 %v3315_v47, %v3315_v47  ;;  %v3318_v60 = vsub.f32 %v5817_v27, %v5834_v42  ;;  %v3319_v9 = vsub.f32 %v5819_v28, %v5834_v42 }
 0x36e   : > { %v3372_v32 = vadd.f32 %v3371_v54, %v3370_v36  ;;  %v3397_v36 = vsel %vm498_vm1, %v3343_v53, 0.0  ;;  %v3399_v54 = vsel %vm498_vm1, %v3344_v63, 0.0  ;;  %v3401_v51 = vsel %vm498_vm1, %v3345_v40, 0.0 }
 0x36f   : > { %v3403_v0 = vsel %vm498_vm1, %v3346_v58, 0.0  ;;  %v3350_v39 = vmul.f32 %v3318_v60, %v3318_v60  ;;  %v3421_v42 = vlaneseq }
 0x370   : > { %v3374_v61 = vadd.f32 %v3373_v3, %v3372_v32 }
 0x371   : > { %v3411_v7 = vsel %vm498_vm1, %v3350_v39, 0.0 }
 0x372   : > { %v3376_v4 = vadd.f32 %v3375_v14, %v3374_v61  ;;  %v3348_v61 = vmul.f32 %v3316_v12, %v3316_v12  ;;  %v3349_v14 = vmul.f32 %v3317_v24, %v3317_v24 }
 0x374   : > { %v3378_v50 = vadd.f32 %v3377_v55, %v3376_v4  ;;  %v3405_v4 = vsel %vm498_vm1, %v3347_v34, 0.0  ;;  %v3407_v11 = vsel %vm498_vm1, %v3348_v61, 0.0  ;;  %v3409_v27 = vsel %vm498_vm1, %v3349_v14, 0.0 }
 0x376   : > { %v3380_v62 = vadd.f32 %v3379_v2, %v3378_v50  ;;  %v3351_v50 = vmul.f32 %v3319_v9, %v3319_v9 }
 0x378   : > { %v3382_v23 = vadd.f32 %v3381_v30, %v3380_v62  ;;  %v3413_v62 = vsel %vm498_vm1, %v3351_v50, 0.0 }
 0x37a   : > { %v3384_v21 = vadd.f32 %v3383_v18, %v3382_v23  ;;  %v3422_v23 = vshrl.u32 %v3421_v42, 7 }
 0x37c   : > { %v3386_v41 = vadd.f32 %v3385_v38, %v3384_v21  ;;  %vm3424_vm2 = vcmp.eq.s32.totalorder %v3422_v23, 1  ;;  %vm3423_vm3 = vcmp.eq.s32.totalorder %v3422_v23, 0 }
 0x37e   : > { %v3388_v19 = vadd.f32 %v3387_v17, %v3386_v41 }
 0x380   : > { %v3390_v56 = vadd.f32 %v3389_v45, %v3388_v19 }
 0x382   : > { %v3392_v31 = vadd.f32 %v3391_v8, %v3390_v56 }
 0x384   : > { %v3394_v33 = vadd.f32 %v3393_v15, %v3392_v31 }
 0x386   : > { %v3396_v10 = vadd.f32 %v3395_v29, %v3394_v33 }
 0x388   : > { %v3398_v49 = vadd.f32 %v3397_v36, %v3396_v10 }
 0x38a   : > { %v3400_v32 = vadd.f32 %v3399_v54, %v3398_v49 }
 0x38c   : > { %v3402_v3 = vadd.f32 %v3401_v51, %v3400_v32 }
 0x38e   : > { %v3404_v44 = vadd.f32 %v3403_v0, %v3402_v3 }
 0x390   : > { %v3406_v35 = vadd.f32 %v3405_v4, %v3404_v44 }
 0x392   : > { %v3408_v55 = vadd.f32 %v3407_v11, %v3406_v35 }
 0x394   : > { %v3410_v1 = vadd.f32 %v3409_v27, %v3408_v55 }
 0x396   : > { %v3412_v2 = vadd.f32 %v3411_v7, %v3410_v1 }
 0x398   : > { %v3414_v59 = vadd.f32 %v3413_v62, %v3412_v2 }
 0x39a   : > { %v3415_v28 = vrot.slane %v3414_v59, 4 }
 0x39c   : > { %v3416_v57 = vadd.f32 %v3415_v28, %v3414_v59 }
 0x39e   : > { %v3417_v30 = vrot.slane %v3416_v57, 2 }
 0x3a0   : > { %v3418_v52 = vadd.f32 %v3417_v30, %v3416_v57 }
 0x3a2   : > { %v3419_v16 = vrot.slane %v3418_v52, 1 }
 0x3a4   : > { %v3420_v18 = vadd.f32 %v3419_v16, %v3418_v52 }
 0x3a6   : > { %v3425_v21 = vsel %vm3424_vm2, %v3420_v18, 0.0 }
 0x3a7   : > { %v3426_v22 = vsel %vm3423_vm3, %v5831_v26, %v3425_v21 }
 0x3a8   : > { %3427 = vst.msk [vmem:[%s492_s28] sm:$0xff] %vm498_vm1, %v3426_v22 }
 0x3a9 PF: > { %s21_s15 = sadd.s32 1, %s4420_s15   ;;  %s5959_s13 = smov %s4416_s14 }
 0x3aa   : > { %p18_p6 = scmp.ge.s32.totalorder %s21_s15, 4   ;;  %s5960_s14 = smov %s5962_s16 }
 0x3ac   :  { %20 = sbr.rel (!%p18_p6) target bundleno = 2 (0x2), region = 118 }

</bundles_post_ra>
